<compile_context>
chip_gen: v7x
topology: tpu7x:2x2x1
jax: 0.10.0
libtpu: 0.0.40
codegen_flags: <defaults>
</compile_context>

<pallas_src>
import functools

import jax
import jax.numpy as jnp
from jax.experimental import pallas as pl
from jax.experimental.pallas import tpu as pltpu

EPS = 1e-5


# ---------------------------------------------------------------------------
# Fused BasicBlock kernel: conv1 + bn1 + relu + conv2 + bn2 + residual + relu
# ---------------------------------------------------------------------------
def _basic_block_kernel(x_ref, w1_ref, w2_ref, bn_ref, mask_ref, out_ref, x2_ref,
                        *, H, W, C):
    # x_ref   : ((H+3)*(W+2), C) f32   -- padded input image, flattened row-major
    # w1_ref  : (9, C, C) bf16         -- tap t = 3*ky + kx
    # w2_ref  : (9, C, C) bf16
    # bn_ref  : (4, C)  f32            -- rows: scale1, bias1, scale2, bias2
    # mask_ref: (H*(W+2), 1) f32       -- 1.0 for valid output columns, else 0.0
    # out_ref : (H*(W+2), C) f32
    # x2_ref  : ((H+3)*(W+2), C) bf16  -- VMEM scratch: padded conv2 input
    Wp = W + 2
    R_out = H * Wp

    bn = bn_ref[...]
    s1, b1 = bn[0:1, :], bn[1:2, :]
    s2, b2 = bn[2:3, :], bn[3:4, :]
    mask = mask_ref[...]

    # ---- conv1: 9 shifted-view matmuls on the VMEM-resident padded input ----
    acc1 = jnp.zeros((R_out, C), jnp.float32)
    for t in range(9):
        ky, kx = divmod(t, 3)
        off = ky * Wp + kx
        x_tap = x_ref[pl.ds(off, R_out), :].astype(jnp.bfloat16)
        acc1 = acc1 + jnp.dot(x_tap, w1_ref[t],
                              preferred_element_type=jnp.float32)

    # bn1 + relu; zero the (invalid) padded columns before they feed conv2
    z1 = jnp.maximum(acc1 * s1 + b1, 0.0) * mask

    # Stage conv2 input in the padded flattened layout (bf16, stays in VMEM).
    # Writing z1 at offset Wp+1 places row h, col w at padded position
    # (h+1, w+1); masked columns land exactly on the left/right pad columns.
    x2_ref[...] = jnp.zeros(x2_ref.shape, x2_ref.dtype)
    x2_ref[pl.ds(Wp + 1, R_out), :] = z1.astype(x2_ref.dtype)

    # ---- conv2: same 9-tap structure on the scratch ----
    acc2 = jnp.zeros((R_out, C), jnp.float32)
    for t in range(9):
        ky, kx = divmod(t, 3)
        off = ky * Wp + kx
        acc2 = acc2 + jnp.dot(x2_ref[pl.ds(off, R_out), :], w2_ref[t],
                              preferred_element_type=jnp.float32)

    # identity shortcut: the unpadded input lives at offset Wp+1 of x_ref (f32)
    res = x_ref[pl.ds(Wp + 1, R_out), :]
    y = jnp.maximum(acc2 * s2 + b2 + res, 0.0)
    out_ref[...] = y.astype(out_ref.dtype)


# ---------------------------------------------------------------------------
# Wrapper: NCHW in / NCHW out, single pallas_call over the batch
# ---------------------------------------------------------------------------
def _fold_bn(gamma, beta, mean, var):
    scale = gamma / jnp.sqrt(var + EPS)
    bias = beta - mean * scale
    return scale, bias


def basic_block_forward(x_nchw, p):
    N, C, H, W = x_nchw.shape
    assert p["w1"].shape == (3, 3, C, C), "only in_planes == planes supported"
    Wp = W + 2
    R_in = (H + 3) * Wp          # 1 top pad row, 2 bottom pad rows (tap slack)
    R_out = H * Wp

    s1, b1 = _fold_bn(p["bn1_gamma"], p["bn1_beta"], p["bn1_mean"], p["bn1_var"])
    s2, b2 = _fold_bn(p["bn2_gamma"], p["bn2_beta"], p["bn2_mean"], p["bn2_var"])
    bn = jnp.stack([s1, b1, s2, b2], axis=0)                      # (4, C) f32

    # Padded NHWC input, flattened row-major: row index r = h'*(W+2) + w'
    xt = jnp.transpose(x_nchw, (0, 2, 3, 1))                      # NCHW -> NHWC
    xp = jnp.pad(xt, ((0, 0), (1, 2), (1, 1), (0, 0)))
    x1f = xp.reshape(N, R_in, C).astype(jnp.float32)

    w1 = p["w1"].reshape(9, C, C).astype(jnp.bfloat16)            # [ky,kx] -> t
    w2 = p["w2"].reshape(9, C, C).astype(jnp.bfloat16)

    col = jnp.arange(R_out, dtype=jnp.int32) % Wp
    mask = (col < W).astype(jnp.float32).reshape(R_out, 1)

    flops = 2 * 2 * N * R_out * (9 * C) * C                       # both convs
    bytes_accessed = (x1f.size * 4 + N * R_out * C * 4
                      + w1.size * 2 + w2.size * 2 + bn.size * 4 + mask.size * 4)

    kern = functools.partial(_basic_block_kernel, H=H, W=W, C=C)
    out = pl.pallas_call(
        kern,
        out_shape=jax.ShapeDtypeStruct((N, R_out, C), jnp.float32),
        grid_spec=pltpu.PrefetchScalarGridSpec(
            num_scalar_prefetch=0,
            grid=(N,),
            in_specs=[
                pl.BlockSpec((None, R_in, C), lambda n: (n, 0, 0)),  # per-image
                pl.BlockSpec((9, C, C), lambda n: (0, 0, 0)),        # resident
                pl.BlockSpec((9, C, C), lambda n: (0, 0, 0)),        # resident
                pl.BlockSpec((4, C), lambda n: (0, 0)),              # resident
                pl.BlockSpec((R_out, 1), lambda n: (0, 0)),          # resident
            ],
            out_specs=pl.BlockSpec((None, R_out, C), lambda n: (n, 0, 0)),
            scratch_shapes=[pltpu.VMEM((R_in, C), jnp.bfloat16)],
        ),
        compiler_params=pltpu.CompilerParams(
            dimension_semantics=("parallel",),
            vmem_limit_bytes=32 * 1024 * 1024,
        ),
        cost_estimate=pl.CostEstimate(flops=flops, transcendentals=0,
                                      bytes_accessed=bytes_accessed),
    )(x1f, w1, w2, bn, mask)

    # drop the 2 garbage columns per row, back to NCHW
    out = out.reshape(N, H, Wp, C)[:, :, :W, :]
    return jnp.transpose(out, (0, 3, 1, 2)).astype(x_nchw.dtype)


# ---------------------------------------------------------------------------
# Parameters + pure-JAX reference
# ---------------------------------------------------------------------------
def init_basic_block(key, in_planes, planes):
    ks = jax.random.split(key, 10)
    return {
        "w1": 0.1 * jax.random.normal(ks[0], (3, 3, in_planes, planes), jnp.float32),
        "w2": 0.1 * jax.random.normal(ks[1], (3, 3, planes, planes), jnp.float32),
        "bn1_gamma": 1.0 + 0.1 * jax.random.normal(ks[2], (planes,), jnp.float32),
        "bn1_beta": 0.1 * jax.random.normal(ks[3], (planes,), jnp.float32),
        "bn1_mean": 0.1 * jax.random.normal(ks[4], (planes,), jnp.float32),
        "bn1_var": jnp.abs(1.0 + 0.1 * jax.random.normal(ks[5], (planes,), jnp.float32)),
        "bn2_gamma": 1.0 + 0.1 * jax.random.normal(ks[6], (planes,), jnp.float32),
        "bn2_beta": 0.1 * jax.random.normal(ks[7], (planes,), jnp.float32),
        "bn2_mean": 0.1 * jax.random.normal(ks[8], (planes,), jnp.float32),
        "bn2_var": jnp.abs(1.0 + 0.1 * jax.random.normal(ks[9], (planes,), jnp.float32)),
    }


def _ref_conv3x3(x_nhwc, w_hwio):
    return jax.lax.conv_general_dilated(
        x_nhwc, w_hwio, window_strides=(1, 1), padding=((1, 1), (1, 1)),
        dimension_numbers=("NHWC", "HWIO", "NHWC"))


def ref_forward(x_nchw, p):
    x = jnp.transpose(x_nchw, (0, 2, 3, 1))
    s1, b1 = _fold_bn(p["bn1_gamma"], p["bn1_beta"], p["bn1_mean"], p["bn1_var"])
    s2, b2 = _fold_bn(p["bn2_gamma"], p["bn2_beta"], p["bn2_mean"], p["bn2_var"])
    out = jnp.maximum(_ref_conv3x3(x, p["w1"]) * s1 + b1, 0.0)
    out = jnp.maximum(_ref_conv3x3(out, p["w2"]) * s2 + b2 + x, 0.0)
    return jnp.transpose(out, (0, 3, 1, 2))


if __name__ == "__main__":
    key = jax.random.PRNGKey(0)
    k_x, k_p = jax.random.split(key)

    N, C, H, W = 2, 4, 16, 16            # in_planes = planes = 4, stride = 1
    x = jax.random.normal(k_x, (N, C, H, W), jnp.float32)
    params = init_basic_block(k_p, in_planes=C, planes=C)

    y = jax.jit(basic_block_forward)(x, params)
    y = jax.block_until_ready(y)

    y_ref = ref_forward(x, params)
    assert y.shape == (N, C, H, W)
    # bf16 MXU matmuls + bf16 staging of the conv1 activation -> loose-ish tol
    assert jnp.allclose(y, y_ref, rtol=5e-2, atol=5e-2), "mismatch vs reference"

    print("KERNEL_OK")
</pallas_src>

<mosaic_0001>
module attributes {stable_mosaic.version = 11 : i64} {
  func.func @_basic_block_kernel(%arg0: i32, %arg1: memref<1x342x4xf32, #tpu.memory_space<vmem>>, %arg2: memref<9x4x4xbf16, #tpu.memory_space<vmem>>, %arg3: memref<9x4x4xbf16, #tpu.memory_space<vmem>>, %arg4: memref<4x4xf32, #tpu.memory_space<vmem>>, %arg5: memref<288x1xf32, #tpu.memory_space<vmem>>, %arg6: memref<1x288x4xf32, #tpu.memory_space<vmem>>, %arg7: memref<342x4xbf16, #tpu.memory_space<vmem>>) attributes {dimension_semantics = [#tpu.dimension_semantics<parallel>], iteration_bounds = array<i64: 2>, scalar_prefetch = 0 : i64, scratch_operands = 1 : i64, tpu.core_type = #tpu.core_type<tc>, window_params = [{transform_indices = @transform_0, window_bounds = array<i64: 1, 342, 4>}, {pipeline_mode = #tpu.pipeline_mode<synchronous>, transform_indices = @transform_1, window_bounds = array<i64: 9, 4, 4>}, {pipeline_mode = #tpu.pipeline_mode<synchronous>, transform_indices = @transform_2, window_bounds = array<i64: 9, 4, 4>}, {pipeline_mode = #tpu.pipeline_mode<synchronous>, transform_indices = @transform_3, window_bounds = array<i64: 4, 4>}, {pipeline_mode = #tpu.pipeline_mode<synchronous>, transform_indices = @transform_4, window_bounds = array<i64: 288, 1>}, {transform_indices = @transform_5, window_bounds = array<i64: 1, 288, 4>}]} {
    %c0 = arith.constant 0 : index
    %c0_0 = arith.constant 0 : index
    %0 = vector.load %arg4[%c0, %c0_0] : memref<4x4xf32, #tpu.memory_space<vmem>>, vector<4x4xf32>
    %1 = vector.extract_strided_slice %0 {offsets = [0, 0], sizes = [1, 4], strides = [1, 1]} : vector<4x4xf32> to vector<1x4xf32>
    %2 = vector.extract_strided_slice %0 {offsets = [1, 0], sizes = [1, 4], strides = [1, 1]} : vector<4x4xf32> to vector<1x4xf32>
    %3 = vector.extract_strided_slice %0 {offsets = [2, 0], sizes = [1, 4], strides = [1, 1]} : vector<4x4xf32> to vector<1x4xf32>
    %4 = vector.extract_strided_slice %0 {offsets = [3, 0], sizes = [1, 4], strides = [1, 1]} : vector<4x4xf32> to vector<1x4xf32>
    %c0_1 = arith.constant 0 : index
    %c0_2 = arith.constant 0 : index
    %5 = vector.load %arg5[%c0_1, %c0_2] : memref<288x1xf32, #tpu.memory_space<vmem>>, vector<288x1xf32>
    %cst = arith.constant 0.000000e+00 : f32
    %6 = vector.broadcast %cst : f32 to vector<288x4xf32>
    %c0_3 = arith.constant 0 : index
    %c0_4 = arith.constant 0 : index
    %c0_5 = arith.constant 0 : index
    %7 = vector.load %arg1[%c0_3, %c0_4, %c0_5] : memref<1x342x4xf32, #tpu.memory_space<vmem>>, vector<1x288x4xf32>
    %8 = vector.shape_cast %7 : vector<1x288x4xf32> to vector<288x4xf32>
    %9 = arith.truncf %8 : vector<288x4xf32> to vector<288x4xbf16>
    %c0_6 = arith.constant 0 : index
    %c0_7 = arith.constant 0 : index
    %c0_8 = arith.constant 0 : index
    %10 = vector.load %arg2[%c0_6, %c0_7, %c0_8] : memref<9x4x4xbf16, #tpu.memory_space<vmem>>, vector<1x4x4xbf16>
    %11 = vector.shape_cast %10 : vector<1x4x4xbf16> to vector<4x4xbf16>
    %cst_9 = arith.constant dense<0.000000e+00> : vector<288x4xf32>
    %12 = tpu.matmul %9, %11, %cst_9 {dimension_numbers = #tpu.dot_dimension_numbers<[1], [0], [0], [1], [0, 0, 1, 1], [], []>} : vector<288x4xbf16>, vector<4x4xbf16>, vector<288x4xf32> -> vector<288x4xf32>
    %13 = arith.addf %6, %12 : vector<288x4xf32>
    %c0_10 = arith.constant 0 : index
    %c1 = arith.constant 1 : index
    %c0_11 = arith.constant 0 : index
    %14 = vector.load %arg1[%c0_10, %c1, %c0_11] : memref<1x342x4xf32, #tpu.memory_space<vmem>>, vector<1x288x4xf32>
    %15 = vector.shape_cast %14 : vector<1x288x4xf32> to vector<288x4xf32>
    %16 = arith.truncf %15 : vector<288x4xf32> to vector<288x4xbf16>
    %c1_12 = arith.constant 1 : index
    %c0_13 = arith.constant 0 : index
    %c0_14 = arith.constant 0 : index
    %17 = vector.load %arg2[%c1_12, %c0_13, %c0_14] : memref<9x4x4xbf16, #tpu.memory_space<vmem>>, vector<1x4x4xbf16>
    %18 = vector.shape_cast %17 : vector<1x4x4xbf16> to vector<4x4xbf16>
    %cst_15 = arith.constant dense<0.000000e+00> : vector<288x4xf32>
    %19 = tpu.matmul %16, %18, %cst_15 {dimension_numbers = #tpu.dot_dimension_numbers<[1], [0], [0], [1], [0, 0, 1, 1], [], []>} : vector<288x4xbf16>, vector<4x4xbf16>, vector<288x4xf32> -> vector<288x4xf32>
    %20 = arith.addf %13, %19 : vector<288x4xf32>
    %c0_16 = arith.constant 0 : index
    %c2 = arith.constant 2 : index
    %c0_17 = arith.constant 0 : index
    %21 = vector.load %arg1[%c0_16, %c2, %c0_17] : memref<1x342x4xf32, #tpu.memory_space<vmem>>, vector<1x288x4xf32>
    %22 = vector.shape_cast %21 : vector<1x288x4xf32> to vector<288x4xf32>
    %23 = arith.truncf %22 : vector<288x4xf32> to vector<288x4xbf16>
    %c2_18 = arith.constant 2 : index
    %c0_19 = arith.constant 0 : index
    %c0_20 = arith.constant 0 : index
    %24 = vector.load %arg2[%c2_18, %c0_19, %c0_20] : memref<9x4x4xbf16, #tpu.memory_space<vmem>>, vector<1x4x4xbf16>
    %25 = vector.shape_cast %24 : vector<1x4x4xbf16> to vector<4x4xbf16>
    %cst_21 = arith.constant dense<0.000000e+00> : vector<288x4xf32>
    %26 = tpu.matmul %23, %25, %cst_21 {dimension_numbers = #tpu.dot_dimension_numbers<[1], [0], [0], [1], [0, 0, 1, 1], [], []>} : vector<288x4xbf16>, vector<4x4xbf16>, vector<288x4xf32> -> vector<288x4xf32>
    %27 = arith.addf %20, %26 : vector<288x4xf32>
    %c0_22 = arith.constant 0 : index
    %c18 = arith.constant 18 : index
    %c0_23 = arith.constant 0 : index
    %28 = vector.load %arg1[%c0_22, %c18, %c0_23] : memref<1x342x4xf32, #tpu.memory_space<vmem>>, vector<1x288x4xf32>
    %29 = vector.shape_cast %28 : vector<1x288x4xf32> to vector<288x4xf32>
    %30 = arith.truncf %29 : vector<288x4xf32> to vector<288x4xbf16>
    %c3 = arith.constant 3 : index
    %c0_24 = arith.constant 0 : index
    %c0_25 = arith.constant 0 : index
    %31 = vector.load %arg2[%c3, %c0_24, %c0_25] : memref<9x4x4xbf16, #tpu.memory_space<vmem>>, vector<1x4x4xbf16>
    %32 = vector.shape_cast %31 : vector<1x4x4xbf16> to vector<4x4xbf16>
    %cst_26 = arith.constant dense<0.000000e+00> : vector<288x4xf32>
    %33 = tpu.matmul %30, %32, %cst_26 {dimension_numbers = #tpu.dot_dimension_numbers<[1], [0], [0], [1], [0, 0, 1, 1], [], []>} : vector<288x4xbf16>, vector<4x4xbf16>, vector<288x4xf32> -> vector<288x4xf32>
    %34 = arith.addf %27, %33 : vector<288x4xf32>
    %c0_27 = arith.constant 0 : index
    %c19 = arith.constant 19 : index
    %c0_28 = arith.constant 0 : index
    %35 = vector.load %arg1[%c0_27, %c19, %c0_28] : memref<1x342x4xf32, #tpu.memory_space<vmem>>, vector<1x288x4xf32>
    %36 = vector.shape_cast %35 : vector<1x288x4xf32> to vector<288x4xf32>
    %37 = arith.truncf %36 : vector<288x4xf32> to vector<288x4xbf16>
    %c4 = arith.constant 4 : index
    %c0_29 = arith.constant 0 : index
    %c0_30 = arith.constant 0 : index
    %38 = vector.load %arg2[%c4, %c0_29, %c0_30] : memref<9x4x4xbf16, #tpu.memory_space<vmem>>, vector<1x4x4xbf16>
    %39 = vector.shape_cast %38 : vector<1x4x4xbf16> to vector<4x4xbf16>
    %cst_31 = arith.constant dense<0.000000e+00> : vector<288x4xf32>
    %40 = tpu.matmul %37, %39, %cst_31 {dimension_numbers = #tpu.dot_dimension_numbers<[1], [0], [0], [1], [0, 0, 1, 1], [], []>} : vector<288x4xbf16>, vector<4x4xbf16>, vector<288x4xf32> -> vector<288x4xf32>
    %41 = arith.addf %34, %40 : vector<288x4xf32>
    %c0_32 = arith.constant 0 : index
    %c20 = arith.constant 20 : index
    %c0_33 = arith.constant 0 : index
    %42 = vector.load %arg1[%c0_32, %c20, %c0_33] : memref<1x342x4xf32, #tpu.memory_space<vmem>>, vector<1x288x4xf32>
    %43 = vector.shape_cast %42 : vector<1x288x4xf32> to vector<288x4xf32>
    %44 = arith.truncf %43 : vector<288x4xf32> to vector<288x4xbf16>
    %c5 = arith.constant 5 : index
    %c0_34 = arith.constant 0 : index
    %c0_35 = arith.constant 0 : index
    %45 = vector.load %arg2[%c5, %c0_34, %c0_35] : memref<9x4x4xbf16, #tpu.memory_space<vmem>>, vector<1x4x4xbf16>
    %46 = vector.shape_cast %45 : vector<1x4x4xbf16> to vector<4x4xbf16>
    %cst_36 = arith.constant dense<0.000000e+00> : vector<288x4xf32>
    %47 = tpu.matmul %44, %46, %cst_36 {dimension_numbers = #tpu.dot_dimension_numbers<[1], [0], [0], [1], [0, 0, 1, 1], [], []>} : vector<288x4xbf16>, vector<4x4xbf16>, vector<288x4xf32> -> vector<288x4xf32>
    %48 = arith.addf %41, %47 : vector<288x4xf32>
    %c0_37 = arith.constant 0 : index
    %c36 = arith.constant 36 : index
    %c0_38 = arith.constant 0 : index
    %49 = vector.load %arg1[%c0_37, %c36, %c0_38] : memref<1x342x4xf32, #tpu.memory_space<vmem>>, vector<1x288x4xf32>
    %50 = vector.shape_cast %49 : vector<1x288x4xf32> to vector<288x4xf32>
    %51 = arith.truncf %50 : vector<288x4xf32> to vector<288x4xbf16>
    %c6 = arith.constant 6 : index
    %c0_39 = arith.constant 0 : index
    %c0_40 = arith.constant 0 : index
    %52 = vector.load %arg2[%c6, %c0_39, %c0_40] : memref<9x4x4xbf16, #tpu.memory_space<vmem>>, vector<1x4x4xbf16>
    %53 = vector.shape_cast %52 : vector<1x4x4xbf16> to vector<4x4xbf16>
    %cst_41 = arith.constant dense<0.000000e+00> : vector<288x4xf32>
    %54 = tpu.matmul %51, %53, %cst_41 {dimension_numbers = #tpu.dot_dimension_numbers<[1], [0], [0], [1], [0, 0, 1, 1], [], []>} : vector<288x4xbf16>, vector<4x4xbf16>, vector<288x4xf32> -> vector<288x4xf32>
    %55 = arith.addf %48, %54 : vector<288x4xf32>
    %c0_42 = arith.constant 0 : index
    %c37 = arith.constant 37 : index
    %c0_43 = arith.constant 0 : index
    %56 = vector.load %arg1[%c0_42, %c37, %c0_43] : memref<1x342x4xf32, #tpu.memory_space<vmem>>, vector<1x288x4xf32>
    %57 = vector.shape_cast %56 : vector<1x288x4xf32> to vector<288x4xf32>
    %58 = arith.truncf %57 : vector<288x4xf32> to vector<288x4xbf16>
    %c7 = arith.constant 7 : index
    %c0_44 = arith.constant 0 : index
    %c0_45 = arith.constant 0 : index
    %59 = vector.load %arg2[%c7, %c0_44, %c0_45] : memref<9x4x4xbf16, #tpu.memory_space<vmem>>, vector<1x4x4xbf16>
    %60 = vector.shape_cast %59 : vector<1x4x4xbf16> to vector<4x4xbf16>
    %cst_46 = arith.constant dense<0.000000e+00> : vector<288x4xf32>
    %61 = tpu.matmul %58, %60, %cst_46 {dimension_numbers = #tpu.dot_dimension_numbers<[1], [0], [0], [1], [0, 0, 1, 1], [], []>} : vector<288x4xbf16>, vector<4x4xbf16>, vector<288x4xf32> -> vector<288x4xf32>
    %62 = arith.addf %55, %61 : vector<288x4xf32>
    %c0_47 = arith.constant 0 : index
    %c38 = arith.constant 38 : index
    %c0_48 = arith.constant 0 : index
    %63 = vector.load %arg1[%c0_47, %c38, %c0_48] : memref<1x342x4xf32, #tpu.memory_space<vmem>>, vector<1x288x4xf32>
    %64 = vector.shape_cast %63 : vector<1x288x4xf32> to vector<288x4xf32>
    %65 = arith.truncf %64 : vector<288x4xf32> to vector<288x4xbf16>
    %c8 = arith.constant 8 : index
    %c0_49 = arith.constant 0 : index
    %c0_50 = arith.constant 0 : index
    %66 = vector.load %arg2[%c8, %c0_49, %c0_50] : memref<9x4x4xbf16, #tpu.memory_space<vmem>>, vector<1x4x4xbf16>
    %67 = vector.shape_cast %66 : vector<1x4x4xbf16> to vector<4x4xbf16>
    %cst_51 = arith.constant dense<0.000000e+00> : vector<288x4xf32>
    %68 = tpu.matmul %65, %67, %cst_51 {dimension_numbers = #tpu.dot_dimension_numbers<[1], [0], [0], [1], [0, 0, 1, 1], [], []>} : vector<288x4xbf16>, vector<4x4xbf16>, vector<288x4xf32> -> vector<288x4xf32>
    %69 = arith.addf %62, %68 : vector<288x4xf32>
    %70 = vector.broadcast %1 : vector<1x4xf32> to vector<288x4xf32>
    %71 = arith.mulf %69, %70 : vector<288x4xf32>
    %72 = vector.broadcast %2 : vector<1x4xf32> to vector<288x4xf32>
    %73 = arith.addf %71, %72 : vector<288x4xf32>
    %cst_52 = arith.constant 0.000000e+00 : f32
    %74 = vector.broadcast %cst_52 : f32 to vector<288x4xf32>
    %75 = arith.maximumf %73, %74 : vector<288x4xf32>
    %76 = vector.broadcast %5 : vector<288x1xf32> to vector<288x4xf32>
    %77 = arith.mulf %75, %76 : vector<288x4xf32>
    %cst_53 = arith.constant 0.000000e+00 : bf16
    %78 = vector.broadcast %cst_53 : bf16 to vector<342x4xbf16>
    %c0_54 = arith.constant 0 : index
    %c0_55 = arith.constant 0 : index
    %79 = vector.load %arg7[%c0_54, %c0_55] : memref<342x4xbf16, #tpu.memory_space<vmem>>, vector<342x4xbf16>
    tpu.vector_store %arg7[%c0_54, %c0_55], %78 {strides = array<i32>} : memref<342x4xbf16, #tpu.memory_space<vmem>>, vector<342x4xbf16>,
    %80 = arith.truncf %77 : vector<288x4xf32> to vector<288x4xbf16>
    %c19_56 = arith.constant 19 : index
    %c0_57 = arith.constant 0 : index
    %81 = vector.load %arg7[%c19_56, %c0_57] : memref<342x4xbf16, #tpu.memory_space<vmem>>, vector<288x4xbf16>
    tpu.vector_store %arg7[%c19_56, %c0_57], %80 {strides = array<i32>} : memref<342x4xbf16, #tpu.memory_space<vmem>>, vector<288x4xbf16>,
    %cst_58 = arith.constant 0.000000e+00 : f32
    %82 = vector.broadcast %cst_58 : f32 to vector<288x4xf32>
    %c0_59 = arith.constant 0 : index
    %c0_60 = arith.constant 0 : index
    %83 = vector.load %arg7[%c0_59, %c0_60] : memref<342x4xbf16, #tpu.memory_space<vmem>>, vector<288x4xbf16>
    %c0_61 = arith.constant 0 : index
    %c0_62 = arith.constant 0 : index
    %c0_63 = arith.constant 0 : index
    %84 = vector.load %arg3[%c0_61, %c0_62, %c0_63] : memref<9x4x4xbf16, #tpu.memory_space<vmem>>, vector<1x4x4xbf16>
    %85 = vector.shape_cast %84 : vector<1x4x4xbf16> to vector<4x4xbf16>
    %cst_64 = arith.constant dense<0.000000e+00> : vector<288x4xf32>
    %86 = tpu.matmul %83, %85, %cst_64 {dimension_numbers = #tpu.dot_dimension_numbers<[1], [0], [0], [1], [0, 0, 1, 1], [], []>} : vector<288x4xbf16>, vector<4x4xbf16>, vector<288x4xf32> -> vector<288x4xf32>
    %87 = arith.addf %82, %86 : vector<288x4xf32>
    %c1_65 = arith.constant 1 : index
    %c0_66 = arith.constant 0 : index
    %88 = vector.load %arg7[%c1_65, %c0_66] : memref<342x4xbf16, #tpu.memory_space<vmem>>, vector<288x4xbf16>
    %c1_67 = arith.constant 1 : index
    %c0_68 = arith.constant 0 : index
    %c0_69 = arith.constant 0 : index
    %89 = vector.load %arg3[%c1_67, %c0_68, %c0_69] : memref<9x4x4xbf16, #tpu.memory_space<vmem>>, vector<1x4x4xbf16>
    %90 = vector.shape_cast %89 : vector<1x4x4xbf16> to vector<4x4xbf16>
    %cst_70 = arith.constant dense<0.000000e+00> : vector<288x4xf32>
    %91 = tpu.matmul %88, %90, %cst_70 {dimension_numbers = #tpu.dot_dimension_numbers<[1], [0], [0], [1], [0, 0, 1, 1], [], []>} : vector<288x4xbf16>, vector<4x4xbf16>, vector<288x4xf32> -> vector<288x4xf32>
    %92 = arith.addf %87, %91 : vector<288x4xf32>
    %c2_71 = arith.constant 2 : index
    %c0_72 = arith.constant 0 : index
    %93 = vector.load %arg7[%c2_71, %c0_72] : memref<342x4xbf16, #tpu.memory_space<vmem>>, vector<288x4xbf16>
    %c2_73 = arith.constant 2 : index
    %c0_74 = arith.constant 0 : index
    %c0_75 = arith.constant 0 : index
    %94 = vector.load %arg3[%c2_73, %c0_74, %c0_75] : memref<9x4x4xbf16, #tpu.memory_space<vmem>>, vector<1x4x4xbf16>
    %95 = vector.shape_cast %94 : vector<1x4x4xbf16> to vector<4x4xbf16>
    %cst_76 = arith.constant dense<0.000000e+00> : vector<288x4xf32>
    %96 = tpu.matmul %93, %95, %cst_76 {dimension_numbers = #tpu.dot_dimension_numbers<[1], [0], [0], [1], [0, 0, 1, 1], [], []>} : vector<288x4xbf16>, vector<4x4xbf16>, vector<288x4xf32> -> vector<288x4xf32>
    %97 = arith.addf %92, %96 : vector<288x4xf32>
    %c18_77 = arith.constant 18 : index
    %c0_78 = arith.constant 0 : index
    %98 = vector.load %arg7[%c18_77, %c0_78] : memref<342x4xbf16, #tpu.memory_space<vmem>>, vector<288x4xbf16>
    %c3_79 = arith.constant 3 : index
    %c0_80 = arith.constant 0 : index
    %c0_81 = arith.constant 0 : index
    %99 = vector.load %arg3[%c3_79, %c0_80, %c0_81] : memref<9x4x4xbf16, #tpu.memory_space<vmem>>, vector<1x4x4xbf16>
    %100 = vector.shape_cast %99 : vector<1x4x4xbf16> to vector<4x4xbf16>
    %cst_82 = arith.constant dense<0.000000e+00> : vector<288x4xf32>
    %101 = tpu.matmul %98, %100, %cst_82 {dimension_numbers = #tpu.dot_dimension_numbers<[1], [0], [0], [1], [0, 0, 1, 1], [], []>} : vector<288x4xbf16>, vector<4x4xbf16>, vector<288x4xf32> -> vector<288x4xf32>
    %102 = arith.addf %97, %101 : vector<288x4xf32>
    %c19_83 = arith.constant 19 : index
    %c0_84 = arith.constant 0 : index
    %103 = vector.load %arg7[%c19_83, %c0_84] : memref<342x4xbf16, #tpu.memory_space<vmem>>, vector<288x4xbf16>
    %c4_85 = arith.constant 4 : index
    %c0_86 = arith.constant 0 : index
    %c0_87 = arith.constant 0 : index
    %104 = vector.load %arg3[%c4_85, %c0_86, %c0_87] : memref<9x4x4xbf16, #tpu.memory_space<vmem>>, vector<1x4x4xbf16>
    %105 = vector.shape_cast %104 : vector<1x4x4xbf16> to vector<4x4xbf16>
    %cst_88 = arith.constant dense<0.000000e+00> : vector<288x4xf32>
    %106 = tpu.matmul %103, %105, %cst_88 {dimension_numbers = #tpu.dot_dimension_numbers<[1], [0], [0], [1], [0, 0, 1, 1], [], []>} : vector<288x4xbf16>, vector<4x4xbf16>, vector<288x4xf32> -> vector<288x4xf32>
    %107 = arith.addf %102, %106 : vector<288x4xf32>
    %c20_89 = arith.constant 20 : index
    %c0_90 = arith.constant 0 : index
    %108 = vector.load %arg7[%c20_89, %c0_90] : memref<342x4xbf16, #tpu.memory_space<vmem>>, vector<288x4xbf16>
    %c5_91 = arith.constant 5 : index
    %c0_92 = arith.constant 0 : index
    %c0_93 = arith.constant 0 : index
    %109 = vector.load %arg3[%c5_91, %c0_92, %c0_93] : memref<9x4x4xbf16, #tpu.memory_space<vmem>>, vector<1x4x4xbf16>
    %110 = vector.shape_cast %109 : vector<1x4x4xbf16> to vector<4x4xbf16>
    %cst_94 = arith.constant dense<0.000000e+00> : vector<288x4xf32>
    %111 = tpu.matmul %108, %110, %cst_94 {dimension_numbers = #tpu.dot_dimension_numbers<[1], [0], [0], [1], [0, 0, 1, 1], [], []>} : vector<288x4xbf16>, vector<4x4xbf16>, vector<288x4xf32> -> vector<288x4xf32>
    %112 = arith.addf %107, %111 : vector<288x4xf32>
    %c36_95 = arith.constant 36 : index
    %c0_96 = arith.constant 0 : index
    %113 = vector.load %arg7[%c36_95, %c0_96] : memref<342x4xbf16, #tpu.memory_space<vmem>>, vector<288x4xbf16>
    %c6_97 = arith.constant 6 : index
    %c0_98 = arith.constant 0 : index
    %c0_99 = arith.constant 0 : index
    %114 = vector.load %arg3[%c6_97, %c0_98, %c0_99] : memref<9x4x4xbf16, #tpu.memory_space<vmem>>, vector<1x4x4xbf16>
    %115 = vector.shape_cast %114 : vector<1x4x4xbf16> to vector<4x4xbf16>
    %cst_100 = arith.constant dense<0.000000e+00> : vector<288x4xf32>
    %116 = tpu.matmul %113, %115, %cst_100 {dimension_numbers = #tpu.dot_dimension_numbers<[1], [0], [0], [1], [0, 0, 1, 1], [], []>} : vector<288x4xbf16>, vector<4x4xbf16>, vector<288x4xf32> -> vector<288x4xf32>
    %117 = arith.addf %112, %116 : vector<288x4xf32>
    %c37_101 = arith.constant 37 : index
    %c0_102 = arith.constant 0 : index
    %118 = vector.load %arg7[%c37_101, %c0_102] : memref<342x4xbf16, #tpu.memory_space<vmem>>, vector<288x4xbf16>
    %c7_103 = arith.constant 7 : index
    %c0_104 = arith.constant 0 : index
    %c0_105 = arith.constant 0 : index
    %119 = vector.load %arg3[%c7_103, %c0_104, %c0_105] : memref<9x4x4xbf16, #tpu.memory_space<vmem>>, vector<1x4x4xbf16>
    %120 = vector.shape_cast %119 : vector<1x4x4xbf16> to vector<4x4xbf16>
    %cst_106 = arith.constant dense<0.000000e+00> : vector<288x4xf32>
    %121 = tpu.matmul %118, %120, %cst_106 {dimension_numbers = #tpu.dot_dimension_numbers<[1], [0], [0], [1], [0, 0, 1, 1], [], []>} : vector<288x4xbf16>, vector<4x4xbf16>, vector<288x4xf32> -> vector<288x4xf32>
    %122 = arith.addf %117, %121 : vector<288x4xf32>
    %c38_107 = arith.constant 38 : index
    %c0_108 = arith.constant 0 : index
    %123 = vector.load %arg7[%c38_107, %c0_108] : memref<342x4xbf16, #tpu.memory_space<vmem>>, vector<288x4xbf16>
    %c8_109 = arith.constant 8 : index
    %c0_110 = arith.constant 0 : index
    %c0_111 = arith.constant 0 : index
    %124 = vector.load %arg3[%c8_109, %c0_110, %c0_111] : memref<9x4x4xbf16, #tpu.memory_space<vmem>>, vector<1x4x4xbf16>
    %125 = vector.shape_cast %124 : vector<1x4x4xbf16> to vector<4x4xbf16>
    %cst_112 = arith.constant dense<0.000000e+00> : vector<288x4xf32>
    %126 = tpu.matmul %123, %125, %cst_112 {dimension_numbers = #tpu.dot_dimension_numbers<[1], [0], [0], [1], [0, 0, 1, 1], [], []>} : vector<288x4xbf16>, vector<4x4xbf16>, vector<288x4xf32> -> vector<288x4xf32>
    %127 = arith.addf %122, %126 : vector<288x4xf32>
    %c0_113 = arith.constant 0 : index
    %c19_114 = arith.constant 19 : index
    %c0_115 = arith.constant 0 : index
    %128 = vector.load %arg1[%c0_113, %c19_114, %c0_115] : memref<1x342x4xf32, #tpu.memory_space<vmem>>, vector<1x288x4xf32>
    %129 = vector.shape_cast %128 : vector<1x288x4xf32> to vector<288x4xf32>
    %130 = vector.broadcast %3 : vector<1x4xf32> to vector<288x4xf32>
    %131 = arith.mulf %127, %130 : vector<288x4xf32>
    %132 = vector.broadcast %4 : vector<1x4xf32> to vector<288x4xf32>
    %133 = arith.addf %131, %132 : vector<288x4xf32>
    %134 = arith.addf %133, %129 : vector<288x4xf32>
    %cst_116 = arith.constant 0.000000e+00 : f32
    %135 = vector.broadcast %cst_116 : f32 to vector<288x4xf32>
    %136 = arith.maximumf %134, %135 : vector<288x4xf32>
    %c0_117 = arith.constant 0 : index
    %c0_118 = arith.constant 0 : index
    %c0_119 = arith.constant 0 : index
    %137 = vector.load %arg6[%c0_117, %c0_118, %c0_119] : memref<1x288x4xf32, #tpu.memory_space<vmem>>, vector<1x288x4xf32>
    %138 = vector.shape_cast %137 : vector<1x288x4xf32> to vector<288x4xf32>
    %139 = vector.shape_cast %136 : vector<288x4xf32> to vector<1x288x4xf32>
    tpu.vector_store %arg6[%c0_117, %c0_118, %c0_119], %139 {strides = array<i32>} : memref<1x288x4xf32, #tpu.memory_space<vmem>>, vector<1x288x4xf32>,
    return
  }
  func.func @transform_0(%arg0: i32) -> (i32, i32, i32) {
    %c0_i32 = arith.constant 0 : i32
    %c0_i32_0 = arith.constant 0 : i32
    %c0_i32_1 = arith.constant 0 : i32
    return %arg0, %c0_i32, %c0_i32_0 : i32, i32, i32
  }
  func.func @transform_1(%arg0: i32) -> (i32, i32, i32) {
    %c0_i32 = arith.constant 0 : i32
    %c0_i32_0 = arith.constant 0 : i32
    %c0_i32_1 = arith.constant 0 : i32
    %c0_i32_2 = arith.constant 0 : i32
    return %c0_i32, %c0_i32_0, %c0_i32_1 : i32, i32, i32
  }
  func.func @transform_2(%arg0: i32) -> (i32, i32, i32) {
    %c0_i32 = arith.constant 0 : i32
    %c0_i32_0 = arith.constant 0 : i32
    %c0_i32_1 = arith.constant 0 : i32
    %c0_i32_2 = arith.constant 0 : i32
    return %c0_i32, %c0_i32_0, %c0_i32_1 : i32, i32, i32
  }
  func.func @transform_3(%arg0: i32) -> (i32, i32) {
    %c0_i32 = arith.constant 0 : i32
    %c0_i32_0 = arith.constant 0 : i32
    %c0_i32_1 = arith.constant 0 : i32
    return %c0_i32, %c0_i32_0 : i32, i32
  }
  func.func @transform_4(%arg0: i32) -> (i32, i32) {
    %c0_i32 = arith.constant 0 : i32
    %c0_i32_0 = arith.constant 0 : i32
    %c0_i32_1 = arith.constant 0 : i32
    return %c0_i32, %c0_i32_0 : i32, i32
  }
  func.func @transform_5(%arg0: i32) -> (i32, i32, i32) {
    %c0_i32 = arith.constant 0 : i32
    %c0_i32_0 = arith.constant 0 : i32
    %c0_i32_1 = arith.constant 0 : i32
    return %arg0, %c0_i32, %c0_i32_0 : i32, i32, i32
  }
}

</mosaic_0001>

<bundles_post_ra>
// kernel: basic_block_forward.1
= control target key start
LH: loop header
LB: loop body
LE: loop exit
PB: predicated region body
PF: predicated region fallthrough
CT: control target
= control target key end

     0   :  { %s10011_s18 = smov 0   ;;  %s12159_s0 = inlined_call_operand.vmem [shape: f32[2,342,4], index: 0, kind: input, shape index: {}]   ;;  %s12160_s1 = inlined_call_operand.vmem [shape: bf16[9,4,4], index: 1, kind: input, shape index: {}]   ;;  %s12161_s2 = inlined_call_operand.vmem [shape: bf16[9,4,4], index: 2, kind: input, shape index: {}]   ;;  %s12162_s3 = inlined_call_operand.vmem [shape: f32[4,4], index: 3, kind: input, shape index: {}]   ;;  %s12163_s4 = inlined_call_operand.vmem [shape: f32[288,1], index: 4, kind: input, shape index: {}]   ;;  %s12164_s5 = inlined_call_operand.vmem [shape: f32[2,288,4], index: 5, kind: output, shape index: {}]  }
   0x1 LB: > { %s7781_s19 = sadd.s32 4294967295, %s9978_s18   ;;  %p7785_p0 = scmp.ge.s32.totalorder %s9978_s18, 1  ;;  %s9978_s18 = sphi %s10011_s18, %s15_s18  }
   0x2   : > { %p187_p1 = scmp.lt.s32.totalorder %s9978_s18, 3 }
   0x4   : > { %p188_p2 = pnand %p7785_p0, %p187_p1 }
   0x6   : > { %191 = sbr.rel (%p188_p2) target bundleno = 1767 (0x6e7), region = 40 }
   0xd   : > { %v7788_v0 = vld [vmem:[%s12160_s1 + $0x2] sm:$0x3]  ;;  %vm429_vm0 = vcmask 1041408   ;;  %p215_p3 = scmp.lt.s32.totalorder %s7781_s19, 1  ;;  %v317_v2 = vld [vmem:[%s12160_s1] sm:$0x3] }
   0xe   : > { %9866 = vmatprep.subr.msk.bf16.mxu0 %vm429_vm0, %v7788_v0  ;;  %v431_v1 = vsel %vm429_vm0, %v7788_v0, 0  ;;  %vm374_vm1 = vcmask 31744   ;;  %v665_v11 = vsel %vm429_vm0, %v317_v2, 0  ;;  %v10047_v13 = vld [vmem:[%s12160_s1 + $0x4] sm:$0x3]  ;;  %vm3458_vm2 = vcmask 27648  }
   0xf   : > { %8607 = vmatpush3.bf16.msra.mxu0 %v431_v1  ;;  %s12315_s19 = smov (!%p215_p3, %s7781_s19), 1  ;;  %vm4010_vm3 = vcmask 27649   ;;  %vm4011_vm4 = vsmask.f32 7942  ;;  %vm3611_vm5 = vsmask.f32 1280 }
  0x10   : > { %9867 = vmatprep.subr.msk.bf16.mxu0 %vm429_vm0, %v317_v2  ;;  %s9884_s24 = smul.u32 344, %s12315_s19  ;;  %vm3612_vm6 = vsmask.f32 5392  ;;  %vm10765_vm7 = vmand %vm4010_vm3, %vm4011_vm4  ;;  %vm4189_vm9 = vsmask.f32 7424  ;;  %vm4051_vm10 = vcmask 25600  }
  0x11   : > { %vm10771_vm8 = vmor %vm3611_vm5, %vm3612_vm6  ;;  %vm4794_vm12 = vcmask 1046528   ;;  %vm5547_vm13 = vsmask.f32 6400  ;;  %vm5994_vm14 = vcmask 1045504   ;;  %vm6747_vm15 = vsmask.f32 5376 }
  0x12   : > { %s10034_s27 = scalar_lea.vmem %s12159_s0, %s9884_s24  ;;  %vm11097_vm11 = vmand %vm4051_vm10, %vm3611_vm5  ;;  %s9885_s25 = smul.u32 288, %s12315_s19 }
  0x13   : > { %v318_v3 = vld [vmem:[%s10034_s27 + $0x1] sm:$0xff]  ;;  %v319_v4 = vld [vmem:[%s10034_s27 + $0x9] sm:$0xff]  ;;  %v320_v5 = vld [vmem:[%s10034_s27 + $0x11] sm:$0xff] }
  0x14   : > { %v354_v6 = vpack.c.bf16 %v319_v4, %v318_v3  ;;  %v321_v7 = vld [vmem:[%s10034_s27 + $0x19] sm:$0xff]  ;;  %v322_v8 = vld [vmem:[%s10034_s27 + $0x21] sm:$0xff]  ;;  %v323_v9 = vld [vmem:[%s10034_s27 + $0x29] sm:$0xff]  ;;  %v955_v4 = vsel %vm429_vm0, %v10047_v13, 0  ;;  %s11985_s28 = scalar_lea.vmem %s12164_s5, %s9885_s25 }
  0x15   : > { %v355_v10 = vpack.c.bf16 %v321_v7, %v320_v5  ;;  %v356_v12 = vpack.c.bf16 %v323_v9, %v322_v8  ;;  %v324_v14 = vld [vmem:[%s10034_s27 + $0x31] sm:$0xff]  ;;  %v325_v15 = vld [vmem:[%s10034_s27 + $0x39] sm:$0xff]  ;;  %v326_v16 = vld [vmem:[%s10034_s27 + $0x41] sm:$0xff] }
  0x16   : > { %8608 = vmatprep.mubr.msk.bf16.mxu0 %vm374_vm1, %v354_v6  ;;  %v327_v17 = vld [vmem:[%s10034_s27 + $0x49] sm:$0xff]  ;;  %v357_v18 = vpack.c.bf16 %v325_v15, %v324_v14  ;;  %v328_v20 = vld [vmem:[%s10034_s27 + $0x51] sm:$0xff]  ;;  %v329_v21 = vld [vmem:[%s10034_s27 + $0x59] sm:$0xff] }
  0x17   : > { %8609 = vmatmul.mubr.msk.bf16.vlgmr.msra.gmra.mrb[0].mxu0 %vm374_vm1, %v355_v10  ;;  %v358_v19 = vpack.c.bf16 %v327_v17, %v326_v16  ;;  %v330_v22 = vld [vmem:[%s10034_s27 + $0x61] sm:$0xff]  ;;  %v331_v23 = vld [vmem:[%s10034_s27 + $0x69] sm:$0xff]  ;;  %v359_v24 = vpack.c.bf16 %v329_v21, %v328_v20  ;;  %v332_v26 = vld [vmem:[%s10034_s27 + $0x71] sm:$0xff] }
  0x18   : > { %8645 = vmatpush3.bf16.msra.mxu0 %v665_v11  ;;  %8612 = vmatprep.mubr.msk.bf16.mxu0 %vm374_vm1, %v356_v12  ;;  %v360_v25 = vpack.c.bf16 %v331_v23, %v330_v22  ;;  %v333_v27 = vld [vmem:[%s10034_s27 + $0x79] sm:$0xff]  ;;  %v334_v28 = vld [vmem:[%s10034_s27 + $0x81] sm:$0xff]  ;;  %v335_v29 = vld [vmem:[%s10034_s27 + $0x89] sm:$0xff] }
  0x19   : > { %9868 = vmatprep.subr.msk.bf16.mxu0 %vm429_vm0, %v10047_v13  ;;  %v361_v30 = vpack.c.bf16 %v333_v27, %v332_v26  ;;  %v362_v31 = vpack.c.bf16 %v335_v29, %v334_v28  ;;  %v336_v32 = vld [vmem:[%s10034_s27 + $0x91] sm:$0xff]  ;;  %v337_v33 = vld [vmem:[%s10034_s27 + $0x99] sm:$0xff]  ;;  %v338_v34 = vld [vmem:[%s10034_s27 + $0xa1] sm:$0xff] }
  0x1a   : > { %v339_v35 = vld [vmem:[%s10034_s27 + $0xa9] sm:$0xff]  ;;  %v363_v36 = vpack.c.bf16 %v337_v33, %v336_v32  ;;  %v340_v38 = vld [vmem:[%s10034_s27 + $0xb1] sm:$0xff]  ;;  %v341_v39 = vld [vmem:[%s10034_s27 + $0xb9] sm:$0xff] }
  0x1b   : > { %v364_v37 = vpack.c.bf16 %v339_v35, %v338_v34  ;;  %v342_v40 = vld [vmem:[%s10034_s27 + $0xc1] sm:$0xff]  ;;  %v343_v41 = vld [vmem:[%s10034_s27 + $0xc9] sm:$0xff]  ;;  %v365_v42 = vpack.c.bf16 %v341_v39, %v340_v38  ;;  %v344_v44 = vld [vmem:[%s10034_s27 + $0xd1] sm:$0xff] }
  0x1c   : > { %v366_v43 = vpack.c.bf16 %v343_v41, %v342_v40  ;;  %v345_v45 = vld [vmem:[%s10034_s27 + $0xd9] sm:$0xff]  ;;  %v346_v46 = vld [vmem:[%s10034_s27 + $0xe1] sm:$0xff]  ;;  %v347_v47 = vld [vmem:[%s10034_s27 + $0xe9] sm:$0xff] }
  0x1d   : > { %v367_v48 = vpack.c.bf16 %v345_v45, %v344_v44  ;;  %v368_v49 = vpack.c.bf16 %v347_v47, %v346_v46  ;;  %v348_v50 = vld [vmem:[%s10034_s27 + $0xf1] sm:$0xff]  ;;  %v349_v51 = vld [vmem:[%s10034_s27 + $0xf9] sm:$0xff]  ;;  %v350_v52 = vld [vmem:[%s10034_s27 + $0x101] sm:$0xff] }
  0x1e   : > { %v351_v53 = vld [vmem:[%s10034_s27 + $0x109] sm:$0xff]  ;;  %v369_v54 = vpack.c.bf16 %v349_v51, %v348_v50  ;;  %v352_v56 = vld [vmem:[%s10034_s27 + $0x111] sm:$0xff]  ;;  %v353_v57 = vld [vmem:[%s10034_s27 + $0x119] sm:$0xff] }
  0x1f   : > { %8613 = vmatmul.mubr.msk.bf16.gmra.mrb[4].mxu0 %vm374_vm1, %v357_v18  ;;  %v370_v55 = vpack.c.bf16 %v351_v53, %v350_v52  ;;  %v263_v58 = vld [vmem:[%s10034_s27] sm:$0xff]  ;;  %v264_v59 = vld [vmem:[%s10034_s27 + $0x8] sm:$0xff]  ;;  %v371_v60 = vpack.c.bf16 %v353_v57, %v352_v56  ;;  %v265_v62 = vld [vmem:[%s10034_s27 + $0x10] sm:$0xff] }
  0x20   : > { %8616 = vmatprep.mubr.msk.bf16.mxu0 %vm374_vm1, %v358_v19  ;;  %v299_v61 = vpack.c.bf16 %v264_v59, %v263_v58  ;;  %v266_v63 = vld [vmem:[%s10034_s27 + $0x18] sm:$0xff]  ;;  %v267_v0 = vld [vmem:[%s10034_s27 + $0x20] sm:$0xff]  ;;  %v268_v1 = vld [vmem:[%s10034_s27 + $0x28] sm:$0xff] }
  0x21   : > { %v300_v2 = vpack.c.bf16 %v266_v63, %v265_v62  ;;  %v301_v3 = vpack.c.bf16 %v268_v1, %v267_v0  ;;  %v10110_v5 = vld [vmem:[%s12160_s1 + $0x6] sm:$0x3]  ;;  %v269_v6 = vld [vmem:[%s10034_s27 + $0x30] sm:$0xff]  ;;  %v270_v7 = vld [vmem:[%s10034_s27 + $0x38] sm:$0xff] }
  0x22   : > { %v271_v8 = vld [vmem:[%s10034_s27 + $0x40] sm:$0xff]  ;;  %v272_v9 = vld [vmem:[%s10034_s27 + $0x48] sm:$0xff]  ;;  %v302_v10 = vpack.c.bf16 %v270_v7, %v269_v6  ;;  %v273_v12 = vld [vmem:[%s10034_s27 + $0x50] sm:$0xff] }
  0x23   : > { %v303_v11 = vpack.c.bf16 %v272_v9, %v271_v8  ;;  %v274_v13 = vld [vmem:[%s10034_s27 + $0x58] sm:$0xff]  ;;  %v275_v14 = vld [vmem:[%s10034_s27 + $0x60] sm:$0xff]  ;;  %v276_v15 = vld [vmem:[%s10034_s27 + $0x68] sm:$0xff] }
  0x24   : > { %v304_v16 = vpack.c.bf16 %v274_v13, %v273_v12  ;;  %v305_v17 = vpack.c.bf16 %v276_v15, %v275_v14  ;;  %v277_v18 = vld [vmem:[%s10034_s27 + $0x70] sm:$0xff]  ;;  %v278_v19 = vld [vmem:[%s10034_s27 + $0x78] sm:$0xff]  ;;  %v279_v20 = vld [vmem:[%s10034_s27 + $0x80] sm:$0xff] }
  0x25   : > { %v280_v21 = vld [vmem:[%s10034_s27 + $0x88] sm:$0xff]  ;;  %v306_v22 = vpack.c.bf16 %v278_v19, %v277_v18  ;;  %v283_v26 = vld [vmem:[%s10034_s27 + $0xa0] sm:$0xff]  ;;  %v850_v62 = vld [vmem:[%s10034_s27 + $0x32] sm:$0xff] }
  0x26   : > { %v307_v23 = vpack.c.bf16 %v280_v21, %v279_v20  ;;  %v284_v27 = vld [vmem:[%s10034_s27 + $0xa8] sm:$0xff]  ;;  %v287_v32 = vld [vmem:[%s10034_s27 + $0xc0] sm:$0xff] }
  0x27   : > { %8617 = vmatmul.mubr.msk.bf16.gmra.mrb[8].mxu0 %vm374_vm1, %v359_v24  ;;  %v281_v24 = vld [vmem:[%s10034_s27 + $0x90] sm:$0xff]  ;;  %v309_v29 = vpack.c.bf16 %v284_v27, %v283_v26  ;;  %v288_v33 = vld [vmem:[%s10034_s27 + $0xc8] sm:$0xff]  ;;  %v291_v38 = vld [vmem:[%s10034_s27 + $0xe0] sm:$0xff] }
  0x28   : > { %8620 = vmatprep.mubr.msk.bf16.mxu0 %vm374_vm1, %v360_v25  ;;  %v282_v25 = vld [vmem:[%s10034_s27 + $0x98] sm:$0xff]  ;;  %v311_v35 = vpack.c.bf16 %v288_v33, %v287_v32  ;;  %v292_v39 = vld [vmem:[%s10034_s27 + $0xe8] sm:$0xff]  ;;  %v295_v44 = vld [vmem:[%s10034_s27 + $0x100] sm:$0xff] }
  0x29   : > { %v308_v28 = vpack.c.bf16 %v282_v25, %v281_v24  ;;  %v313_v41 = vpack.c.bf16 %v292_v39, %v291_v38  ;;  %v296_v45 = vld [vmem:[%s10034_s27 + $0x108] sm:$0xff]  ;;  %v851_v63 = vld [vmem:[%s10034_s27 + $0x3a] sm:$0xff] }
  0x2a   : > { %v315_v47 = vpack.c.bf16 %v296_v45, %v295_v44  ;;  %v844_v50 = vld [vmem:[%s10034_s27 + $0x2] sm:$0xff]  ;;  %v845_v51 = vld [vmem:[%s10034_s27 + $0xa] sm:$0xff] }
  0x2b   : > { %v880_v53 = vpack.c.bf16 %v845_v51, %v844_v50  ;;  %v848_v56 = vld [vmem:[%s10034_s27 + $0x22] sm:$0xff]  ;;  %v849_v57 = vld [vmem:[%s10034_s27 + $0x2a] sm:$0xff] }
  0x2c   : > { %v10170_v59 = vpack.c.bf16 %v849_v57, %v848_v56  ;;  %v852_v0 = vld [vmem:[%s10034_s27 + $0x42] sm:$0xff]  ;;  %v853_v1 = vld [vmem:[%s10034_s27 + $0x4a] sm:$0xff] }
  0x2d   : > { %v856_v6 = vld [vmem:[%s10034_s27 + $0x62] sm:$0xff]  ;;  %v857_v7 = vld [vmem:[%s10034_s27 + $0x6a] sm:$0xff] }
  0x2e   : > { %v886_v9 = vpack.c.bf16 %v857_v7, %v856_v6  ;;  %v860_v12 = vld [vmem:[%s10034_s27 + $0x82] sm:$0xff]  ;;  %v861_v13 = vld [vmem:[%s10034_s27 + $0x8a] sm:$0xff] }
  0x2f   : > { %8621 = vmatmul.mubr.msk.bf16.gmra.mrb[12].mxu0 %vm374_vm1, %v361_v30  ;;  %v285_v30 = vld [vmem:[%s10034_s27 + $0xb0] sm:$0xff]  ;;  %v888_v15 = vpack.c.bf16 %v861_v13, %v860_v12  ;;  %v864_v18 = vld [vmem:[%s10034_s27 + $0xa2] sm:$0xff]  ;;  %v7882_v44 = vld [vmem:[%s12160_s1 + $0xa] sm:$0x3] }
  0x30   : > { %8624 = vmatprep.mubr.msk.bf16.mxu0 %vm374_vm1, %v362_v31  ;;  %v286_v31 = vld [vmem:[%s10034_s27 + $0xb8] sm:$0xff]  ;;  %v865_v19 = vld [vmem:[%s10034_s27 + $0xaa] sm:$0xff]  ;;  %v868_v24 = vld [vmem:[%s10034_s27 + $0xc2] sm:$0xff]  ;;  %v1933_v57 = vsel %vm429_vm0, %v7882_v44, 0 }
  0x31   : > { %v310_v34 = vpack.c.bf16 %v286_v31, %v285_v30  ;;  %v890_v21 = vpack.c.bf16 %v865_v19, %v864_v18  ;;  %v869_v25 = vld [vmem:[%s10034_s27 + $0xca] sm:$0xff]  ;;  %v872_v30 = vld [vmem:[%s10034_s27 + $0xe2] sm:$0xff] }
  0x32   : > { %v892_v27 = vpack.c.bf16 %v869_v25, %v868_v24  ;;  %v873_v31 = vld [vmem:[%s10034_s27 + $0xea] sm:$0xff]  ;;  %v1204_v45 = vld [vmem:[%s10034_s27 + $0x122] sm:$0xff] }
  0x33   : > { %v894_v33 = vpack.c.bf16 %v873_v31, %v872_v30  ;;  %v1498_v51 = vld [vmem:[%s10034_s27 + $0x23] sm:$0xff] }
  0x34   : > { %v1510_v7 = vld [vmem:[%s10034_s27 + $0x83] sm:$0xff] }
  0x35   : > { %v1514_v13 = vld [vmem:[%s10034_s27 + $0xa3] sm:$0xff] }
  0x36   : > { %v1518_v19 = vld [vmem:[%s10034_s27 + $0xc3] sm:$0xff] }
  0x37   : > { %8625 = vmatmul.mubr.msk.bf16.gmra.mrb[16].mxu0 %vm374_vm1, %v363_v36  ;;  %v289_v36 = vld [vmem:[%s10034_s27 + $0xd0] sm:$0xff]  ;;  %v1522_v25 = vld [vmem:[%s10034_s27 + $0xe3] sm:$0xff] }
  0x38   : > { %8628 = vmatprep.mubr.msk.bf16.mxu0 %vm374_vm1, %v364_v37  ;;  %v290_v37 = vld [vmem:[%s10034_s27 + $0xd8] sm:$0xff]  ;;  %v1526_v31 = vld [vmem:[%s10034_s27 + $0x103] sm:$0xff] }
  0x39   : > { %v312_v40 = vpack.c.bf16 %v290_v37, %v289_v36  ;;  %v876_v36 = vld [vmem:[%s10034_s27 + $0x102] sm:$0xff]  ;;  %v877_v37 = vld [vmem:[%s10034_s27 + $0x10a] sm:$0xff] }
  0x3a   : > { %v896_v39 = vpack.c.bf16 %v877_v37, %v876_v36  ;;  %v1530_v37 = vld [vmem:[%s10034_s27 + $0x123] sm:$0xff] }
  0x3f   : > { %8629 = vmatmul.mubr.msk.bf16.gmra.mrb[20].mxu0 %vm374_vm1, %v365_v42  ;;  %v293_v42 = vld [vmem:[%s10034_s27 + $0xf0] sm:$0xff] }
  0x40   : > { %8632 = vmatprep.mubr.msk.bf16.mxu0 %vm374_vm1, %v366_v43  ;;  %v294_v43 = vld [vmem:[%s10034_s27 + $0xf8] sm:$0xff] }
  0x41   : > { %v314_v46 = vpack.c.bf16 %v294_v43, %v293_v42 }
  0x47   : > { %8633 = vmatmul.mubr.msk.bf16.gmra.mrb[24].mxu0 %vm374_vm1, %v367_v48  ;;  %v297_v48 = vld [vmem:[%s10034_s27 + $0x110] sm:$0xff] }
  0x48   : > { %8636 = vmatprep.mubr.msk.bf16.mxu0 %vm374_vm1, %v368_v49  ;;  %v298_v49 = vld [vmem:[%s10034_s27 + $0x118] sm:$0xff] }
  0x49   : > { %v316_v52 = vpack.c.bf16 %v298_v49, %v297_v48  ;;  %v1497_v48 = vld [vmem:[%s10034_s27 + $0x1b] sm:$0xff] }
  0x4f   : > { %8637 = vmatmul.mubr.msk.bf16.gmra.mrb[28].mxu0 %vm374_vm1, %v369_v54  ;;  %v846_v54 = vld [vmem:[%s10034_s27 + $0x12] sm:$0xff] }
  0x50   : > { %8640 = vmatprep.mubr.msk.bf16.mxu0 %vm374_vm1, %v370_v55  ;;  %v847_v55 = vld [vmem:[%s10034_s27 + $0x1a] sm:$0xff] }
  0x51   : > { %v10168_v58 = vpack.c.bf16 %v847_v55, %v846_v54  ;;  %v1501_v54 = vld [vmem:[%s10034_s27 + $0x3b] sm:$0xff] }
  0x57   : > { %8641 = vmatmul.mubr.msk.bf16.gmra.mrb[32].mxu0 %vm374_vm1, %v371_v60  ;;  %v1281_v60 = vsel %vm429_vm0, %v10110_v5, 0 }
  0x58   : > { %8646 = vmatprep.mubr.msk.bf16.mxu0 %vm374_vm1, %v299_v61  ;;  %v10177_v61 = vld [vmem:[%s12160_s1 + $0x8] sm:$0x3] }
  0x59   : > { %v1607_v43 = vsel %vm429_vm0, %v10177_v61, 0 }
  0x5f   : > { %8647 = vmatmul.mubr.msk.bf16.vlgmr.msra.gmra.mrb[0].mxu0 %vm374_vm1, %v300_v2  ;;  %v883_v2 = vpack.c.bf16 %v851_v63, %v850_v62  ;;  %v1505_v62 = vld [vmem:[%s10034_s27 + $0x5b] sm:$0xff] }
  0x60   : > { %8683 = vmatpush3.bf16.msra.mxu0 %v955_v4  ;;  %8650 = vmatprep.mubr.msk.bf16.mxu0 %vm374_vm1, %v301_v3  ;;  %v884_v3 = vpack.c.bf16 %v853_v1, %v852_v0  ;;  %v854_v4 = vld [vmem:[%s10034_s27 + $0x52] sm:$0xff]  ;;  %v1506_v1 = vld [vmem:[%s10034_s27 + $0x63] sm:$0xff] }
  0x61   : > { %9869 = vmatprep.subr.msk.bf16.mxu0 %vm429_vm0, %v10110_v5  ;;  %v855_v5 = vld [vmem:[%s10034_s27 + $0x5a] sm:$0xff] }
  0x62   : > { %v885_v8 = vpack.c.bf16 %v855_v5, %v854_v4  ;;  %v1509_v4 = vld [vmem:[%s10034_s27 + $0x7b] sm:$0xff] }
  0x67   : > { %8651 = vmatmul.mubr.msk.bf16.gmra.mrb[4].mxu0 %vm374_vm1, %v302_v10  ;;  %v858_v10 = vld [vmem:[%s10034_s27 + $0x72] sm:$0xff] }
  0x68   : > { %8654 = vmatprep.mubr.msk.bf16.mxu0 %vm374_vm1, %v303_v11  ;;  %v859_v11 = vld [vmem:[%s10034_s27 + $0x7a] sm:$0xff] }
  0x69   : > { %v887_v14 = vpack.c.bf16 %v859_v11, %v858_v10  ;;  %v1513_v10 = vld [vmem:[%s10034_s27 + $0x9b] sm:$0xff] }
  0x6f   : > { %8655 = vmatmul.mubr.msk.bf16.gmra.mrb[8].mxu0 %vm374_vm1, %v304_v16  ;;  %v862_v16 = vld [vmem:[%s10034_s27 + $0x92] sm:$0xff] }
  0x70   : > { %8658 = vmatprep.mubr.msk.bf16.mxu0 %vm374_vm1, %v305_v17  ;;  %v863_v17 = vld [vmem:[%s10034_s27 + $0x9a] sm:$0xff] }
  0x71   : > { %v889_v20 = vpack.c.bf16 %v863_v17, %v862_v16  ;;  %v1517_v16 = vld [vmem:[%s10034_s27 + $0xbb] sm:$0xff] }
  0x77   : > { %8659 = vmatmul.mubr.msk.bf16.gmra.mrb[12].mxu0 %vm374_vm1, %v306_v22  ;;  %v866_v22 = vld [vmem:[%s10034_s27 + $0xb2] sm:$0xff] }
  0x78   : > { %8662 = vmatprep.mubr.msk.bf16.mxu0 %vm374_vm1, %v307_v23  ;;  %v867_v23 = vld [vmem:[%s10034_s27 + $0xba] sm:$0xff] }
  0x79   : > { %v891_v26 = vpack.c.bf16 %v867_v23, %v866_v22  ;;  %v1521_v22 = vld [vmem:[%s10034_s27 + $0xdb] sm:$0xff] }
  0x7f   : > { %8663 = vmatmul.mubr.msk.bf16.gmra.mrb[16].mxu0 %vm374_vm1, %v308_v28  ;;  %v870_v28 = vld [vmem:[%s10034_s27 + $0xd2] sm:$0xff] }
  0x80   : > { %8666 = vmatprep.mubr.msk.bf16.mxu0 %vm374_vm1, %v309_v29  ;;  %v871_v29 = vld [vmem:[%s10034_s27 + $0xda] sm:$0xff] }
  0x81   : > { %v893_v32 = vpack.c.bf16 %v871_v29, %v870_v28  ;;  %v1525_v28 = vld [vmem:[%s10034_s27 + $0xfb] sm:$0xff] }
  0x87   : > { %8667 = vmatmul.mubr.msk.bf16.gmra.mrb[20].mxu0 %vm374_vm1, %v310_v34  ;;  %v874_v34 = vld [vmem:[%s10034_s27 + $0xf2] sm:$0xff] }
  0x88   : > { %8670 = vmatprep.mubr.msk.bf16.mxu0 %vm374_vm1, %v311_v35  ;;  %v875_v35 = vld [vmem:[%s10034_s27 + $0xfa] sm:$0xff] }
  0x89   : > { %v895_v38 = vpack.c.bf16 %v875_v35, %v874_v34  ;;  %v1529_v34 = vld [vmem:[%s10034_s27 + $0x11b] sm:$0xff] }
  0x8f   : > { %8671 = vmatmul.mubr.msk.bf16.gmra.mrb[24].mxu0 %vm374_vm1, %v312_v40  ;;  %v878_v40 = vld [vmem:[%s10034_s27 + $0x112] sm:$0xff] }
  0x90   : > { %8674 = vmatprep.mubr.msk.bf16.mxu0 %vm374_vm1, %v313_v41  ;;  %v879_v41 = vld [vmem:[%s10034_s27 + $0x11a] sm:$0xff] }
  0x91   : > { %v897_v42 = vpack.c.bf16 %v879_v41, %v878_v40  ;;  %v1823_v40 = vld [vmem:[%s10034_s27 + $0x1c] sm:$0xff] }
  0x97   : > { %8675 = vmatmul.mubr.msk.bf16.gmra.mrb[28].mxu0 %vm374_vm1, %v314_v46  ;;  %v1205_v46 = vld [vmem:[%s10034_s27 + $0x12a] sm:$0xff] }
  0x98   : > { %8678 = vmatprep.mubr.msk.bf16.mxu0 %vm374_vm1, %v315_v47  ;;  %v1496_v47 = vld [vmem:[%s10034_s27 + $0x13] sm:$0xff]  ;;  %v1223_v49 = vpack.c.bf16 %v1205_v46, %v1204_v45  ;;  %v1827_v46 = vld [vmem:[%s10034_s27 + $0x3c] sm:$0xff] }
  0x99   : > { %v1532_v50 = vpack.c.bf16 %v1497_v48, %v1496_v47  ;;  %v1826_v45 = vld [vmem:[%s10034_s27 + $0x34] sm:$0xff] }
  0x9a   : > { %v10329_v48 = vpack.c.bf16 %v1827_v46, %v1826_v45  ;;  %v237_v45 = vld [vmem:[%s12163_s4 + $0x50] sm:$0xff]  ;;  %v238_v46 = vld [vmem:[%s12163_s4 + $0x58] sm:$0xff] }
  0x9f   : > { %8679 = vmatmul.mubr.msk.bf16.gmra.mrb[32].mxu0 %vm374_vm1, %v316_v52  ;;  %v1499_v52 = vld [vmem:[%s10034_s27 + $0x2b] sm:$0xff] }
  0xa0   : > { %8684 = vmatprep.mubr.msk.bf16.mxu0 %vm374_vm1, %v880_v53  ;;  %v1500_v53 = vld [vmem:[%s10034_s27 + $0x33] sm:$0xff]  ;;  %v1533_v55 = vpack.c.bf16 %v1499_v52, %v1498_v51  ;;  %v1828_v51 = vld [vmem:[%s10034_s27 + $0x44] sm:$0xff] }
  0xa1   : > { %v1534_v56 = vpack.c.bf16 %v1501_v54, %v1500_v53  ;;  %v1829_v52 = vld [vmem:[%s10034_s27 + $0x4c] sm:$0xff]  ;;  %v1830_v53 = vld [vmem:[%s10034_s27 + $0x54] sm:$0xff]  ;;  %v1831_v54 = vld [vmem:[%s10034_s27 + $0x5c] sm:$0xff] }
  0xa7   : > { %8685 = vmatmul.mubr.msk.bf16.vlgmr.msra.gmra.mrb[0].mxu0 %vm374_vm1, %v10168_v58 }
  0xa8   : > { %8721 = vmatpush3.bf16.msra.mxu0 %v1281_v60  ;;  %8688 = vmatprep.mubr.msk.bf16.mxu0 %vm374_vm1, %v10170_v59  ;;  %v1503_v60 = vld [vmem:[%s10034_s27 + $0x4b] sm:$0xff] }
  0xa9   : > { %9870 = vmatprep.subr.msk.bf16.mxu0 %vm429_vm0, %v10177_v61  ;;  %v1504_v61 = vld [vmem:[%s10034_s27 + $0x53] sm:$0xff] }
  0xaa   : > { %v1536_v0 = vpack.c.bf16 %v1505_v62, %v1504_v61 }
  0xaf   : > { %8689 = vmatmul.mubr.msk.bf16.gmra.mrb[4].mxu0 %vm374_vm1, %v883_v2 }
  0xb0   : > { %8692 = vmatprep.mubr.msk.bf16.mxu0 %vm374_vm1, %v884_v3 }
  0xb7   : > { %8693 = vmatmul.mubr.msk.bf16.gmra.mrb[8].mxu0 %vm374_vm1, %v885_v8 }
  0xb8   : > { %8696 = vmatprep.mubr.msk.bf16.mxu0 %vm374_vm1, %v886_v9 }
  0xbf   : > { %8697 = vmatmul.mubr.msk.bf16.gmra.mrb[12].mxu0 %vm374_vm1, %v887_v14 }
  0xc0   : > { %8700 = vmatprep.mubr.msk.bf16.mxu0 %vm374_vm1, %v888_v15 }
  0xc7   : > { %8701 = vmatmul.mubr.msk.bf16.gmra.mrb[16].mxu0 %vm374_vm1, %v889_v20 }
  0xc8   : > { %8704 = vmatprep.mubr.msk.bf16.mxu0 %vm374_vm1, %v890_v21 }
  0xcf   : > { %8705 = vmatmul.mubr.msk.bf16.gmra.mrb[20].mxu0 %vm374_vm1, %v891_v26 }
  0xd0   : > { %8708 = vmatprep.mubr.msk.bf16.mxu0 %vm374_vm1, %v892_v27 }
  0xd7   : > { %8709 = vmatmul.mubr.msk.bf16.gmra.mrb[24].mxu0 %vm374_vm1, %v893_v32 }
  0xd8   : > { %8712 = vmatprep.mubr.msk.bf16.mxu0 %vm374_vm1, %v894_v33 }
  0xdf   : > { %8713 = vmatmul.mubr.msk.bf16.gmra.mrb[28].mxu0 %vm374_vm1, %v895_v38 }
  0xe0   : > { %8716 = vmatprep.mubr.msk.bf16.mxu0 %vm374_vm1, %v896_v39 }
  0xe7   : > { %8717 = vmatmul.mubr.msk.bf16.gmra.mrb[32].mxu0 %vm374_vm1, %v897_v42 }
  0xe8   : > { %8722 = vmatprep.mubr.msk.bf16.mxu0 %vm374_vm1, %v10168_v58  ;;  %v10269_v58 = vld [vmem:[%s12160_s1 + $0xc] sm:$0x3] }
  0xef   : > { %8723 = vmatmul.mubr.msk.bf16.vlgmr.msra.gmra.mrb[0].mxu0 %vm374_vm1, %v10170_v59  ;;  %v1502_v59 = vld [vmem:[%s10034_s27 + $0x43] sm:$0xff] }
  0xf0   : > { %8759 = vmatpush3.bf16.msra.mxu0 %v1607_v43  ;;  %8726 = vmatprep.mubr.msk.bf16.mxu0 %vm374_vm1, %v883_v2  ;;  %v1535_v63 = vpack.c.bf16 %v1503_v60, %v1502_v59  ;;  %v1507_v2 = vld [vmem:[%s10034_s27 + $0x6b] sm:$0xff]  ;;  %v1834_v59 = vld [vmem:[%s10034_s27 + $0x74] sm:$0xff]  ;;  %v1835_v60 = vld [vmem:[%s10034_s27 + $0x7c] sm:$0xff] }
  0xf1   : > { %9871 = vmatprep.subr.msk.bf16.mxu0 %vm429_vm0, %v7882_v44  ;;  %v1537_v5 = vpack.c.bf16 %v1507_v2, %v1506_v1  ;;  %v1824_v43 = vld [vmem:[%s10034_s27 + $0x24] sm:$0xff]  ;;  %v1825_v44 = vld [vmem:[%s10034_s27 + $0x2c] sm:$0xff]  ;;  %v1864_v62 = vpack.c.bf16 %v1835_v60, %v1834_v59  ;;  %v1838_v1 = vld [vmem:[%s10034_s27 + $0x94] sm:$0xff] }
  0xf2   : > { %v10327_v47 = vpack.c.bf16 %v1825_v44, %v1824_v43  ;;  %v1839_v2 = vld [vmem:[%s10034_s27 + $0x9c] sm:$0xff]  ;;  %v236_v44 = vld [vmem:[%s12163_s4 + $0x48] sm:$0xff] }
  0xf3   : > { %v235_v43 = vld [vmem:[%s12163_s4 + $0x40] sm:$0xff]  ;;  %v2479_v60 = vld [vmem:[%s10034_s27 + $0x4d] sm:$0xff] }
  0xf4   : > { %v2478_v59 = vld [vmem:[%s10034_s27 + $0x45] sm:$0xff] }
  0xf7   : > { %8727 = vmatmul.mubr.msk.bf16.gmra.mrb[4].mxu0 %vm374_vm1, %v884_v3  ;;  %v1508_v3 = vld [vmem:[%s10034_s27 + $0x73] sm:$0xff] }
  0xf8   : > { %8730 = vmatprep.mubr.msk.bf16.mxu0 %vm374_vm1, %v885_v8  ;;  %v1538_v6 = vpack.c.bf16 %v1509_v4, %v1508_v3  ;;  %v1511_v8 = vld [vmem:[%s10034_s27 + $0x8b] sm:$0xff]  ;;  %v1866_v4 = vpack.c.bf16 %v1839_v2, %v1838_v1 }
  0xf9   : > { %v1539_v11 = vpack.c.bf16 %v1511_v8, %v1510_v7  ;;  %v1842_v7 = vld [vmem:[%s10034_s27 + $0xb4] sm:$0xff]  ;;  %v1843_v8 = vld [vmem:[%s10034_s27 + $0xbc] sm:$0xff] }
  0xfa   : > { %v245_v2 = vld [vmem:[%s12163_s4 + $0x90] sm:$0xff] }
  0xff   : > { %8731 = vmatmul.mubr.msk.bf16.gmra.mrb[8].mxu0 %vm374_vm1, %v886_v9  ;;  %v1512_v9 = vld [vmem:[%s10034_s27 + $0x93] sm:$0xff] }
 0x100   : > { %8734 = vmatprep.mubr.msk.bf16.mxu0 %vm374_vm1, %v887_v14  ;;  %v1540_v12 = vpack.c.bf16 %v1513_v10, %v1512_v9  ;;  %v1515_v14 = vld [vmem:[%s10034_s27 + $0xab] sm:$0xff]  ;;  %v1868_v10 = vpack.c.bf16 %v1843_v8, %v1842_v7  ;;  %v247_v8 = vld [vmem:[%s12163_s4 + $0xa0] sm:$0xff] }
 0x101   : > { %v1541_v17 = vpack.c.bf16 %v1515_v14, %v1514_v13  ;;  %v1846_v13 = vld [vmem:[%s10034_s27 + $0xd4] sm:$0xff]  ;;  %v1847_v14 = vld [vmem:[%s10034_s27 + $0xdc] sm:$0xff] }
 0x102   : > { %v2483_v7 = vld [vmem:[%s10034_s27 + $0x6d] sm:$0xff] }
 0x107   : > { %8735 = vmatmul.mubr.msk.bf16.gmra.mrb[12].mxu0 %vm374_vm1, %v888_v15  ;;  %v1516_v15 = vld [vmem:[%s10034_s27 + $0xb3] sm:$0xff] }
 0x108   : > { %8738 = vmatprep.mubr.msk.bf16.mxu0 %vm374_vm1, %v889_v20  ;;  %v1542_v18 = vpack.c.bf16 %v1517_v16, %v1516_v15  ;;  %v1519_v20 = vld [vmem:[%s10034_s27 + $0xcb] sm:$0xff]  ;;  %v1870_v16 = vpack.c.bf16 %v1847_v14, %v1846_v13  ;;  %v250_v13 = vld [vmem:[%s12163_s4 + $0xb8] sm:$0xff] }
 0x109   : > { %v1543_v23 = vpack.c.bf16 %v1519_v20, %v1518_v19  ;;  %v1850_v19 = vld [vmem:[%s10034_s27 + $0xf4] sm:$0xff]  ;;  %v1851_v20 = vld [vmem:[%s10034_s27 + $0xfc] sm:$0xff] }
 0x10a   : > { %v2484_v14 = vld [vmem:[%s10034_s27 + $0x75] sm:$0xff] }
 0x10f   : > { %8739 = vmatmul.mubr.msk.bf16.gmra.mrb[16].mxu0 %vm374_vm1, %v890_v21  ;;  %v1520_v21 = vld [vmem:[%s10034_s27 + $0xd3] sm:$0xff] }
 0x110   : > { %8742 = vmatprep.mubr.msk.bf16.mxu0 %vm374_vm1, %v891_v26  ;;  %v1544_v24 = vpack.c.bf16 %v1521_v22, %v1520_v21  ;;  %v1523_v26 = vld [vmem:[%s10034_s27 + $0xeb] sm:$0xff]  ;;  %v1872_v22 = vpack.c.bf16 %v1851_v20, %v1850_v19 }
 0x111   : > { %v1545_v29 = vpack.c.bf16 %v1523_v26, %v1522_v25  ;;  %v1854_v25 = vld [vmem:[%s10034_s27 + $0x114] sm:$0xff]  ;;  %v1855_v26 = vld [vmem:[%s10034_s27 + $0x11c] sm:$0xff]  ;;  %v252_v19 = vld [vmem:[%s12163_s4 + $0xc8] sm:$0xff] }
 0x117   : > { %8743 = vmatmul.mubr.msk.bf16.gmra.mrb[20].mxu0 %vm374_vm1, %v892_v27  ;;  %v1524_v27 = vld [vmem:[%s10034_s27 + $0xf3] sm:$0xff] }
 0x118   : > { %8746 = vmatprep.mubr.msk.bf16.mxu0 %vm374_vm1, %v893_v32  ;;  %v1546_v30 = vpack.c.bf16 %v1525_v28, %v1524_v27  ;;  %v1527_v32 = vld [vmem:[%s10034_s27 + $0x10b] sm:$0xff]  ;;  %v1874_v28 = vpack.c.bf16 %v1855_v26, %v1854_v25  ;;  %v2489_v25 = vld [vmem:[%s10034_s27 + $0x9d] sm:$0xff] }
 0x119   : > { %v1547_v35 = vpack.c.bf16 %v1527_v32, %v1526_v31  ;;  %v2490_v26 = vld [vmem:[%s10034_s27 + $0xa5] sm:$0xff] }
 0x11f   : > { %8747 = vmatmul.mubr.msk.bf16.gmra.mrb[24].mxu0 %vm374_vm1, %v894_v33  ;;  %v1528_v33 = vld [vmem:[%s10034_s27 + $0x113] sm:$0xff] }
 0x120   : > { %8750 = vmatprep.mubr.msk.bf16.mxu0 %vm374_vm1, %v895_v38  ;;  %v1548_v36 = vpack.c.bf16 %v1529_v34, %v1528_v33  ;;  %v1531_v38 = vld [vmem:[%s10034_s27 + $0x12b] sm:$0xff]  ;;  %v227_v34 = vld [vmem:[%s12163_s4] sm:$0xff] }
 0x121   : > { %v1549_v41 = vpack.c.bf16 %v1531_v38, %v1530_v37  ;;  %v10396_v33 = vld [vmem:[%s12160_s1 + $0x10] sm:$0x3]  ;;  %v228_v37 = vld [vmem:[%s12163_s4 + $0x8] sm:$0xff]  ;;  %v230_v38 = vld [vmem:[%s12163_s4 + $0x18] sm:$0xff] }
 0x122   : > { %v2911_v1 = vsel %vm429_vm0, %v10396_v33, 0 }
 0x127   : > { %8751 = vmatmul.mubr.msk.bf16.gmra.mrb[28].mxu0 %vm374_vm1, %v896_v39  ;;  %v1822_v39 = vld [vmem:[%s10034_s27 + $0x14] sm:$0xff] }
 0x128   : > { %8754 = vmatprep.mubr.msk.bf16.mxu0 %vm374_vm1, %v897_v42  ;;  %v1858_v42 = vpack.c.bf16 %v1823_v40, %v1822_v39  ;;  %v231_v39 = vld [vmem:[%s12163_s4 + $0x20] sm:$0xff]  ;;  %v232_v40 = vld [vmem:[%s12163_s4 + $0x28] sm:$0xff] }
 0x12f   : > { %8755 = vmatmul.mubr.msk.bf16.gmra.mrb[32].mxu0 %vm374_vm1, %v1223_v49  ;;  %v2259_v49 = vsel %vm429_vm0, %v10269_v58, 0 }
 0x130   : > { %8760 = vmatprep.mubr.msk.bf16.mxu0 %vm374_vm1, %v1532_v50  ;;  %v10336_v50 = vld [vmem:[%s12160_s1 + $0xe] sm:$0x3] }
 0x131   : > { %v2585_v32 = vsel %vm429_vm0, %v10336_v50, 0 }
 0x137   : > { %8761 = vmatmul.mubr.msk.bf16.vlgmr.msra.gmra.mrb[0].mxu0 %vm374_vm1, %v1533_v55  ;;  %v1861_v55 = vpack.c.bf16 %v1829_v52, %v1828_v51  ;;  %v239_v51 = vld [vmem:[%s12163_s4 + $0x60] sm:$0xff]  ;;  %v240_v52 = vld [vmem:[%s12163_s4 + $0x68] sm:$0xff] }
 0x138   : > { %8797 = vmatpush3.bf16.msra.mxu0 %v1933_v57  ;;  %8764 = vmatprep.mubr.msk.bf16.mxu0 %vm374_vm1, %v1534_v56  ;;  %v1862_v56 = vpack.c.bf16 %v1831_v54, %v1830_v53  ;;  %v1832_v57 = vld [vmem:[%s10034_s27 + $0x64] sm:$0xff] }
 0x139   : > { %9872 = vmatprep.subr.msk.bf16.mxu0 %vm429_vm0, %v10269_v58  ;;  %v1833_v58 = vld [vmem:[%s10034_s27 + $0x6c] sm:$0xff] }
 0x13a   : > { %v1863_v61 = vpack.c.bf16 %v1833_v58, %v1832_v57  ;;  %v2476_v57 = vld [vmem:[%s10034_s27 + $0x35] sm:$0xff]  ;;  %v2477_v58 = vld [vmem:[%s10034_s27 + $0x3d] sm:$0xff] }
 0x13f   : > { %8765 = vmatmul.mubr.msk.bf16.gmra.mrb[4].mxu0 %vm374_vm1, %v1535_v63  ;;  %v1836_v63 = vld [vmem:[%s10034_s27 + $0x84] sm:$0xff] }
 0x140   : > { %8768 = vmatprep.mubr.msk.bf16.mxu0 %vm374_vm1, %v1536_v0  ;;  %v1837_v0 = vld [vmem:[%s10034_s27 + $0x8c] sm:$0xff] }
 0x141   : > { %v1865_v3 = vpack.c.bf16 %v1837_v0, %v1836_v63  ;;  %v2511_v63 = vpack.c.bf16 %v2477_v58, %v2476_v57  ;;  %v2512_v0 = vpack.c.bf16 %v2479_v60, %v2478_v59  ;;  %v2504_v57 = vld [vmem:[%s10034_s27 + $0x115] sm:$0xff]  ;;  %v2505_v58 = vld [vmem:[%s10034_s27 + $0x11d] sm:$0xff]  ;;  %v2506_v59 = vld [vmem:[%s10034_s27 + $0x125] sm:$0xff] }
 0x142   : > { %v2507_v60 = vld [vmem:[%s10034_s27 + $0x12d] sm:$0xff] }
 0x147   : > { %8769 = vmatmul.mubr.msk.bf16.gmra.mrb[8].mxu0 %vm374_vm1, %v1537_v5  ;;  %v1840_v5 = vld [vmem:[%s10034_s27 + $0xa4] sm:$0xff] }
 0x148   : > { %8772 = vmatprep.mubr.msk.bf16.mxu0 %vm374_vm1, %v1538_v6  ;;  %v1841_v6 = vld [vmem:[%s10034_s27 + $0xac] sm:$0xff] }
 0x149   : > { %v1867_v9 = vpack.c.bf16 %v1841_v6, %v1840_v5  ;;  %v2481_v5 = vld [vmem:[%s10034_s27 + $0x5d] sm:$0xff]  ;;  %v2482_v6 = vld [vmem:[%s10034_s27 + $0x65] sm:$0xff] }
 0x14f   : > { %8773 = vmatmul.mubr.msk.bf16.gmra.mrb[12].mxu0 %vm374_vm1, %v1539_v11  ;;  %v1844_v11 = vld [vmem:[%s10034_s27 + $0xc4] sm:$0xff] }
 0x150   : > { %8776 = vmatprep.mubr.msk.bf16.mxu0 %vm374_vm1, %v1540_v12  ;;  %v1845_v12 = vld [vmem:[%s10034_s27 + $0xcc] sm:$0xff] }
 0x151   : > { %v1869_v15 = vpack.c.bf16 %v1845_v12, %v1844_v11  ;;  %v2514_v11 = vpack.c.bf16 %v2483_v7, %v2482_v6  ;;  %v249_v12 = vld [vmem:[%s12163_s4 + $0xb0] sm:$0xff]  ;;  %v2803_v6 = vld [vmem:[%s10034_s27 + $0x3e] sm:$0xff]  ;;  %v2804_v7 = vld [vmem:[%s10034_s27 + $0x46] sm:$0xff] }
 0x157   : > { %8777 = vmatmul.mubr.msk.bf16.gmra.mrb[16].mxu0 %vm374_vm1, %v1541_v17  ;;  %v1848_v17 = vld [vmem:[%s10034_s27 + $0xe4] sm:$0xff] }
 0x158   : > { %8780 = vmatprep.mubr.msk.bf16.mxu0 %vm374_vm1, %v1542_v18  ;;  %v1849_v18 = vld [vmem:[%s10034_s27 + $0xec] sm:$0xff] }
 0x159   : > { %v1871_v21 = vpack.c.bf16 %v1849_v18, %v1848_v17  ;;  %v2487_v17 = vld [vmem:[%s10034_s27 + $0x8d] sm:$0xff]  ;;  %v251_v18 = vld [vmem:[%s12163_s4 + $0xc0] sm:$0xff] }
 0x15f   : > { %8781 = vmatmul.mubr.msk.bf16.gmra.mrb[20].mxu0 %vm374_vm1, %v1543_v23  ;;  %v1852_v23 = vld [vmem:[%s10034_s27 + $0x104] sm:$0xff] }
 0x160   : > { %8784 = vmatprep.mubr.msk.bf16.mxu0 %vm374_vm1, %v1544_v24  ;;  %v1853_v24 = vld [vmem:[%s10034_s27 + $0x10c] sm:$0xff] }
 0x161   : > { %v1873_v27 = vpack.c.bf16 %v1853_v24, %v1852_v23  ;;  %v254_v23 = vld [vmem:[%s12163_s4 + $0xd8] sm:$0xff] }
 0x162   : > { %v2488_v24 = vld [vmem:[%s10034_s27 + $0x95] sm:$0xff] }
 0x167   : > { %8785 = vmatmul.mubr.msk.bf16.gmra.mrb[24].mxu0 %vm374_vm1, %v1545_v29  ;;  %v1856_v29 = vld [vmem:[%s10034_s27 + $0x124] sm:$0xff] }
 0x168   : > { %8788 = vmatprep.mubr.msk.bf16.mxu0 %vm374_vm1, %v1546_v30  ;;  %v1857_v30 = vld [vmem:[%s10034_s27 + $0x12c] sm:$0xff] }
 0x169   : > { %v1875_v31 = vpack.c.bf16 %v1857_v30, %v1856_v29  ;;  %v256_v29 = vld [vmem:[%s12163_s4 + $0xe8] sm:$0xff]  ;;  %v2517_v30 = vpack.c.bf16 %v2489_v25, %v2488_v24  ;;  %v2815_v24 = vld [vmem:[%s10034_s27 + $0x9e] sm:$0xff] }
 0x16a   : > { %v2816_v25 = vld [vmem:[%s10034_s27 + $0xa6] sm:$0xff] }
 0x16f   : > { %8789 = vmatmul.mubr.msk.bf16.gmra.mrb[28].mxu0 %vm374_vm1, %v1547_v35  ;;  %v229_v35 = vld [vmem:[%s12163_s4 + $0x10] sm:$0xff] }
 0x170   : > { %8792 = vmatprep.mubr.msk.bf16.mxu0 %vm374_vm1, %v1548_v36  ;;  %v9980_v36 = vmov 0  }
 0x171   : > { %9895 = vset.pattern.permute.xlu0 %v9980_v36  ;;  %9896 = vset.pattern.permute.xlu1 %v9980_v36  ;;  %3461 = vst.msk [vmem:[#allocation2 + $0x8] sm:$0xf] %vm3458_vm2, %v9980_v36  ;;  %3459 = vst.msk [vmem:[#allocation2] sm:$0xf] %vm3458_vm2, %v9980_v36 }
 0x172   : > { %3244 = vperm.xlu0 %9895, %v227_v34   ;;  %3254 = vperm.xlu1 %9896, %v229_v35   ;;  %v2492_v34 = vld [vmem:[%s10034_s27 + $0xb5] sm:$0xff]  ;;  %v2493_v35 = vld [vmem:[%s10034_s27 + $0xbd] sm:$0xff]  ;;  %3460 = vst.msk [vmem:[#allocation2 + $0x4] sm:$0xf] %vm3458_vm2, %v9980_v36  ;;  %3462 = vst.msk [vmem:[#allocation2 + $0xc] sm:$0xf] %vm3458_vm2, %v9980_v36 }
 0x173   : > { %3463 = vst.msk [vmem:[#allocation2 + $0x10] sm:$0xf] %vm3458_vm2, %v9980_v36  ;;  %3464 = vst.msk [vmem:[#allocation2 + $0x14] sm:$0xf] %vm3458_vm2, %v9980_v36 }
 0x174   : > { %3465 = vst.msk [vmem:[#allocation2 + $0x18] sm:$0xf] %vm3458_vm2, %v9980_v36  ;;  %3466 = vst.msk [vmem:[#allocation2 + $0x1c] sm:$0xf] %vm3458_vm2, %v9980_v36 }
 0x175   : > { %3467 = vst.msk [vmem:[#allocation2 + $0x20] sm:$0xf] %vm3458_vm2, %v9980_v36  ;;  %3468 = vst.msk [vmem:[#allocation2 + $0x24] sm:$0xf] %vm3458_vm2, %v9980_v36 }
 0x176   : > { %3249 = vperm.xlu0 %9895, %v228_v37   ;;  %3259 = vperm.xlu1 %9896, %v230_v38   ;;  %v2494_v37 = vld [vmem:[%s10034_s27 + $0xc5] sm:$0xff]  ;;  %v2495_v38 = vld [vmem:[%s10034_s27 + $0xcd] sm:$0xff]  ;;  %3469 = vst.msk [vmem:[#allocation2 + $0x28] sm:$0xf] %vm3458_vm2, %v9980_v36  ;;  %3470 = vst.msk [vmem:[#allocation2 + $0x2c] sm:$0xf] %vm3458_vm2, %v9980_v36 }
 0x177   : > { %8793 = vmatmul.mubr.msk.bf16.gmra.mrb[32].mxu0 %vm374_vm1, %v1549_v41  ;;  %v233_v41 = vld [vmem:[%s12163_s4 + $0x30] sm:$0xff]  ;;  %3471 = vst.msk [vmem:[#allocation2 + $0x30] sm:$0xf] %vm3458_vm2, %v9980_v36  ;;  %3472 = vst.msk [vmem:[#allocation2 + $0x34] sm:$0xf] %vm3458_vm2, %v9980_v36 }
 0x178   : > { %8798 = vmatprep.mubr.msk.bf16.mxu0 %vm374_vm1, %v1858_v42  ;;  %v234_v42 = vld [vmem:[%s12163_s4 + $0x38] sm:$0xff]  ;;  %3473 = vst.msk [vmem:[#allocation2 + $0x38] sm:$0xf] %vm3458_vm2, %v9980_v36  ;;  %3474 = vst.msk [vmem:[#allocation2 + $0x3c] sm:$0xf] %vm3458_vm2, %v9980_v36 }
 0x179   : > { %3475 = vst.msk [vmem:[#allocation2 + $0x40] sm:$0xf] %vm3458_vm2, %v9980_v36  ;;  %3476 = vst.msk [vmem:[#allocation2 + $0x44] sm:$0xf] %vm3458_vm2, %v9980_v36 }
 0x17a   : > { %3264 = vperm.xlu0 %9895, %v231_v39   ;;  %3269 = vperm.xlu1 %9896, %v232_v40   ;;  %v259_v39 = vld [vmem:[%s12163_s4 + $0x100] sm:$0xff]  ;;  %v260_v40 = vld [vmem:[%s12163_s4 + $0x108] sm:$0xff]  ;;  %3477 = vst.msk [vmem:[#allocation2 + $0x48] sm:$0xf] %vm3458_vm2, %v9980_v36  ;;  %3478 = vst.msk [vmem:[#allocation2 + $0x4c] sm:$0xf] %vm3458_vm2, %v9980_v36 }
 0x17b   : > { %3479 = vst.msk [vmem:[#allocation2 + $0x50] sm:$0xf] %vm3458_vm2, %v9980_v36  ;;  %3480 = vst.msk [vmem:[#allocation2 + $0x54] sm:$0xf] %vm3458_vm2, %v9980_v36 }
 0x17c   : > { %3481 = vst.msk [vmem:[#allocation2 + $0x58] sm:$0xf] %vm3458_vm2, %v9980_v36  ;;  %3482 = vst.msk [vmem:[#allocation2 + $0x5c] sm:$0xf] %vm3458_vm2, %v9980_v36 }
 0x17d   : > { %3483 = vst.msk [vmem:[#allocation2 + $0x60] sm:$0xf] %vm3458_vm2, %v9980_v36  ;;  %3484 = vst.msk [vmem:[#allocation2 + $0x64] sm:$0xf] %vm3458_vm2, %v9980_v36 }
 0x17e   : > { %3274 = vperm.xlu0 %9895, %v233_v41   ;;  %3279 = vperm.xlu1 %9896, %v234_v42   ;;  %v2519_v41 = vpack.c.bf16 %v2493_v35, %v2492_v34  ;;  %v2520_v42 = vpack.c.bf16 %v2495_v38, %v2494_v37  ;;  %v2822_v35 = vld [vmem:[%s10034_s27 + $0xd6] sm:$0xff]  ;;  %v2823_v37 = vld [vmem:[%s10034_s27 + $0xde] sm:$0xff]  ;;  %v2824_v38 = vld [vmem:[%s10034_s27 + $0xe6] sm:$0xff]  ;;  %3485 = vst.msk [vmem:[#allocation2 + $0x68] sm:$0xf] %vm3458_vm2, %v9980_v36 }
 0x17f   : > { %8799 = vmatmul.mubr.msk.bf16.vlgmr.msra.gmra.mrb[0].mxu0 %vm374_vm1, %v10327_v47  ;;  %3486 = vst.msk [vmem:[#allocation2 + $0x6c] sm:$0xf] %vm3458_vm2, %v9980_v36  ;;  %3487 = vst.msk [vmem:[#allocation2 + $0x70] sm:$0xf] %vm3458_vm2, %v9980_v36 }
 0x180   : > { %8835 = vmatpush3.bf16.msra.mxu0 %v2259_v49  ;;  %8802 = vmatprep.mubr.msk.bf16.mxu0 %vm374_vm1, %v10329_v48  ;;  %v2474_v49 = vld [vmem:[%s10034_s27 + $0x25] sm:$0xff]  ;;  %3488 = vst.msk [vmem:[#allocation2 + $0x74] sm:$0xf] %vm3458_vm2, %v9980_v36  ;;  %3489 = vst.msk [vmem:[#allocation2 + $0x78] sm:$0xf] %vm3458_vm2, %v9980_v36 }
 0x181   : > { %9873 = vmatprep.subr.msk.bf16.mxu0 %vm429_vm0, %v10336_v50  ;;  %v2475_v50 = vld [vmem:[%s10034_s27 + $0x2d] sm:$0xff]  ;;  %3490 = vst.msk [vmem:[#allocation2 + $0x7c] sm:$0xf] %vm3458_vm2, %v9980_v36  ;;  %3491 = vst.msk [vmem:[#allocation2 + $0x80] sm:$0xf] %vm3458_vm2, %v9980_v36 }
 0x182   : > { %3284 = vperm.xlu0 %9895, %v235_v43   ;;  %3289 = vperm.xlu1 %9896, %v236_v44   ;;  %v2510_v54 = vpack.c.bf16 %v2475_v50, %v2474_v49  ;;  %v261_v43 = vld [vmem:[%s12163_s4 + $0x110] sm:$0xff]  ;;  %v262_v44 = vld [vmem:[%s12163_s4 + $0x118] sm:$0xff]  ;;  %3492 = vst.msk [vmem:[#allocation2 + $0x84] sm:$0xf] %vm3458_vm2, %v9980_v36  ;;  %3493 = vst.msk [vmem:[#allocation2 + $0x88] sm:$0xf] %vm3458_vm2, %v9980_v36 }
 0x183   : > { %3494 = vst.msk [vmem:[#allocation2 + $0x8c] sm:$0xf] %vm3458_vm2, %v9980_v36  ;;  %3495 = vst.msk [vmem:[#allocation2 + $0x90] sm:$0xf] %vm3458_vm2, %v9980_v36 }
 0x184   : > { %3496 = vst.msk [vmem:[#allocation2 + $0x94] sm:$0xf] %vm3458_vm2, %v9980_v36  ;;  %3497 = vst.msk [vmem:[#allocation2 + $0x98] sm:$0xf] %vm3458_vm2, %v9980_v36 }
 0x185   : > { %3498 = vst.msk [vmem:[#allocation2 + $0x9c] sm:$0xf] %vm3458_vm2, %v9980_v36  ;;  %3499 = vst.msk [vmem:[#allocation2 + $0xa0] sm:$0xf] %vm3458_vm2, %v9980_v36 }
 0x186   : > { %3294 = vperm.xlu0 %9895, %v237_v45   ;;  %3299 = vperm.xlu1 %9896, %v238_v46   ;;  %v2496_v45 = vld [vmem:[%s10034_s27 + $0xd5] sm:$0xff]  ;;  %v2497_v46 = vld [vmem:[%s10034_s27 + $0xdd] sm:$0xff] }
 0x187   : > { %8803 = vmatmul.mubr.msk.bf16.gmra.mrb[4].mxu0 %vm374_vm1, %v1861_v55  ;;  %v2521_v49 = vpack.c.bf16 %v2497_v46, %v2496_v45  ;;  %v2829_v45 = vld [vmem:[%s10034_s27 + $0x10e] sm:$0xff] }
 0x188   : > { %8806 = vmatprep.mubr.msk.bf16.mxu0 %vm374_vm1, %v1862_v56 }
 0x18a   : > { %3304 = vperm.xlu0 %9895, %v239_v51   ;;  %3309 = vperm.xlu1 %9896, %v240_v52   ;;  %v2500_v51 = vld [vmem:[%s10034_s27 + $0xf5] sm:$0xff]  ;;  %v2501_v52 = vld [vmem:[%s10034_s27 + $0xfd] sm:$0xff] }
 0x18f   : > { %8807 = vmatmul.mubr.msk.bf16.gmra.mrb[8].mxu0 %vm374_vm1, %v1863_v61 }
 0x190   : > { %8810 = vmatprep.mubr.msk.bf16.mxu0 %vm374_vm1, %v1864_v62 }
 0x197   : > { %8811 = vmatmul.mubr.msk.bf16.gmra.mrb[12].mxu0 %vm374_vm1, %v1865_v3 }
 0x198   : > { %8814 = vmatprep.mubr.msk.bf16.mxu0 %vm374_vm1, %v1866_v4 }
 0x19f   : > { %8815 = vmatmul.mubr.msk.bf16.gmra.mrb[16].mxu0 %vm374_vm1, %v1867_v9 }
 0x1a0   : > { %8818 = vmatprep.mubr.msk.bf16.mxu0 %vm374_vm1, %v1868_v10 }
 0x1a7   : > { %8819 = vmatmul.mubr.msk.bf16.gmra.mrb[20].mxu0 %vm374_vm1, %v1869_v15 }
 0x1a8   : > { %8822 = vmatprep.mubr.msk.bf16.mxu0 %vm374_vm1, %v1870_v16 }
 0x1af   : > { %8823 = vmatmul.mubr.msk.bf16.gmra.mrb[24].mxu0 %vm374_vm1, %v1871_v21 }
 0x1b0   : > { %8826 = vmatprep.mubr.msk.bf16.mxu0 %vm374_vm1, %v1872_v22 }
 0x1b7   : > { %8827 = vmatmul.mubr.msk.bf16.gmra.mrb[28].mxu0 %vm374_vm1, %v1873_v27 }
 0x1b8   : > { %8830 = vmatprep.mubr.msk.bf16.mxu0 %vm374_vm1, %v1874_v28 }
 0x1bf   : > { %8831 = vmatmul.mubr.msk.bf16.gmra.mrb[32].mxu0 %vm374_vm1, %v1875_v31 }
 0x1c0   : > { %8836 = vmatprep.mubr.msk.bf16.mxu0 %vm374_vm1, %v10327_v47  ;;  %v2182_v47 = vld [vmem:[%s10034_s27 + $0x134] sm:$0xff] }
 0x1c7   : > { %8837 = vmatmul.mubr.msk.bf16.vlgmr.msra.gmra.mrb[0].mxu0 %vm374_vm1, %v10329_v48  ;;  %v2183_v48 = vld [vmem:[%s10034_s27 + $0x13c] sm:$0xff] }
 0x1c8   : > { %8873 = vmatpush3.bf16.msra.mxu0 %v2585_v32  ;;  %8840 = vmatprep.mubr.msk.bf16.mxu0 %vm374_vm1, %v1861_v55  ;;  %v2201_v53 = vpack.c.bf16 %v2183_v48, %v2182_v47  ;;  %v241_v55 = vld [vmem:[%s12163_s4 + $0x70] sm:$0xff]  ;;  %v2498_v47 = vld [vmem:[%s10034_s27 + $0xe5] sm:$0xff] }
 0x1c9   : > { %9874 = vmatprep.subr.msk.bf16.mxu0 %vm429_vm0, %v10396_v33  ;;  %3314 = vperm.xlu0 %9895, %v241_v55   ;;  %v257_v32 = vld [vmem:[%s12163_s4 + $0xf0] sm:$0xff]  ;;  %v258_v33 = vld [vmem:[%s12163_s4 + $0xf8] sm:$0xff]  ;;  %v2523_v55 = vpack.c.bf16 %v2501_v52, %v2500_v51 }
 0x1ca   : > { %v2499_v48 = vld [vmem:[%s10034_s27 + $0xed] sm:$0xff] }
 0x1cb   : > { %v2522_v50 = vpack.c.bf16 %v2499_v48, %v2498_v47  ;;  %v2830_v48 = vld [vmem:[%s10034_s27 + $0x116] sm:$0xff]  ;;  %v2833_v51 = vld [vmem:[%s10034_s27 + $0x12e] sm:$0xff] }
 0x1cf   : > { %8841 = vmatmul.mubr.msk.bf16.gmra.mrb[4].mxu0 %vm374_vm1, %v1862_v56  ;;  %v242_v56 = vld [vmem:[%s12163_s4 + $0x78] sm:$0xff] }
 0x1d0   : > { %8844 = vmatprep.mubr.msk.bf16.mxu0 %vm374_vm1, %v1863_v61  ;;  %3319 = vperm.xlu1 %9896, %v242_v56   ;;  %v243_v61 = vld [vmem:[%s12163_s4 + $0x80] sm:$0xff] }
 0x1d1   : > { %3324 = vperm.xlu0 %9895, %v243_v61   ;;  %v2525_v61 = vpack.c.bf16 %v2505_v58, %v2504_v57  ;;  %v7994_v57 = vld [vmem:[%s12161_s2 + $0x2] sm:$0x3] }
 0x1d2   : > { %9875 = vmatprep.subr.msk.bf16.mxu1 %vm429_vm0, %v7994_v57  ;;  %v4393_v58 = vsel %vm429_vm0, %v7994_v57, 0 }
 0x1d3   : > { %8949 = vmatpush3.bf16.msra.mxu1 %v4393_v58 }
 0x1d5   : > { %3334 = vperm.xlu0 %9895, %v245_v2   ;;  %v2801_v2 = vld [vmem:[%s10034_s27 + $0x2e] sm:$0xff] }
 0x1d7   : > { %8845 = vmatmul.mubr.msk.bf16.gmra.mrb[8].mxu0 %vm374_vm1, %v1864_v62  ;;  %v244_v62 = vld [vmem:[%s12163_s4 + $0x88] sm:$0xff] }
 0x1d8   : > { %8848 = vmatprep.mubr.msk.bf16.mxu0 %vm374_vm1, %v1865_v3  ;;  %3329 = vperm.xlu1 %9896, %v244_v62   ;;  %v246_v3 = vld [vmem:[%s12163_s4 + $0x98] sm:$0xff]  ;;  %v2526_v62 = vpack.c.bf16 %v2507_v60, %v2506_v59  ;;  %v4092_v59 = vld [vmem:[%s12161_s2] sm:$0x3]  ;;  %v3126_v60 = vlaneseq }
 0x1d9   : > { %3344 = vperm.xlu0 %9895, %v247_v8   ;;  %v2805_v8 = vld [vmem:[%s10034_s27 + $0x4e] sm:$0xff]  ;;  %9876 = vmatprep.subr.msk.bf16.mxu1 %vm429_vm0, %v4092_v59 }
 0x1dc   : > { %3339 = vperm.xlu1 %9896, %v246_v3  }
 0x1dd   : > { %3354 = vperm.xlu0 %9895, %v249_v12   ;;  %v2807_v12 = vld [vmem:[%s10034_s27 + $0x5e] sm:$0xff] }
 0x1df   : > { %8849 = vmatmul.mubr.msk.bf16.gmra.mrb[12].mxu0 %vm374_vm1, %v1866_v4  ;;  %v2480_v4 = vld [vmem:[%s10034_s27 + $0x55] sm:$0xff] }
 0x1e0   : > { %8852 = vmatprep.mubr.msk.bf16.mxu0 %vm374_vm1, %v1867_v9  ;;  %v248_v9 = vld [vmem:[%s12163_s4 + $0xa8] sm:$0xff] }
 0x1e1   : > { %3349 = vperm.xlu1 %9896, %v248_v9   ;;  %3364 = vperm.xlu0 %9895, %v251_v18   ;;  %v2811_v18 = vld [vmem:[%s10034_s27 + $0x7e] sm:$0xff] }
 0x1e5   : > { %3359 = vperm.xlu1 %9896, %v250_v13   ;;  %v2808_v13 = vld [vmem:[%s10034_s27 + $0x66] sm:$0xff] }
 0x1e7   : > { %8853 = vmatmul.mubr.msk.bf16.gmra.mrb[16].mxu0 %vm374_vm1, %v1868_v10  ;;  %v2513_v10 = vpack.c.bf16 %v2481_v5, %v2480_v4  ;;  %v2802_v5 = vld [vmem:[%s10034_s27 + $0x36] sm:$0xff] }
 0x1e8   : > { %8856 = vmatprep.mubr.msk.bf16.mxu0 %vm374_vm1, %v1869_v15  ;;  %v2485_v15 = vld [vmem:[%s10034_s27 + $0x7d] sm:$0xff]  ;;  %v2837_v9 = vpack.c.bf16 %v2803_v6, %v2802_v5 }
 0x1e9   : > { %v2515_v20 = vpack.c.bf16 %v2485_v15, %v2484_v14  ;;  %3369 = vperm.xlu1 %9896, %v252_v19   ;;  %v2809_v14 = vld [vmem:[%s10034_s27 + $0x6e] sm:$0xff]  ;;  %v2812_v19 = vld [vmem:[%s10034_s27 + $0x86] sm:$0xff] }
 0x1ed   : > { %3379 = vperm.xlu1 %9896, %v254_v23   ;;  %v2814_v23 = vld [vmem:[%s10034_s27 + $0x96] sm:$0xff] }
 0x1ef   : > { %8857 = vmatmul.mubr.msk.bf16.gmra.mrb[20].mxu0 %vm374_vm1, %v1870_v16  ;;  %v2486_v16 = vld [vmem:[%s10034_s27 + $0x85] sm:$0xff] }
 0x1f0   : > { %8860 = vmatprep.mubr.msk.bf16.mxu0 %vm374_vm1, %v1871_v21  ;;  %v2516_v21 = vpack.c.bf16 %v2487_v17, %v2486_v16  ;;  %v2840_v16 = vpack.c.bf16 %v2809_v14, %v2808_v13  ;;  %v2810_v17 = vld [vmem:[%s10034_s27 + $0x76] sm:$0xff] }
 0x1f1   : > { %3389 = vperm.xlu1 %9896, %v256_v29   ;;  %v2818_v29 = vld [vmem:[%s10034_s27 + $0xb6] sm:$0xff] }
 0x1f5   : > { %3399 = vperm.xlu1 %9896, %v258_v33  }
 0x1f7   : > { %8861 = vmatmul.mubr.msk.bf16.gmra.mrb[24].mxu0 %vm374_vm1, %v1872_v22  ;;  %v253_v22 = vld [vmem:[%s12163_s4 + $0xd0] sm:$0xff] }
 0x1f8   : > { %8864 = vmatprep.mubr.msk.bf16.mxu0 %vm374_vm1, %v1873_v27  ;;  %v2491_v27 = vld [vmem:[%s10034_s27 + $0xad] sm:$0xff]  ;;  %3374 = vperm.xlu0 %9895, %v253_v22  }
 0x1f9   : > { %3409 = vperm.xlu1 %9896, %v260_v40   ;;  %v2847_v40 = vpack.c.bf16 %v2823_v37, %v2822_v35 }
 0x1fd   : > { %3419 = vperm.xlu1 %9896, %v262_v44   ;;  %v2828_v44 = vld [vmem:[%s10034_s27 + $0x106] sm:$0xff] }
 0x1fe   : > { %v2850_v47 = vpack.c.bf16 %v2829_v45, %v2828_v44 }
 0x1ff   : > { %8865 = vmatmul.mubr.msk.bf16.gmra.mrb[28].mxu0 %vm374_vm1, %v1874_v28  ;;  %v255_v28 = vld [vmem:[%s12163_s4 + $0xe0] sm:$0xff] }
 0x200   : > { %8868 = vmatprep.mubr.msk.bf16.mxu0 %vm374_vm1, %v1875_v31  ;;  %v2518_v31 = vpack.c.bf16 %v2491_v27, %v2490_v26  ;;  %3384 = vperm.xlu0 %9895, %v255_v28   ;;  %v2817_v26 = vld [vmem:[%s10034_s27 + $0xae] sm:$0xff]  ;;  %v2843_v27 = vpack.c.bf16 %v2815_v24, %v2814_v23 }
 0x201   : > { %v2844_v28 = vpack.c.bf16 %v2817_v26, %v2816_v25 }
 0x204   : > { %3394 = vperm.xlu0 %9895, %v257_v32   ;;  %v2821_v32 = vld [vmem:[%s10034_s27 + $0xce] sm:$0xff] }
 0x207   : > { %8869 = vmatmul.mubr.msk.bf16.gmra.mrb[32].mxu0 %vm374_vm1, %v2201_v53  ;;  %v2502_v53 = vld [vmem:[%s10034_s27 + $0x105] sm:$0xff] }
 0x208   : > { %8874 = vmatprep.mubr.msk.bf16.mxu0 %vm374_vm1, %v2510_v54  ;;  %3404 = vperm.xlu0 %9895, %v259_v39   ;;  %v2503_v54 = vld [vmem:[%s10034_s27 + $0x10d] sm:$0xff] }
 0x209   : > { %v2524_v56 = vpack.c.bf16 %v2503_v54, %v2502_v53  ;;  %v2825_v39 = vld [vmem:[%s10034_s27 + $0xee] sm:$0xff]  ;;  %v2834_v54 = vld [vmem:[%s10034_s27 + $0x136] sm:$0xff] }
 0x20c   : > { %3414 = vperm.xlu0 %9895, %v261_v43   ;;  %v2827_v43 = vld [vmem:[%s10034_s27 + $0xfe] sm:$0xff] }
 0x20f   : > { %8875 = vmatmul.mubr.msk.bf16.vlgmr.msra.gmra.mrb[0].mxu0 %vm374_vm1, %v2511_v63  ;;  %v2508_v63 = vld [vmem:[%s10034_s27 + $0x135] sm:$0xff] }
 0x210   : > { %8911 = vmatpush3.bf16.msra.mxu0 %v2911_v1  ;;  %8878 = vmatprep.mubr.msk.bf16.mxu0 %vm374_vm1, %v2512_v0  ;;  %v2509_v0 = vld [vmem:[%s10034_s27 + $0x13d] sm:$0xff]  ;;  %v2800_v1 = vld [vmem:[%s10034_s27 + $0x26] sm:$0xff] }
 0x211   : > { %v2527_v3 = vpack.c.bf16 %v2509_v0, %v2508_v63  ;;  %v2836_v4 = vpack.c.bf16 %v2801_v2, %v2800_v1  ;;  %v4056_v63 = vld [vmem:[#allocation2] sm:$0xf]  ;;  %v4057_v0 = vld [vmem:[#allocation2 + $0x4] sm:$0xf]  ;;  %v3245_v2 = vpop.permute.xlu0 %3244 }
 0x217   : > { %8879 = vmatmul.mubr.msk.bf16.gmra.mrb[4].mxu0 %vm374_vm1, %v2513_v10  ;;  %v2838_v10 = vpack.c.bf16 %v2805_v8, %v2804_v7  ;;  %v3255_v7 = vpop.permute.xlu1 %3254 }
 0x218   : > { %8882 = vmatprep.mubr.msk.bf16.mxu0 %vm374_vm1, %v2514_v11  ;;  %v2806_v11 = vld [vmem:[%s10034_s27 + $0x56] sm:$0xff] }
 0x219   : > { %v2839_v15 = vpack.c.bf16 %v2807_v12, %v2806_v11  ;;  %v3250_v11 = vpop.permute.xlu0 %3249 }
 0x21b   : > { %v3260_v25 = vpop.permute.xlu1 %3259 }
 0x21f   : > { %8883 = vmatmul.mubr.msk.bf16.gmra.mrb[8].mxu0 %vm374_vm1, %v2515_v20  ;;  %v2813_v20 = vld [vmem:[%s10034_s27 + $0x8e] sm:$0xff] }
 0x220   : > { %8886 = vmatprep.mubr.msk.bf16.mxu0 %vm374_vm1, %v2516_v21  ;;  %v2841_v21 = vpack.c.bf16 %v2811_v18, %v2810_v17  ;;  %v2842_v22 = vpack.c.bf16 %v2813_v20, %v2812_v19 }
 0x227   : > { %8887 = vmatmul.mubr.msk.bf16.gmra.mrb[12].mxu0 %vm374_vm1, %v2517_v30  ;;  %v2819_v30 = vld [vmem:[%s10034_s27 + $0xbe] sm:$0xff] }
 0x228   : > { %8890 = vmatprep.mubr.msk.bf16.mxu0 %vm374_vm1, %v2518_v31  ;;  %v2820_v31 = vld [vmem:[%s10034_s27 + $0xc6] sm:$0xff]  ;;  %v2845_v33 = vpack.c.bf16 %v2819_v30, %v2818_v29 }
 0x229   : > { %v2846_v34 = vpack.c.bf16 %v2821_v32, %v2820_v31 }
 0x22f   : > { %8891 = vmatmul.mubr.msk.bf16.gmra.mrb[16].mxu0 %vm374_vm1, %v2519_v41  ;;  %v2848_v41 = vpack.c.bf16 %v2825_v39, %v2824_v38 }
 0x230   : > { %8894 = vmatprep.mubr.msk.bf16.mxu0 %vm374_vm1, %v2520_v42  ;;  %v2826_v42 = vld [vmem:[%s10034_s27 + $0xf6] sm:$0xff] }
 0x231   : > { %v2849_v46 = vpack.c.bf16 %v2827_v43, %v2826_v42  ;;  %v10759_v42 = vsel %vm429_vm0, %v4092_v59, 0 }
 0x237   : > { %8895 = vmatmul.mubr.msk.bf16.gmra.mrb[20].mxu0 %vm374_vm1, %v2521_v49  ;;  %v2831_v49 = vld [vmem:[%s10034_s27 + $0x11e] sm:$0xff] }
 0x238   : > { %8898 = vmatprep.mubr.msk.bf16.mxu0 %vm374_vm1, %v2522_v50  ;;  %v2832_v50 = vld [vmem:[%s10034_s27 + $0x126] sm:$0xff]  ;;  %v2851_v52 = vpack.c.bf16 %v2831_v49, %v2830_v48 }
 0x239   : > { %v2852_v53 = vpack.c.bf16 %v2833_v51, %v2832_v50 }
 0x23f   : > { %8899 = vmatmul.mubr.msk.bf16.gmra.mrb[24].mxu0 %vm374_vm1, %v2523_v55  ;;  %v2835_v55 = vld [vmem:[%s10034_s27 + $0x13e] sm:$0xff] }
 0x240   : > { %8902 = vmatprep.mubr.msk.bf16.mxu0 %vm374_vm1, %v2524_v56  ;;  %v2853_v56 = vpack.c.bf16 %v2835_v55, %v2834_v54 }
 0x247   : > { %8903 = vmatmul.mubr.msk.bf16.gmra.mrb[28].mxu0 %vm374_vm1, %v2525_v61  ;;  %v10731_v61 = vshrl.u32 %v3126_v60, 7 }
 0x248   : > { %8906 = vmatprep.mubr.msk.bf16.mxu0 %vm374_vm1, %v2526_v62  ;;  %v226_v62 = vld [vmem:[%s12162_s3] sm:$0xf] }
 0x249   : > { %12176 = vst [vmem:[#allocation3_spill] sm:$0xff] %v10731_v61  ;;  %v3128_v36 = vsub.s32 0, %v10731_v61  ;;  %v3168_v1 = vsub.s32 1, %v10731_v61 }
 0x24b   : > { %v10742_v5 = vrot.slane %v226_v62, %v3168_v1 }
 0x24f   : > { %8907 = vmatmul.mubr.msk.bf16.gmra.mrb[32].mxu0 %vm374_vm1, %v2527_v3  ;;  %v10738_v3 = vrot.slane %v226_v62, %v3128_v36  ;;  %v3270_v36 = vpop.permute.xlu1 %3269 }
 0x250   : > { %8912 = vmatprep.mubr.msk.bf16.mxu0 %vm374_vm1, %v2836_v4  ;;  %v10740_v4 = vcombine.low %v4056_v63, %v4057_v0  ;;  %v4013_v0 = vld [vmem:[#allocation2 + $0x8] sm:$0xe] }
 0x257   : > { %8913 = vmatmul.mubr.msk.bf16.vlgmr.msra.gmra.mrb[0].mxu0 %vm374_vm1, %v2837_v9 }
 0x258   : > { %8916 = vmatprep.mubr.msk.bf16.mxu0 %vm374_vm1, %v2838_v10  ;;  %v4193_v10 = vshll.u32 %v10740_v4, 16 }
 0x25f   : > { %8917 = vmatmul.mubr.msk.bf16.gmra.mrb[4].mxu0 %vm374_vm1, %v2839_v15 }
 0x260   : > { %8920 = vmatprep.mubr.msk.bf16.mxu0 %vm374_vm1, %v2840_v16 }
 0x267   : > { %8921 = vmatmul.mubr.msk.bf16.gmra.mrb[8].mxu0 %vm374_vm1, %v2841_v21  ;;  %v4191_v21 = vshrl.u32 %v10740_v4, 16 }
 0x268   : > { %8924 = vmatprep.mubr.msk.bf16.mxu0 %vm374_vm1, %v2842_v22  ;;  %v4195_v22 = vrot.slane %v4193_v10, 1 }
 0x26a   : > { %v10755_v37 = vor.u32 %v4195_v22, %v4191_v21 }
 0x26f   : > { %8925 = vmatmul.mubr.msk.bf16.gmra.mrb[12].mxu0 %vm374_vm1, %v2843_v27 }
 0x270   : > { %8928 = vmatprep.mubr.msk.bf16.mxu0 %vm374_vm1, %v2844_v28  ;;  %v3265_v28 = vpop.permute.xlu0 %3264 }
 0x277   : > { %8929 = vmatmul.mubr.msk.bf16.gmra.mrb[16].mxu0 %vm374_vm1, %v2845_v33 }
 0x278   : > { %8932 = vmatprep.mubr.msk.bf16.mxu0 %vm374_vm1, %v2846_v34 }
 0x27f   : > { %8933 = vmatmul.mubr.msk.bf16.gmra.mrb[20].mxu0 %vm374_vm1, %v2847_v40 }
 0x280   : > { %8936 = vmatprep.mubr.msk.bf16.mxu0 %vm374_vm1, %v2848_v41 }
 0x287   : > { %8937 = vmatmul.mubr.msk.bf16.gmra.mrb[24].mxu0 %vm374_vm1, %v2849_v46 }
 0x288   : > { %8940 = vmatprep.mubr.msk.bf16.mxu0 %vm374_vm1, %v2850_v47 }
 0x28f   : > { %8941 = vmatmul.mubr.msk.bf16.gmra.mrb[28].mxu0 %vm374_vm1, %v2851_v52 }
 0x290   : > { %8944 = vmatprep.mubr.msk.bf16.mxu0 %vm374_vm1, %v2852_v53 }
 0x297   : > { %8945 = vmatmul.mubr.msk.bf16.gmra.mrb[32].mxu0 %vm374_vm1, %v2853_v56  ;;  %v3275_v56 = vpop.permute.xlu0 %3274 }
 0x32a   : > { %v8914_v6 = vpop.f32.mrb[0].mxu0 }
 0x32b   : > { %v3132_v8 = vmul.f32 %v8914_v6, %v10738_v3  ;;  %v2947_v9 = vpop.f32.mrb[1].mxu0 }
 0x32c   : > { %v3130_v12 = vmul.f32 %v10738_v3, %v2947_v9  ;;  %v8915_v13 = vpop.f32.mrb[2].mxu0 }
 0x32d   : > { %v3172_v14 = vadd.f32 %v10742_v5, %v3132_v8  ;;  %v3133_v15 = vmul.f32 %v8915_v13, %v10738_v3  ;;  %v2950_v16 = vpop.f32.mrb[3].mxu0 }
 0x32e   : > { %v3170_v17 = vadd.f32 %v10742_v5, %v3130_v12  ;;  %v3131_v18 = vmul.f32 %v10738_v3, %v2950_v16 }
 0x32f   : > { %v3208_v19 = vmax.f32 %v3172_v14, 0.0  ;;  %v3173_v20 = vadd.f32 %v10742_v5, %v3133_v15 }
 0x330   : > { %v3206_v23 = vmax.f32 %v3170_v17, 0.0  ;;  %v3171_v24 = vadd.f32 %v10742_v5, %v3131_v18 }
 0x331   : > { %v3424_v26 = vmul.f32 %v3255_v7, %v3208_v19  ;;  %v3209_v27 = vmax.f32 %v3173_v20, 0.0 }
 0x332   : > { %v3422_v29 = vmul.f32 %v3245_v2, %v3206_v23  ;;  %v3207_v30 = vmax.f32 %v3171_v24, 0.0  ;;  %v8918_v31 = vpop.f32.mrb[4].mxu0 }
 0x333   : > { %v8230_v32 = vpack.c.bf16 %v3424_v26, %v3424_v26  ;;  %v3425_v33 = vmul.f32 %v3260_v25, %v3209_v27  ;;  %v3136_v34 = vmul.f32 %v8918_v31, %v10738_v3  ;;  %v2963_v35 = vpop.f32.mrb[5].mxu0 }
 0x334   : > { %v8228_v38 = vpack.c.bf16 %v3422_v29, %v3422_v29  ;;  %v3423_v39 = vmul.f32 %v3250_v11, %v3207_v30  ;;  %v3134_v40 = vmul.f32 %v10738_v3, %v2963_v35  ;;  %v8919_v41 = vpop.f32.mrb[6].mxu0  ;;  %v3285_v29 = vpop.permute.xlu0 %3284 }
 0x335   : > { %v3634_v43 = vshrl.u32 %v8230_v32, 16  ;;  %v3637_v44 = vshll.u32 %v8230_v32, 16  ;;  %v8231_v45 = vpack.c.bf16 %v3425_v33, %v3425_v33  ;;  %v3176_v46 = vadd.f32 %v10742_v5, %v3136_v34  ;;  %v2966_v47 = vpop.f32.mrb[7].mxu0  ;;  %v3280_v33 = vpop.permute.xlu1 %3279 }
 0x336   : > { %v3615_v48 = vshrl.u32 %v8228_v38, 16  ;;  %v3618_v49 = vshll.u32 %v8228_v38, 16  ;;  %v8229_v50 = vpack.c.bf16 %v3423_v39, %v3423_v39  ;;  %v3174_v51 = vadd.f32 %v10742_v5, %v3134_v40 }
 0x337   : > { %v3636_v52 = vrot.slane %v3634_v43, 6  ;;  %v3639_v53 = vrot.slane %v3637_v44, 7  ;;  %v3644_v54 = vshrl.u32 %v8231_v45, 16  ;;  %v3647_v55 = vshll.u32 %v8231_v45, 16 }
 0x338   : > { %v3617_v57 = vrot.slane %v3615_v48, 6  ;;  %v3620_v58 = vrot.slane %v3618_v49, 7  ;;  %v3624_v59 = vshrl.u32 %v8229_v50, 16  ;;  %v3627_v60 = vshll.u32 %v8229_v50, 16 }
 0x339   : > { %v3640_v62 = vor.u32 %v3639_v53, %v3636_v52  ;;  %v3646_v1 = vrot.slane %v3644_v54, 6  ;;  %v3649_v2 = vrot.slane %v3647_v55, 7  ;;  %v3212_v6 = vmax.f32 %v3176_v46, 0.0 }
 0x33a   : > { %v3621_v7 = vor.u32 %v3620_v58, %v3617_v57  ;;  %v3626_v9 = vrot.slane %v3624_v59, 6  ;;  %v3629_v10 = vrot.slane %v3627_v60, 7  ;;  %v3210_v11 = vmax.f32 %v3174_v51, 0.0  ;;  %v8922_v12 = vpop.f32.mrb[8].mxu0  ;;  %v3295_v59 = vpop.permute.xlu0 %3294 }
 0x33b   : > { %v3642_v13 = vrot.slane %v3640_v62, 4  ;;  %v3650_v14 = vor.u32 %v3649_v2, %v3646_v1  ;;  %v3428_v15 = vmul.f32 %v3275_v56, %v3212_v6  ;;  %v3137_v16 = vmul.f32 %v8919_v41, %v10738_v3  ;;  %v2979_v17 = vpop.f32.mrb[9].mxu0  ;;  %v3290_v2 = vpop.permute.xlu1 %3289 }
 0x33c   : > { %v3622_v18 = vrot.slane %v3621_v7, 4  ;;  %v4014_v19 = vsel %vm10765_vm7, %v3621_v7, %v4013_v0  ;;  %v3630_v20 = vor.u32 %v3629_v10, %v3626_v9  ;;  %v3426_v21 = vmul.f32 %v3265_v28, %v3210_v11  ;;  %v8923_v22 = vpop.f32.mrb[10].mxu0 }
 0x33d   : > { %4015 = vst [vmem:[#allocation2 + $0x8] sm:$0xe] %v4014_v19  ;;  %v3651_v23 = vsel %vm10771_vm8, %v3642_v13, %v3650_v14  ;;  %v3652_v24 = vrot.slane %v3650_v14, 4  ;;  %v8234_v25 = vpack.c.bf16 %v3428_v15, %v3428_v15  ;;  %v3177_v26 = vadd.f32 %v10742_v5, %v3137_v16  ;;  %v2982_v27 = vpop.f32.mrb[11].mxu0 }
 0x33e   : > { %4018 = vst.msk [vmem:[#allocation2 + $0x14] sm:$0xf] %vm3458_vm2, %v3651_v23  ;;  %v3631_v30 = vsel %vm10771_vm8, %v3622_v18, %v3630_v20  ;;  %v3632_v31 = vrot.slane %v3630_v20, 4  ;;  %v8232_v32 = vpack.c.bf16 %v3426_v21, %v3426_v21  ;;  %v3135_v28 = vmul.f32 %v10738_v3, %v2966_v47 }
 0x33f   : > { %4016 = vst.msk [vmem:[#allocation2 + $0xc] sm:$0xf] %vm3458_vm2, %v3631_v30  ;;  %v3674_v34 = vshrl.u32 %v8234_v25, 16  ;;  %v3677_v35 = vshll.u32 %v8234_v25, 16  ;;  %v3213_v38 = vmax.f32 %v3177_v26, 0.0  ;;  %v3140_v39 = vmul.f32 %v8922_v12, %v10738_v3 }
 0x340   : > { %v3641_v40 = vsel %vm10771_vm8, %v3632_v31, %v3640_v62  ;;  %v3654_v41 = vshrl.u32 %v8232_v32, 16  ;;  %v3657_v43 = vshll.u32 %v8232_v32, 16  ;;  %v3175_v44 = vadd.f32 %v10742_v5, %v3135_v28 }
 0x341   : > { %4017 = vst.msk [vmem:[#allocation2 + $0x10] sm:$0xf] %vm3458_vm2, %v3641_v40  ;;  %v3676_v45 = vrot.slane %v3674_v34, 6  ;;  %v3679_v46 = vrot.slane %v3677_v35, 7  ;;  %v3429_v47 = vmul.f32 %v3280_v33, %v3213_v38  ;;  %v3180_v48 = vadd.f32 %v10742_v5, %v3140_v39  ;;  %v3300_v34 = vpop.permute.xlu1 %3299 }
 0x342   : > { %v3656_v49 = vrot.slane %v3654_v41, 6  ;;  %v3659_v50 = vrot.slane %v3657_v43, 7  ;;  %v3211_v51 = vmax.f32 %v3175_v44, 0.0  ;;  %v3138_v52 = vmul.f32 %v10738_v3, %v2979_v17  ;;  %v8926_v53 = vpop.f32.mrb[12].mxu0 }
 0x343   : > { %v10793_v54 = vor.u32 %v3679_v46, %v3676_v45  ;;  %v8235_v55 = vpack.c.bf16 %v3429_v47, %v3429_v47  ;;  %v3216_v56 = vmax.f32 %v3180_v48, 0.0  ;;  %v3141_v57 = vmul.f32 %v8923_v22, %v10738_v3  ;;  %v2995_v58 = vpop.f32.mrb[13].mxu0 }
 0x344   : > { %v3660_v60 = vor.u32 %v3659_v50, %v3656_v49  ;;  %v3427_v62 = vmul.f32 %v3270_v36, %v3211_v51  ;;  %v3178_v63 = vadd.f32 %v10742_v5, %v3138_v52  ;;  %v3139_v0 = vmul.f32 %v10738_v3, %v2982_v27  ;;  %v8927_v1 = vpop.f32.mrb[14].mxu0 }
 0x345   : > { %v3682_v6 = vrot.slane %v10793_v54, 4  ;;  %v3684_v7 = vshrl.u32 %v8235_v55, 16  ;;  %v3687_v9 = vshll.u32 %v8235_v55, 16  ;;  %v3432_v10 = vmul.f32 %v3295_v59, %v3216_v56  ;;  %v10799_v11 = vpop.f32.mrb[15].mxu0 }
 0x346   : > { %v3661_v12 = vsel %vm10771_vm8, %v3652_v24, %v3660_v60  ;;  %v3662_v13 = vrot.slane %v3660_v60, 4  ;;  %v8233_v14 = vpack.c.bf16 %v3427_v62, %v3427_v62  ;;  %v3214_v15 = vmax.f32 %v3178_v63, 0.0  ;;  %v3305_v24 = vpop.permute.xlu0 %3304 }
 0x347   : > { %4019 = vst.msk [vmem:[#allocation2 + $0x18] sm:$0xf] %vm3458_vm2, %v3661_v12  ;;  %v3686_v36 = vrot.slane %v3684_v7, 6  ;;  %v3689_v16 = vrot.slane %v3687_v9, 7  ;;  %v8238_v17 = vpack.c.bf16 %v3432_v10, %v3432_v10  ;;  %v3181_v18 = vadd.f32 %v10742_v5, %v3141_v57 }
 0x348   : > { %v3664_v19 = vshrl.u32 %v8233_v14, 16  ;;  %v3667_v20 = vshll.u32 %v8233_v14, 16  ;;  %v3430_v21 = vmul.f32 %v3285_v29, %v3214_v15  ;;  %v3179_v22 = vadd.f32 %v10742_v5, %v3139_v0 }
 0x349   : > { %v3690_v23 = vor.u32 %v3689_v16, %v3686_v36  ;;  %v3714_v25 = vshrl.u32 %v8238_v17, 16  ;;  %v3717_v26 = vshll.u32 %v8238_v17, 16  ;;  %v3217_v27 = vmax.f32 %v3181_v18, 0.0 }
 0x34a   : > { %v3666_v30 = vrot.slane %v3664_v19, 6  ;;  %v3669_v31 = vrot.slane %v3667_v20, 7  ;;  %v8236_v32 = vpack.c.bf16 %v3430_v21, %v3430_v21  ;;  %v3215_v28 = vmax.f32 %v3179_v22, 0.0  ;;  %v8930_v33 = vpop.f32.mrb[16].mxu0  ;;  %v3315_v0 = vpop.permute.xlu0 %3314 }
 0x34b   : > { %v3691_v35 = vsel %vm10771_vm8, %v3682_v6, %v3690_v23  ;;  %v3692_v38 = vrot.slane %v3690_v23, 4  ;;  %v3716_v39 = vrot.slane %v3714_v25, 6  ;;  %v3719_v40 = vrot.slane %v3717_v26, 7  ;;  %v3011_v29 = vpop.f32.mrb[17].mxu0 }
 0x34c   : > { %4022 = vst.msk [vmem:[#allocation2 + $0x24] sm:$0xf] %vm3458_vm2, %v3691_v35  ;;  %v3670_v41 = vor.u32 %v3669_v31, %v3666_v30  ;;  %v3694_v43 = vshrl.u32 %v8236_v32, 16  ;;  %v3697_v44 = vshll.u32 %v8236_v32, 16  ;;  %v3433_v45 = vmul.f32 %v3300_v34, %v3217_v27  ;;  %v10809_v46 = vpop.f32.mrb[18].mxu0 }
 0x34d   : > { %v10811_v47 = vor.u32 %v3719_v40, %v3716_v39  ;;  %v3431_v48 = vmul.f32 %v3290_v2, %v3215_v28  ;;  %v3144_v49 = vmul.f32 %v8926_v53, %v10738_v3  ;;  %v3142_v50 = vmul.f32 %v10738_v3, %v2995_v58  ;;  %v10815_v51 = vpop.f32.mrb[19].mxu0 }
 0x34e   : > { %v3671_v52 = vsel %vm10771_vm8, %v3662_v13, %v3670_v41  ;;  %v3672_v55 = vrot.slane %v3670_v41, 4  ;;  %v3696_v56 = vrot.slane %v3694_v43, 6  ;;  %v3699_v57 = vrot.slane %v3697_v44, 7  ;;  %v3310_v13 = vpop.permute.xlu1 %3309  ;;  %v3325_v34 = vpop.permute.xlu0 %3324 }
 0x34f   : > { %4020 = vst.msk [vmem:[#allocation2 + $0x1c] sm:$0xf] %vm3458_vm2, %v3671_v52  ;;  %v3722_v59 = vrot.slane %v10811_v47, 4  ;;  %v8239_v60 = vpack.c.bf16 %v3433_v45, %v3433_v45  ;;  %v8237_v62 = vpack.c.bf16 %v3431_v48, %v3431_v48  ;;  %v3184_v63 = vadd.f32 %v10742_v5, %v3144_v49 }
 0x350   : > { %v3681_v53 = vsel %vm10771_vm8, %v3672_v55, %v10793_v54  ;;  %v3700_v58 = vor.u32 %v3699_v57, %v3696_v56  ;;  %v3182_v2 = vadd.f32 %v10742_v5, %v3142_v50  ;;  %v3145_v6 = vmul.f32 %v8927_v1, %v10738_v3 }
 0x351   : > { %4021 = vst.msk [vmem:[#allocation2 + $0x20] sm:$0xf] %vm3458_vm2, %v3681_v53  ;;  %v3724_v7 = vshrl.u32 %v8239_v60, 16  ;;  %v3727_v9 = vshll.u32 %v8239_v60, 16  ;;  %v3704_v10 = vshrl.u32 %v8237_v62, 16  ;;  %v3707_v12 = vshll.u32 %v8237_v62, 16 }
 0x352   : > { %v3701_v14 = vsel %vm10771_vm8, %v3692_v38, %v3700_v58  ;;  %v3702_v15 = vrot.slane %v3700_v58, 4  ;;  %v3220_v36 = vmax.f32 %v3184_v63, 0.0  ;;  %v3218_v16 = vmax.f32 %v3182_v2, 0.0  ;;  %v10830_v17 = vpop.f32.mrb[20].mxu0  ;;  %v3320_v44 = vpop.permute.xlu1 %3319 }
 0x353   : > { %4023 = vst.msk [vmem:[#allocation2 + $0x28] sm:$0xf] %vm3458_vm2, %v3701_v14  ;;  %v3726_v54 = vrot.slane %v3724_v7, 6  ;;  %v3729_v18 = vrot.slane %v3727_v9, 7  ;;  %v3706_v1 = vrot.slane %v3704_v10, 6  ;;  %v3709_v19 = vrot.slane %v3707_v12, 7 }
 0x354   : > { %v10833_v20 = vpop.f32.mrb[21].mxu0  ;;  %v3436_v21 = vmul.f32 %v3315_v0, %v3220_v36  ;;  %v3434_v22 = vmul.f32 %v3305_v24, %v3218_v16  ;;  %v3185_v23 = vadd.f32 %v10742_v5, %v3145_v6  ;;  %v3143_v25 = vmul.f32 %v10738_v3, %v10799_v11  ;;  %v10867_v16 = vld [vmem:[#allocation2 + $0x8] sm:$0xff]  }
 0x355   : > { %v10838_v26 = vpop.f32.mrb[22].mxu0  ;;  %v3730_v27 = vor.u32 %v3729_v18, %v3726_v54  ;;  %v3710_v30 = vor.u32 %v3709_v19, %v3706_v1  ;;  %v3148_v31 = vmul.f32 %v8930_v33, %v10738_v3  ;;  %v3146_v32 = vmul.f32 %v10738_v3, %v3011_v29 }
 0x356   : > { %v10842_v28 = vpop.f32.mrb[23].mxu0  ;;  %v8242_v35 = vpack.c.bf16 %v3436_v21, %v3436_v21  ;;  %v8240_v38 = vpack.c.bf16 %v3434_v22, %v3434_v22  ;;  %v3221_v39 = vmax.f32 %v3185_v23, 0.0  ;;  %v3183_v24 = vadd.f32 %v10742_v5, %v3143_v25  ;;  %v3330_v18 = vpop.permute.xlu1 %3329 }
 0x357   : > { %v3731_v40 = vsel %vm10771_vm8, %v3722_v59, %v3730_v27  ;;  %v3732_v11 = vrot.slane %v3730_v27, 4  ;;  %v3711_v41 = vsel %vm10771_vm8, %v3702_v15, %v3710_v30  ;;  %v3712_v43 = vrot.slane %v3710_v30, 4 }
 0x358   : > { %4026 = vst.msk [vmem:[#allocation2 + $0x34] sm:$0xf] %vm3458_vm2, %v3731_v40  ;;  %4024 = vst.msk [vmem:[#allocation2 + $0x2c] sm:$0xf] %vm3458_vm2, %v3711_v41  ;;  %v3754_v33 = vshrl.u32 %v8242_v35, 16  ;;  %v3757_v29 = vshll.u32 %v8242_v35, 16  ;;  %v3437_v50 = vmul.f32 %v3320_v44, %v3221_v39  ;;  %v3188_v55 = vadd.f32 %v10742_v5, %v3148_v31 }
 0x359   : > { %v3734_v45 = vshrl.u32 %v8240_v38, 16  ;;  %v3737_v48 = vshll.u32 %v8240_v38, 16  ;;  %v3721_v49 = vsel %vm10771_vm8, %v3712_v43, %v10811_v47  ;;  %v3219_v52 = vmax.f32 %v3183_v24, 0.0  ;;  %v3335_v47 = vpop.permute.xlu0 %3334 }
 0x35a   : > { %4025 = vst.msk [vmem:[#allocation2 + $0x30] sm:$0xf] %vm3458_vm2, %v3721_v49  ;;  %v3756_v56 = vrot.slane %v3754_v33, 6  ;;  %v3759_v57 = vrot.slane %v3757_v29, 7  ;;  %v10856_v62 = vpop.f32.mrb[24].mxu0  ;;  %v8243_v63 = vpack.c.bf16 %v3437_v50, %v3437_v50  ;;  %v3224_v53 = vmax.f32 %v3188_v55, 0.0  ;;  %v3340_v49 = vpop.permute.xlu1 %3339 }
 0x35b   : > { %v3736_v59 = vrot.slane %v3734_v45, 6  ;;  %v3739_v60 = vrot.slane %v3737_v48, 7  ;;  %v3435_v0 = vmul.f32 %v3310_v13, %v3219_v52  ;;  %v3186_v58 = vadd.f32 %v10742_v5, %v3146_v32  ;;  %v10859_v2 = vpop.f32.mrb[25].mxu0 }
 0x35c   : > { %v3760_v6 = vor.u32 %v3759_v57, %v3756_v56  ;;  %v3149_v9 = vmul.f32 %v10809_v46, %v10738_v3  ;;  %v3147_v10 = vmul.f32 %v10738_v3, %v10815_v51  ;;  %v10865_v12 = vpop.f32.mrb[26].mxu0  ;;  %v3764_v14 = vshrl.u32 %v8243_v63, 16  ;;  %v10884_v57 = vld [vmem:[#allocation2 + $0x10] sm:$0xff]  }
 0x35d   : > { %v3740_v7 = vor.u32 %v3739_v60, %v3736_v59  ;;  %v3767_v15 = vshll.u32 %v8243_v63, 16  ;;  %v8241_v36 = vpack.c.bf16 %v3435_v0, %v3435_v0  ;;  %v3440_v13 = vmul.f32 %v3335_v47, %v3224_v53  ;;  %v10869_v54 = vpop.f32.mrb[27].mxu0 }
 0x35e   : > { %v3762_v1 = vrot.slane %v3760_v6, 4  ;;  %v3222_v21 = vmax.f32 %v3186_v58, 0.0  ;;  %v3766_v51 = vrot.slane %v3764_v14, 6  ;;  %v3189_v31 = vadd.f32 %v10742_v5, %v3149_v9 }
 0x35f   : > { %v3741_v19 = vsel %vm10771_vm8, %v3732_v11, %v3740_v7  ;;  %v3742_v46 = vrot.slane %v3740_v7, 4  ;;  %v3769_v22 = vrot.slane %v3767_v15, 7  ;;  %v3744_v23 = vshrl.u32 %v8241_v36, 16 }
 0x360   : > { %4027 = vst.msk [vmem:[#allocation2 + $0x38] sm:$0xf] %vm3458_vm2, %v3741_v19  ;;  %v3747_v25 = vshll.u32 %v8241_v36, 16  ;;  %v8246_v27 = vpack.c.bf16 %v3440_v13, %v3440_v13  ;;  %v3438_v30 = vmul.f32 %v3325_v34, %v3222_v21  ;;  %v3187_v32 = vadd.f32 %v10742_v5, %v3147_v10  ;;  %v3345_v21 = vpop.permute.xlu0 %3344 }
 0x361   : > { %v3770_v35 = vor.u32 %v3769_v22, %v3766_v51  ;;  %v3746_v38 = vrot.slane %v3744_v23, 6  ;;  %v4198_v24 = vshll.u32 %v10867_v16, 16  ;;  %v3225_v43 = vmax.f32 %v3189_v31, 0.0  ;;  %v9900_v31 = vld [vmem:[#allocation2 + $0x18] sm:$0xff]  }
 0x362   : > { %v3749_v39 = vrot.slane %v3747_v25, 7  ;;  %v3794_v40 = vshrl.u32 %v8246_v27, 16  ;;  %v3797_v11 = vshll.u32 %v8246_v27, 16  ;;  %v8244_v41 = vpack.c.bf16 %v3438_v30, %v3438_v30  ;;  %v10877_v44 = vpop.f32.mrb[28].mxu0 }
 0x363   : > { %v3771_v33 = vsel %vm10771_vm8, %v3762_v1, %v3770_v35  ;;  %v3772_v29 = vrot.slane %v3770_v35, 4  ;;  %v3223_v45 = vmax.f32 %v3187_v32, 0.0  ;;  %v10881_v48 = vpop.f32.mrb[29].mxu0  ;;  %v3441_v0 = vmul.f32 %v3340_v49, %v3225_v43  ;;  %v3350_v35 = vpop.permute.xlu1 %3349 }
 0x364   : > { %v3750_v34 = vor.u32 %v3749_v39, %v3746_v38  ;;  %4030 = vst.msk [vmem:[#allocation2 + $0x44] sm:$0xf] %vm3458_vm2, %v3771_v33  ;;  %v3796_v50 = vrot.slane %v3794_v40, 6  ;;  %v3799_v52 = vrot.slane %v3797_v11, 7  ;;  %v3774_v55 = vshrl.u32 %v8244_v41, 16  ;;  %v10886_v59 = vpop.f32.mrb[30].mxu0 }
 0x365   : > { %v3777_v56 = vshll.u32 %v8244_v41, 16  ;;  %v3439_v53 = vmul.f32 %v3330_v18, %v3223_v45  ;;  %v10890_v58 = vpop.f32.mrb[31].mxu0  ;;  %v4200_v10 = vrot.slane %v4198_v24, 1  ;;  %v8247_v15 = vpack.c.bf16 %v3441_v0, %v3441_v0  ;;  %v10943_v0 = vld [vmem:[#allocation2 + $0x20] sm:$0xff]  }
 0x366   : > { %v3751_v60 = vsel %vm10771_vm8, %v3742_v46, %v3750_v34  ;;  %v3752_v63 = vrot.slane %v3750_v34, 4  ;;  %v10893_v47 = vor.u32 %v3799_v52, %v3796_v50  ;;  %v3776_v7 = vrot.slane %v3774_v55, 6 }
 0x367   : > { %4028 = vst.msk [vmem:[#allocation2 + $0x3c] sm:$0xf] %vm3458_vm2, %v3751_v60  ;;  %v3779_v9 = vrot.slane %v3777_v56, 7  ;;  %v8245_v36 = vpack.c.bf16 %v3439_v53, %v3439_v53  ;;  %v4202_v13 = vshrl.u32 %v10867_v16, 16  ;;  %v4201_v19 = vsel %vm4189_vm9, %v10755_v37, %v4200_v10  ;;  %v10911_v37 = vld [vmem:[%s12161_s2 + $0x4] sm:$0x3]  ;;  %v3355_v60 = vpop.permute.xlu0 %3354 }
 0x368   : > { %v3761_v14 = vsel %vm10771_vm8, %v3752_v63, %v3760_v6  ;;  %v3802_v18 = vrot.slane %v10893_v47, 4  ;;  %v4206_v46 = vshll.u32 %v10884_v57, 16  ;;  %v3804_v51 = vshrl.u32 %v8247_v15, 16  ;;  %8950 = vmatprep.mubr.msk.bf16.mxu1 %vm374_vm1, %v4201_v19 }
 0x369   : > { %4029 = vst.msk [vmem:[#allocation2 + $0x40] sm:$0xf] %vm3458_vm2, %v3761_v14  ;;  %v3780_v1 = vor.u32 %v3779_v9, %v3776_v7  ;;  %v3807_v22 = vshll.u32 %v8247_v15, 16  ;;  %v3784_v23 = vshrl.u32 %v8245_v36, 16  ;;  %v3787_v25 = vshll.u32 %v8245_v36, 16  ;;  %v3360_v14 = vpop.permute.xlu1 %3359 }
 0x36a   : > { %v4204_v27 = vor.u32 %v4202_v13, %v4200_v10  ;;  %v4208_v30 = vrot.slane %v4206_v46, 1  ;;  %v10906_v32 = vpop.f32.mrb[32].mxu0  ;;  %v3806_v38 = vrot.slane %v3804_v51, 6  ;;  %v3152_v41 = vmul.f32 %v10830_v17, %v10738_v3 }
 0x36b   : > { %v3781_v6 = vsel %vm10771_vm8, %v3772_v29, %v3780_v1  ;;  %v3782_v16 = vrot.slane %v3780_v1, 4  ;;  %v3809_v39 = vrot.slane %v3807_v22, 7  ;;  %v3786_v24 = vrot.slane %v3784_v23, 6  ;;  %v10921_v29 = vpop.f32.mrb[33].mxu0 }
 0x36c   : > { %4031 = vst.msk [vmem:[#allocation2 + $0x48] sm:$0xf] %vm3458_vm2, %v3781_v6  ;;  %v3789_v40 = vrot.slane %v3787_v25, 7  ;;  %v4209_v11 = vsel %vm4189_vm9, %v4204_v27, %v4208_v30  ;;  %v3150_v43 = vmul.f32 %v10738_v3, %v10833_v20  ;;  %v3153_v33 = vmul.f32 %v10838_v26, %v10738_v3  ;;  %v10929_v52 = vpop.f32.mrb[34].mxu0 }
 0x36d   : > { %v10923_v34 = vor.u32 %v3809_v39, %v3806_v38  ;;  %8951 = vmatmul.mubr.msk.bf16.vlgmr.msra.gmra.mrb[0].mxu1 %vm374_vm1, %v4209_v11  ;;  %v3151_v49 = vmul.f32 %v10738_v3, %v10842_v28  ;;  %v4210_v50 = vshrl.u32 %v10884_v57, 16  ;;  %v3192_v17 = vadd.f32 %v10742_v5, %v3152_v41  ;;  %v10935_v56 = vpop.f32.mrb[35].mxu0 }
 0x36e   : > { %v3790_v45 = vor.u32 %v3789_v40, %v3786_v24  ;;  %8987 = vmatpush3.bf16.msra.mxu1 %v10759_v42  ;;  %v3190_v20 = vadd.f32 %v10742_v5, %v3150_v43  ;;  %v3193_v26 = vadd.f32 %v10742_v5, %v3153_v33  ;;  %v4214_v55 = vshll.u32 %v9900_v31, 16 }
 0x36f   : > { %v3811_v28 = vsel %vm10771_vm8, %v3802_v18, %v10923_v34  ;;  %v3812_v57 = vrot.slane %v10923_v34, 4  ;;  %9877 = vmatprep.subr.msk.bf16.mxu1 %vm429_vm0, %v10911_v37  ;;  %v3228_v53 = vmax.f32 %v3192_v17, 0.0  ;;  %v3191_v10 = vadd.f32 %v10742_v5, %v3151_v49  ;;  %v3370_v49 = vpop.permute.xlu1 %3369 }
 0x370   : > { %v3791_v63 = vsel %vm10771_vm8, %v3782_v16, %v3790_v45  ;;  %v3792_v42 = vrot.slane %v3790_v45, 4  ;;  %4034 = vst.msk [vmem:[#allocation2 + $0x54] sm:$0xf] %vm3458_vm2, %v3811_v28  ;;  %v3226_v7 = vmax.f32 %v3190_v20, 0.0  ;;  %v3229_v9 = vmax.f32 %v3193_v26, 0.0 }
 0x371   : > { %4032 = vst.msk [vmem:[#allocation2 + $0x4c] sm:$0xf] %vm3458_vm2, %v3791_v63  ;;  %v4212_v36 = vor.u32 %v4210_v50, %v4208_v30  ;;  %v4216_v13 = vrot.slane %v4214_v55, 1  ;;  %v4218_v18 = vshrl.u32 %v9900_v31, 16  ;;  %v3444_v1 = vmul.f32 %v3355_v60, %v3228_v53  ;;  %v3365_v31 = vpop.permute.xlu0 %3364 }
 0x372   : > { %v3801_v15 = vsel %vm10771_vm8, %v3792_v42, %v10893_v47  ;;  %v3442_v19 = vmul.f32 %v3345_v21, %v3226_v7  ;;  %v3445_v46 = vmul.f32 %v3360_v14, %v3229_v9  ;;  %v3227_v51 = vmax.f32 %v3191_v10, 0.0 }
 0x373   : > { %4033 = vst.msk [vmem:[#allocation2 + $0x50] sm:$0xf] %vm3458_vm2, %v3801_v15  ;;  %v4217_v22 = vsel %vm4189_vm9, %v4212_v36, %v4216_v13  ;;  %v4220_v23 = vor.u32 %v4218_v18, %v4216_v13  ;;  %v4222_v25 = vshll.u32 %v10943_v0, 16  ;;  %v3156_v6 = vmul.f32 %v10856_v62, %v10738_v3 }
 0x374   : > { %v8250_v16 = vpack.c.bf16 %v3444_v1, %v3444_v1  ;;  %v8248_v27 = vpack.c.bf16 %v3442_v19, %v3442_v19  ;;  %v8251_v47 = vpack.c.bf16 %v3445_v46, %v3445_v46  ;;  %v3443_v30 = vmul.f32 %v3350_v35, %v3227_v51  ;;  %8954 = vmatprep.mubr.msk.bf16.mxu1 %vm374_vm1, %v4217_v22 }
 0x375   : > { %v4224_v38 = vrot.slane %v4222_v25, 1  ;;  %v3196_v21 = vadd.f32 %v10742_v5, %v3156_v6  ;;  %v3154_v39 = vmul.f32 %v10738_v3, %v10859_v2  ;;  %v3157_v24 = vmul.f32 %v10865_v12, %v10738_v3  ;;  %v3375_v7 = vpop.permute.xlu0 %3374  ;;  %v3380_v25 = vpop.permute.xlu1 %3379 }
 0x376   : > { %v3834_v40 = vshrl.u32 %v8250_v16, 16  ;;  %v3837_v11 = vshll.u32 %v8250_v16, 16  ;;  %v3814_v41 = vshrl.u32 %v8248_v27, 16  ;;  %v3817_v62 = vshll.u32 %v8248_v27, 16 }
 0x377   : > { %v3844_v43 = vshrl.u32 %v8251_v47, 16  ;;  %v3847_v33 = vshll.u32 %v8251_v47, 16  ;;  %v8249_v45 = vpack.c.bf16 %v3443_v30, %v3443_v30  ;;  %v4225_v35 = vsel %vm4189_vm9, %v4220_v23, %v4224_v38  ;;  %v10976_v23 = vld [vmem:[#allocation2 + $0x28] sm:$0xff]  }
 0x378   : > { %v3836_v50 = vrot.slane %v3834_v40, 6  ;;  %v3839_v17 = vrot.slane %v3837_v11, 7  ;;  %v3816_v20 = vrot.slane %v3814_v41, 6  ;;  %v3819_v26 = vrot.slane %v3817_v62, 7  ;;  %8955 = vmatmul.mubr.msk.bf16.gmra.mrb[4].mxu1 %vm374_vm1, %v4225_v35  ;;  %v10989_v41 = vld [vmem:[#allocation2 + $0x30] sm:$0xff]  }
 0x379   : > { %v3846_v2 = vrot.slane %v3844_v43, 6  ;;  %v3849_v55 = vrot.slane %v3847_v33, 7  ;;  %v3824_v60 = vshrl.u32 %v8249_v45, 16  ;;  %v3827_v12 = vshll.u32 %v8249_v45, 16 }
 0x37a   : > { %v3840_v28 = vor.u32 %v3839_v17, %v3836_v50  ;;  %v3820_v63 = vor.u32 %v3819_v26, %v3816_v20  ;;  %v3232_v42 = vmax.f32 %v3196_v21, 0.0  ;;  %v3194_v53 = vadd.f32 %v10742_v5, %v3154_v39 }
 0x37b   : > { %v10967_v9 = vor.u32 %v3849_v55, %v3846_v2  ;;  %v3826_v10 = vrot.slane %v3824_v60, 6  ;;  %v3829_v14 = vrot.slane %v3827_v12, 7  ;;  %v3197_v15 = vadd.f32 %v10742_v5, %v3157_v24 }
 0x37c   : > { %v3842_v36 = vrot.slane %v3840_v28, 4  ;;  %v3821_v13 = vsel %vm10771_vm8, %v3812_v57, %v3820_v63  ;;  %v3822_v18 = vrot.slane %v3820_v63, 4  ;;  %v3448_v1 = vmul.f32 %v3375_v7, %v3232_v42 }
 0x37d   : > { %4035 = vst.msk [vmem:[#allocation2 + $0x58] sm:$0xf] %vm3458_vm2, %v3821_v13  ;;  %v3852_v19 = vrot.slane %v10967_v9, 4  ;;  %v3830_v46 = vor.u32 %v3829_v14, %v3826_v10  ;;  %v3230_v51 = vmax.f32 %v3194_v53, 0.0  ;;  %v3233_v22 = vmax.f32 %v3197_v15, 0.0  ;;  %v3385_v15 = vpop.permute.xlu0 %3384 }
 0x37e   : > { %v3851_v6 = vsel %vm10771_vm8, %v3842_v36, %v10967_v9  ;;  %v8254_v34 = vpack.c.bf16 %v3448_v1, %v3448_v1  ;;  %v3155_v57 = vmul.f32 %v10738_v3, %v10869_v54  ;;  %v4226_v16 = vshrl.u32 %v10943_v0, 16  ;;  %v3390_v1 = vpop.permute.xlu1 %3389 }
 0x37f   : > { %4038 = vst.msk [vmem:[#allocation2 + $0x64] sm:$0xf] %vm3458_vm2, %v3851_v6  ;;  %v3831_v27 = vsel %vm10771_vm8, %v3822_v18, %v3830_v46  ;;  %v3832_v47 = vrot.slane %v3830_v46, 4  ;;  %v3446_v30 = vmul.f32 %v3365_v31, %v3230_v51  ;;  %v3449_v21 = vmul.f32 %v3380_v25, %v3233_v22  ;;  %v11007_v6 = vld [vmem:[#allocation2 + $0x38] sm:$0xff]  }
 0x380   : > { %4036 = vst.msk [vmem:[#allocation2 + $0x5c] sm:$0xf] %vm3458_vm2, %v3831_v27  ;;  %v3874_v39 = vshrl.u32 %v8254_v34, 16  ;;  %v3877_v24 = vshll.u32 %v8254_v34, 16  ;;  %v3195_v40 = vadd.f32 %v10742_v5, %v3155_v57  ;;  %v4228_v11 = vor.u32 %v4226_v16, %v4224_v38 }
 0x381   : > { %v3841_v54 = vsel %vm10771_vm8, %v3832_v47, %v3840_v28  ;;  %v8252_v62 = vpack.c.bf16 %v3446_v30, %v3446_v30  ;;  %v8255_v43 = vpack.c.bf16 %v3449_v21, %v3449_v21  ;;  %v4230_v33 = vshll.u32 %v10976_v23, 16 }
 0x382   : > { %4037 = vst.msk [vmem:[#allocation2 + $0x60] sm:$0xf] %vm3458_vm2, %v3841_v54  ;;  %v3876_v31 = vrot.slane %v3874_v39, 6  ;;  %v3879_v45 = vrot.slane %v3877_v24, 7  ;;  %v3231_v35 = vmax.f32 %v3195_v40, 0.0  ;;  %v4234_v50 = vshrl.u32 %v10976_v23, 16 }
 0x383   : > { %v3854_v17 = vshrl.u32 %v8252_v62, 16  ;;  %v3857_v20 = vshll.u32 %v8252_v62, 16  ;;  %v3884_v26 = vshrl.u32 %v8255_v43, 16  ;;  %v3887_v38 = vshll.u32 %v8255_v43, 16  ;;  %v11025_v24 = vld [vmem:[#allocation2 + $0x40] sm:$0xff]   ;;  %v3395_v43 = vpop.permute.xlu0 %3394 }
 0x384   : > { %v3880_v2 = vor.u32 %v3879_v45, %v3876_v31  ;;  %v3447_v55 = vmul.f32 %v3370_v49, %v3231_v35  ;;  %v4232_v60 = vrot.slane %v4230_v33, 1  ;;  %v4238_v12 = vshll.u32 %v10989_v41, 16 }
 0x385   : > { %v3856_v28 = vrot.slane %v3854_v17, 6  ;;  %v3859_v63 = vrot.slane %v3857_v20, 7  ;;  %v3886_v42 = vrot.slane %v3884_v26, 6  ;;  %v3889_v53 = vrot.slane %v3887_v38, 7 }
 0x386   : > { %v3882_v7 = vrot.slane %v3880_v2, 4  ;;  %v8253_v9 = vpack.c.bf16 %v3447_v55, %v3447_v55  ;;  %v4233_v10 = vsel %vm4189_vm9, %v4228_v11, %v4232_v60  ;;  %v4236_v14 = vor.u32 %v4234_v50, %v4232_v60  ;;  %v3400_v50 = vpop.permute.xlu1 %3399 }
 0x387   : > { %v3860_v36 = vor.u32 %v3859_v63, %v3856_v28  ;;  %v10998_v13 = vor.u32 %v3889_v53, %v3886_v42  ;;  %8958 = vmatprep.mubr.msk.bf16.mxu1 %vm374_vm1, %v4233_v10  ;;  %v4240_v18 = vrot.slane %v4238_v12, 1  ;;  %v3160_v49 = vmul.f32 %v10877_v44, %v10738_v3 }
 0x388   : > { %v3864_v46 = vshrl.u32 %v8253_v9, 16  ;;  %v3867_v51 = vshll.u32 %v8253_v9, 16  ;;  %v3158_v22 = vmul.f32 %v10738_v3, %v10881_v48  ;;  %v3161_v25 = vmul.f32 %v10886_v59, %v10738_v3 }
 0x389   : > { %v3861_v34 = vsel %vm10771_vm8, %v3852_v19, %v3860_v36  ;;  %v3862_v57 = vrot.slane %v3860_v36, 4  ;;  %v3891_v16 = vsel %vm10771_vm8, %v3882_v7, %v10998_v13  ;;  %v3892_v44 = vrot.slane %v10998_v13, 4 }
 0x38a   : > { %4039 = vst.msk [vmem:[#allocation2 + $0x68] sm:$0xf] %vm3458_vm2, %v3861_v34  ;;  %4042 = vst.msk [vmem:[#allocation2 + $0x74] sm:$0xf] %vm3458_vm2, %v3891_v16  ;;  %v3866_v48 = vrot.slane %v3864_v46, 6  ;;  %v3869_v27 = vrot.slane %v3867_v51, 7  ;;  %v4241_v59 = vsel %vm4189_vm9, %v4236_v14, %v4240_v18  ;;  %v3200_v47 = vadd.f32 %v10742_v5, %v3160_v49  ;;  %v3405_v49 = vpop.permute.xlu0 %3404 }
 0x38b   : > { %8959 = vmatmul.mubr.msk.bf16.gmra.mrb[8].mxu1 %vm374_vm1, %v4241_v59  ;;  %v3198_v19 = vadd.f32 %v10742_v5, %v3158_v22  ;;  %v3201_v30 = vadd.f32 %v10742_v5, %v3161_v25  ;;  %v3159_v21 = vmul.f32 %v10738_v3, %v10890_v58  ;;  %v4242_v39 = vshrl.u32 %v10989_v41, 16 }
 0x38c   : > { %v3870_v40 = vor.u32 %v3869_v27, %v3866_v48  ;;  %v3236_v11 = vmax.f32 %v3200_v47, 0.0  ;;  %v4246_v54 = vshll.u32 %v11007_v6, 16  ;;  %v4250_v62 = vshrl.u32 %v11007_v6, 16 }
 0x38d   : > { %v3234_v33 = vmax.f32 %v3198_v19, 0.0  ;;  %v3237_v31 = vmax.f32 %v3201_v30, 0.0  ;;  %v3199_v45 = vadd.f32 %v10742_v5, %v3159_v21  ;;  %v4244_v35 = vor.u32 %v4242_v39, %v4240_v18  ;;  %v3410_v21 = vpop.permute.xlu1 %3409 }
 0x38e   : > { %v3871_v58 = vsel %vm10771_vm8, %v3862_v57, %v3870_v40  ;;  %v3872_v17 = vrot.slane %v3870_v40, 4  ;;  %v3452_v20 = vmul.f32 %v3395_v43, %v3236_v11  ;;  %v4248_v26 = vrot.slane %v4246_v54, 1 }
 0x38f   : > { %4040 = vst.msk [vmem:[#allocation2 + $0x6c] sm:$0xf] %vm3458_vm2, %v3871_v58  ;;  %v3450_v38 = vmul.f32 %v3385_v15, %v3234_v33  ;;  %v3453_v55 = vmul.f32 %v3400_v50, %v3237_v31  ;;  %v3235_v60 = vmax.f32 %v3199_v45, 0.0  ;;  %v4254_v12 = vshll.u32 %v11025_v24, 16 }
 0x390   : > { %v3881_v28 = vsel %vm10771_vm8, %v3872_v17, %v3880_v2  ;;  %v8258_v63 = vpack.c.bf16 %v3452_v20, %v3452_v20  ;;  %v4249_v42 = vsel %vm4189_vm9, %v4244_v35, %v4248_v26  ;;  %v4252_v53 = vor.u32 %v4250_v62, %v4248_v26  ;;  %v11051_v62 = vld [vmem:[#allocation2 + $0x48] sm:$0xff]   ;;  %v3415_v35 = vpop.permute.xlu0 %3414 }
 0x391   : > { %4041 = vst.msk [vmem:[#allocation2 + $0x70] sm:$0xf] %vm3458_vm2, %v3881_v28  ;;  %v8256_v7 = vpack.c.bf16 %v3450_v38, %v3450_v38  ;;  %v8259_v9 = vpack.c.bf16 %v3453_v55, %v3453_v55  ;;  %v3451_v10 = vmul.f32 %v3390_v1, %v3235_v60  ;;  %8962 = vmatprep.mubr.msk.bf16.mxu1 %vm374_vm1, %v4249_v42  ;;  %v4256_v14 = vrot.slane %v4254_v12, 1 }
 0x392   : > { %v3914_v15 = vshrl.u32 %v8258_v63, 16  ;;  %v3917_v36 = vshll.u32 %v8258_v63, 16  ;;  %v3164_v18 = vmul.f32 %v10906_v32, %v10738_v3  ;;  %v3162_v2 = vmul.f32 %v10738_v3, %v10921_v29 }
 0x393   : > { %v3894_v46 = vshrl.u32 %v8256_v7, 16  ;;  %v3897_v51 = vshll.u32 %v8256_v7, 16  ;;  %v3924_v22 = vshrl.u32 %v8259_v9, 16  ;;  %v3927_v25 = vshll.u32 %v8259_v9, 16  ;;  %v3420_v7 = vpop.permute.xlu1 %3419 }
 0x394   : > { %v3916_v34 = vrot.slane %v3914_v15, 6  ;;  %v3919_v57 = vrot.slane %v3917_v36, 7  ;;  %v8257_v16 = vpack.c.bf16 %v3451_v10, %v3451_v10  ;;  %v4257_v1 = vsel %vm4189_vm9, %v4252_v53, %v4256_v14 }
 0x395   : > { %v3896_v48 = vrot.slane %v3894_v46, 6  ;;  %v3899_v27 = vrot.slane %v3897_v51, 7  ;;  %v3926_v59 = vrot.slane %v3924_v22, 6  ;;  %v3929_v47 = vrot.slane %v3927_v25, 7  ;;  %8963 = vmatmul.mubr.msk.bf16.gmra.mrb[12].mxu1 %vm374_vm1, %v4257_v1 }
 0x396   : > { %v3920_v32 = vor.u32 %v3919_v57, %v3916_v34  ;;  %v3904_v19 = vshrl.u32 %v8257_v16, 16  ;;  %v3907_v30 = vshll.u32 %v8257_v16, 16  ;;  %v3204_v29 = vadd.f32 %v10742_v5, %v3164_v18  ;;  %v11080_v16 = vld [vmem:[#allocation2 + $0x58] sm:$0xff]  }
 0x397   : > { %v3900_v39 = vor.u32 %v3899_v27, %v3896_v48  ;;  %v11046_v40 = vor.u32 %v3929_v47, %v3926_v59  ;;  %v3202_v11 = vadd.f32 %v10742_v5, %v3162_v2  ;;  %v3165_v54 = vmul.f32 %v10929_v52, %v10738_v3  ;;  %v11083_v47 = vld [vmem:[#allocation2 + $0x60] sm:$0xff]  }
 0x398   : > { %v3922_v43 = vrot.slane %v3920_v32, 4  ;;  %v3906_v33 = vrot.slane %v3904_v19, 6  ;;  %v3909_v31 = vrot.slane %v3907_v30, 7  ;;  %v3240_v45 = vmax.f32 %v3204_v29, 0.0 }
 0x399   : > { %v3901_v50 = vsel %vm10771_vm8, %v3892_v44, %v3900_v39  ;;  %v3902_v58 = vrot.slane %v3900_v39, 4  ;;  %v3932_v17 = vrot.slane %v11046_v40, 4  ;;  %v3238_v20 = vmax.f32 %v3202_v11, 0.0 }
 0x39a   : > { %4043 = vst.msk [vmem:[#allocation2 + $0x78] sm:$0xf] %vm3458_vm2, %v3901_v50  ;;  %v3931_v52 = vsel %vm10771_vm8, %v3922_v43, %v11046_v40  ;;  %v3910_v26 = vor.u32 %v3909_v31, %v3906_v33  ;;  %v3456_v38 = vmul.f32 %v3415_v35, %v3240_v45  ;;  %v3205_v55 = vadd.f32 %v10742_v5, %v3165_v54 }
 0x39b   : > { %4046 = vst.msk [vmem:[#allocation2 + $0x84] sm:$0xf] %vm3458_vm2, %v3931_v52  ;;  %v3454_v13 = vmul.f32 %v3405_v49, %v3238_v20  ;;  %v3163_v44 = vmul.f32 %v10738_v3, %v10935_v56  ;;  %v4258_v60 = vshrl.u32 %v11025_v24, 16  ;;  %v4262_v12 = vshll.u32 %v11051_v62, 16  ;;  %v11072_v3 = vld [vmem:[#allocation2 + $0x50] sm:$0xff]   ;;  %v11089_v20 = vld [vmem:[#allocation2 + $0x68] sm:$0xff]  }
 0x39c   : > { %v3911_v28 = vsel %vm10771_vm8, %v3902_v58, %v3910_v26  ;;  %v3912_v63 = vrot.slane %v3910_v26, 4  ;;  %v8262_v42 = vpack.c.bf16 %v3456_v38, %v3456_v38  ;;  %v3241_v53 = vmax.f32 %v3205_v55, 0.0  ;;  %v4053_v26 = vld [vmem:[#allocation2 + $0x98] sm:$0x3] }
 0x39d   : > { %4044 = vst.msk [vmem:[#allocation2 + $0x7c] sm:$0xf] %vm3458_vm2, %v3911_v28  ;;  %v8260_v9 = vpack.c.bf16 %v3454_v13, %v3454_v13  ;;  %v3203_v10 = vadd.f32 %v10742_v5, %v3163_v44  ;;  %v4260_v15 = vor.u32 %v4258_v60, %v4256_v14  ;;  %v4264_v36 = vrot.slane %v4262_v12, 1  ;;  %v11093_v44 = vld [vmem:[#allocation2 + $0x70] sm:$0xff]  }
 0x39e   : > { %v3921_v56 = vsel %vm10771_vm8, %v3912_v63, %v3920_v32  ;;  %v3954_v18 = vshrl.u32 %v8262_v42, 16  ;;  %v3957_v2 = vshll.u32 %v8262_v42, 16  ;;  %v3457_v49 = vmul.f32 %v3420_v7, %v3241_v53 }
 0x39f   : > { %4045 = vst.msk [vmem:[#allocation2 + $0x80] sm:$0xf] %vm3458_vm2, %v3921_v56  ;;  %v3934_v46 = vshrl.u32 %v8260_v9, 16  ;;  %v3937_v51 = vshll.u32 %v8260_v9, 16  ;;  %v3239_v22 = vmax.f32 %v3203_v10, 0.0  ;;  %v4265_v25 = vsel %vm4189_vm9, %v4260_v15, %v4264_v36 }
 0x3a0   : > { %v3956_v34 = vrot.slane %v3954_v18, 6  ;;  %v3959_v57 = vrot.slane %v3957_v2, 7  ;;  %v8263_v5 = vpack.c.bf16 %v3457_v49, %v3457_v49  ;;  %8966 = vmatprep.mubr.msk.bf16.mxu1 %vm374_vm1, %v4265_v25  ;;  %v4266_v14 = vshrl.u32 %v11051_v62, 16 }
 0x3a1   : > { %v3936_v1 = vrot.slane %v3934_v46, 6  ;;  %v3939_v48 = vrot.slane %v3937_v51, 7  ;;  %v3455_v27 = vmul.f32 %v3410_v21, %v3239_v22  ;;  %v4270_v59 = vshll.u32 %v11072_v3, 16 }
 0x3a2   : > { %v3960_v32 = vor.u32 %v3959_v57, %v3956_v34  ;;  %v3964_v19 = vshrl.u32 %v8263_v5, 16  ;;  %v3967_v30 = vshll.u32 %v8263_v5, 16  ;;  %v4268_v29 = vor.u32 %v4266_v14, %v4264_v36 }
 0x3a3   : > { %v3940_v39 = vor.u32 %v3939_v48, %v3936_v1  ;;  %v8261_v40 = vpack.c.bf16 %v3455_v27, %v3455_v27  ;;  %v4272_v11 = vrot.slane %v4270_v59, 1  ;;  %v4274_v54 = vshrl.u32 %v11072_v3, 16 }
 0x3a4   : > { %v3962_v43 = vrot.slane %v3960_v32, 4  ;;  %v3966_v33 = vrot.slane %v3964_v19, 6  ;;  %v3969_v31 = vrot.slane %v3967_v30, 7  ;;  %v4278_v45 = vshll.u32 %v11080_v16, 16  ;;  %v11107_v9 = vld [vmem:[#allocation2 + $0x78] sm:$0xff]  }
 0x3a5   : > { %v3941_v21 = vsel %vm10771_vm8, %v3932_v17, %v3940_v39  ;;  %v3942_v35 = vrot.slane %v3940_v39, 4  ;;  %v3944_v50 = vshrl.u32 %v8261_v40, 16  ;;  %v3947_v58 = vshll.u32 %v8261_v40, 16 }
 0x3a6   : > { %4047 = vst.msk [vmem:[#allocation2 + $0x88] sm:$0xf] %vm3458_vm2, %v3941_v21  ;;  %v3970_v52 = vor.u32 %v3969_v31, %v3966_v33  ;;  %v4273_v38 = vsel %vm4189_vm9, %v4268_v29, %v4272_v11  ;;  %v4276_v55 = vor.u32 %v4274_v54, %v4272_v11  ;;  %v4280_v13 = vrot.slane %v4278_v45, 1  ;;  %v11127_v27 = vld [vmem:[#allocation2 + $0x80] sm:$0xff]  }
 0x3a7   : > { %v3946_v17 = vrot.slane %v3944_v50, 6  ;;  %v3949_v12 = vrot.slane %v3947_v58, 7  ;;  %8967 = vmatmul.mubr.msk.bf16.gmra.mrb[16].mxu1 %vm374_vm1, %v4273_v38  ;;  %v4282_v28 = vshrl.u32 %v11080_v16, 16  ;;  %v4286_v63 = vshll.u32 %v11083_v47, 16 }
 0x3a8   : > { %v3971_v42 = vsel %vm10771_vm8, %v3962_v43, %v3970_v52  ;;  %v3972_v53 = vrot.slane %v3970_v52, 4  ;;  %v4281_v7 = vsel %vm4189_vm9, %v4276_v55, %v4280_v13  ;;  %v4294_v56 = vshll.u32 %v11089_v20, 16 }
 0x3a9   : > { %4050 = vst.msk [vmem:[#allocation2 + $0x94] sm:$0xf] %vm3458_vm2, %v3971_v42  ;;  %v3950_v10 = vor.u32 %v3949_v12, %v3946_v17  ;;  %8970 = vmatprep.mubr.msk.bf16.mxu1 %vm374_vm1, %v4281_v7  ;;  %v4284_v15 = vor.u32 %v4282_v28, %v4280_v13  ;;  %v4288_v36 = vrot.slane %v4286_v63, 1  ;;  %v4290_v2 = vshrl.u32 %v11083_v47, 16  ;;  %v11149_v13 = vld [vmem:[#allocation2 + $0xc] sm:$0xf] }
 0x3aa   : > { %v4054_v18 = vsel %vm11097_vm11, %v3972_v53, %v4053_v26  ;;  %v4302_v51 = vshll.u32 %v11093_v44, 16  ;;  %v4296_v34 = vrot.slane %v4294_v56, 1  ;;  %v4310_v5 = vshll.u32 %v11107_v9, 16  ;;  %v5102_v17 = vld [vmem:[#allocation2 + $0x8] sm:$0xe]  ;;  %v11157_v42 = vld [vmem:[#allocation2 + $0x10] sm:$0xff]  }
 0x3ab   : > { %4055 = vst [vmem:[#allocation2 + $0x98] sm:$0x3] %v4054_v18  ;;  %v3951_v49 = vsel %vm10771_vm8, %v3942_v35, %v3950_v10  ;;  %v3952_v46 = vrot.slane %v3950_v10, 4  ;;  %v4289_v22 = vsel %vm4189_vm9, %v4284_v15, %v4288_v36  ;;  %v4292_v25 = vor.u32 %v4290_v2, %v4288_v36  ;;  %v11159_v53 = vld [vmem:[#allocation2 + $0x18] sm:$0xff]   ;;  %v11162_v10 = vld [vmem:[#allocation2 + $0x20] sm:$0xff]   ;;  %v11164_v15 = vld [vmem:[#allocation2 + $0x28] sm:$0xff]  }
 0x3ac   : > { %4048 = vst.msk [vmem:[#allocation2 + $0x8c] sm:$0xf] %vm3458_vm2, %v3951_v49  ;;  %v4298_v1 = vshrl.u32 %v11089_v20, 16  ;;  %v4304_v48 = vrot.slane %v4302_v51, 1  ;;  %v4306_v19 = vshrl.u32 %v11093_v44, 16  ;;  %v4312_v8 = vrot.slane %v4310_v5, 1 }
 0x3ad   : > { %v3961_v57 = vsel %vm10771_vm8, %v3952_v46, %v3960_v32  ;;  %v4297_v14 = vsel %vm4189_vm9, %v4292_v25, %v4296_v34  ;;  %v4318_v30 = vshll.u32 %v11127_v27, 16  ;;  %v4314_v54 = vshrl.u32 %v11107_v9, 16  ;;  %v11172_v46 = vld [vmem:[#allocation2 + $0x30] sm:$0xff]  }
 0x3ae   : > { %4049 = vst.msk [vmem:[#allocation2 + $0x90] sm:$0xf] %vm3458_vm2, %v3961_v57  ;;  %v4300_v59 = vor.u32 %v4298_v1, %v4296_v34  ;;  %v4308_v32 = vor.u32 %v4306_v19, %v4304_v48  ;;  %v4322_v45 = vshrl.u32 %v11127_v27, 16  ;;  %v11155_v63 = vcombine.low %v5102_v17, %v11149_v13  ;;  %v11184_v19 = vld [vmem:[#allocation2 + $0x40] sm:$0xff]  }
 0x3af   : > { %8971 = vmatmul.mubr.msk.bf16.gmra.mrb[20].mxu1 %vm374_vm1, %v4289_v22  ;;  %v4320_v43 = vrot.slane %v4318_v30, 1  ;;  %v4316_v31 = vor.u32 %v4314_v54, %v4312_v8  ;;  %v5557_v18 = vshrl.u32 %v11157_v42, 16  ;;  %v5560_v2 = vshll.u32 %v11157_v42, 16 }
 0x3b0   : > { %8974 = vmatprep.mubr.msk.bf16.mxu1 %vm374_vm1, %v4297_v14  ;;  %v4305_v39 = vsel %vm4189_vm9, %v4300_v59, %v4304_v48  ;;  %v4313_v40 = vsel %vm4189_vm9, %v4308_v32, %v4312_v8  ;;  %v5549_v36 = vshrl.u32 %v11155_v63, 16  ;;  %v5552_v56 = vshll.u32 %v11155_v63, 16  ;;  %v11179_v14 = vld [vmem:[#allocation2 + $0x38] sm:$0xff]  }
 0x3b1   : > { %v4324_v35 = vor.u32 %v4322_v45, %v4320_v43  ;;  %v4321_v52 = vsel %vm4189_vm9, %v4316_v31, %v4320_v43  ;;  %v4887_v49 = vsel %vm429_vm0, %v10911_v37, 0  ;;  %v5566_v22 = vshrl.u32 %v11159_v53, 16  ;;  %v11188_v43 = vld [vmem:[#allocation2 + $0x48] sm:$0xff]  }
 0x3b2   : > { %v5551_v51 = vrot.slane %v5549_v36, 1  ;;  %v5554_v25 = vrot.slane %v5552_v56, 2  ;;  %v5559_v34 = vrot.slane %v5557_v18, 1  ;;  %v5562_v57 = vrot.slane %v5560_v2, 2  ;;  %v11207_v36 = vld [vmem:[%s12161_s2 + $0x6] sm:$0x3] }
 0x3b3   : > { %v11132_v29 = vld [vmem:[#allocation2 + $0x88] sm:$0xff]   ;;  %v5569_v5 = vshll.u32 %v11159_v53, 16  ;;  %v5568_v1 = vrot.slane %v5566_v22, 1  ;;  %v5575_v37 = vshrl.u32 %v11162_v10, 16  ;;  %v5578_v48 = vshll.u32 %v11162_v10, 16 }
 0x3b4   : > { %v4326_v11 = vshll.u32 %v11132_v29, 16  ;;  %v12165_v50 = vrot.slane %v11132_v29, 1  ;;  %v4330_v60 = vshrl.u32 %v11132_v29, 16  ;;  %v5584_v59 = vshrl.u32 %v11164_v15, 16  ;;  %v11213_v22 = vld [vmem:[#allocation2 + $0x8] sm:$0xff]  }
 0x3b5   : > { %v9915_v33 = vld [vmem:[#allocation2 + $0x90] ss:$0 sps:$4 sm:$0x11]   ;;  %v5555_v8 = vor.u32 %v5554_v25, %v5551_v51  ;;  %v5563_v32 = vor.u32 %v5562_v57, %v5559_v34  ;;  %v5571_v30 = vrot.slane %v5569_v5, 2  ;;  %v5614_v51 = vshll.u32 %v11184_v19, 16  ;;  %v11217_v25 = vld [vmem:[#allocation2 + $0x60] sm:$0xff]  }
 0x3b6   : > { %v4328_v21 = vrot.slane %v4326_v11, 1  ;;  %v4830_v58 = vrot.slane %v9915_v33, 1  ;;  %v4334_v26 = vshll.u32 %v9915_v33, 16  ;;  %v5580_v11 = vrot.slane %v5578_v48, 2  ;;  %v11227_v48 = vld [vmem:[#allocation2 + $0x68] sm:$0xff]  }
 0x3b7   : > { %8975 = vmatmul.mubr.msk.bf16.gmra.mrb[24].mxu1 %vm374_vm1, %v4305_v39  ;;  %v5587_v39 = vshll.u32 %v11164_v15, 16  ;;  %v5586_v54 = vrot.slane %v5584_v59, 1  ;;  %v11191_v33 = vsel %vm5547_vm13, %v5555_v8, %v5563_v32  ;;  %v5572_v31 = vor.u32 %v5571_v30, %v5568_v1  ;;  %12187 = vst [vmem:[#allocation8_spill] sm:$0xff] %v11227_v48 }
 0x3b8   : > { %8978 = vmatprep.mubr.msk.bf16.mxu1 %vm374_vm1, %v4313_v40  ;;  %v4329_v38 = vsel %vm4189_vm9, %v4324_v35, %v4328_v21  ;;  %v11147_v55 = vsel %vm4794_vm12, %v12165_v50, %v4830_v58  ;;  %v4332_v12 = vor.u32 %v4330_v60, %v4328_v21  ;;  %v4336_v28 = vrot.slane %v4334_v26, 1  ;;  %12183 = vst [vmem:[#allocation4_spill] sm:$0xff] %v11191_v33  ;;  %v11194_v35 = vld [vmem:[#allocation2 + $0x50] sm:$0xff]   ;;  %v11198_v60 = vld [vmem:[#allocation2 + $0x58] sm:$0xff]  }
 0x3b9   : > { %v5577_v40 = vrot.slane %v5575_v37, 1  ;;  %v5589_v45 = vrot.slane %v5587_v39, 2  ;;  %v5596_v21 = vshll.u32 %v11172_v46, 16  ;;  %v5602_v26 = vshrl.u32 %v11179_v14, 16  ;;  %v11223_v37 = vld [vmem:[#allocation2 + $0x10] sm:$0xff]  }
 0x3ba   : > { %v4337_v7 = vsel %vm4189_vm9, %v4332_v12, %v4336_v28  ;;  %v11201_v17 = vsel %vm5547_vm13, %v5563_v32, %v5572_v31  ;;  %v5620_v1 = vshrl.u32 %v11188_v43, 16  ;;  %v5616_v8 = vrot.slane %v5614_v51, 2  ;;  %v11252_v51 = vld [vmem:[#allocation2 + $0x80] sm:$0xff]  }
 0x3bb   : > { %v5581_v58 = vor.u32 %v5580_v11, %v5577_v40  ;;  %12184 = vst [vmem:[#allocation5_spill] sm:$0xff] %v11201_v17  ;;  %v5590_v12 = vor.u32 %v5589_v45, %v5586_v54  ;;  %v5598_v28 = vrot.slane %v5596_v21, 2  ;;  %v5604_v18 = vrot.slane %v5602_v26, 1  ;;  %v11238_v54 = vld [vmem:[#allocation2 + $0x70] sm:$0xff]   ;;  %12193 = vst [vmem:[#allocation14_spill] sm:$0xff] %v11252_v51 }
 0x3bc   : > { %v5623_v32 = vshll.u32 %v11188_v43, 16  ;;  %v5629_v30 = vshrl.u32 %v11194_v35, 16  ;;  %v5632_v40 = vshll.u32 %v11194_v35, 16  ;;  %v5638_v11 = vshrl.u32 %v11198_v60, 16  ;;  %12189 = vst [vmem:[#allocation10_spill] sm:$0xff] %v11238_v54 }
 0x3bd   : > { %v11210_v56 = vsel %vm5547_vm13, %v5572_v31, %v5581_v58  ;;  %v11220_v34 = vsel %vm5547_vm13, %v5581_v58, %v5590_v12  ;;  %v5641_v26 = vshll.u32 %v11198_v60, 16  ;;  %vm7194_vm2 = vcmask 1044480  }
 0x3be   : > { %12185 = vst [vmem:[#allocation6_spill] sm:$0xff] %v11210_v56  ;;  %12186 = vst [vmem:[#allocation7_spill] sm:$0xff] %v11220_v34  ;;  %v5625_v45 = vrot.slane %v5623_v32, 2  ;;  %v5631_v21 = vrot.slane %v5629_v30, 1  ;;  %v5634_v58 = vrot.slane %v5632_v40, 2 }
 0x3bf   : > { %8979 = vmatmul.mubr.msk.bf16.gmra.mrb[28].mxu1 %vm374_vm1, %v4321_v52 }
 0x3c0   : > { %8982 = vmatprep.mubr.msk.bf16.mxu1 %vm374_vm1, %v4329_v38  ;;  %v5605_v38 = vshll.u32 %v11179_v14, 16 }
 0x3c2   : > { %v5607_v2 = vrot.slane %v5605_v38, 2  ;;  %v5647_v38 = vshrl.u32 %v11217_v25, 16 }
 0x3c4   : > { %v5608_v59 = vor.u32 %v5607_v2, %v5604_v18  ;;  %v5650_v18 = vshll.u32 %v11217_v25, 16  ;;  %v5656_v2 = vshrl.u32 %v11227_v48, 16 }
 0x3c6   : > { %v5652_v30 = vrot.slane %v5650_v18, 2  ;;  %v5658_v40 = vrot.slane %v5656_v2, 1 }
 0x3c7   : > { %8983 = vmatmul.mubr.msk.bf16.gmra.mrb[32].mxu1 %vm374_vm1, %v4337_v7  ;;  %v5611_v7 = vshrl.u32 %v11184_v19, 16 }
 0x3c8   : > { %8988 = vmatprep.mubr.msk.bf16.mxu1 %vm374_vm1, %v10740_v4  ;;  %v5593_v4 = vshrl.u32 %v11172_v46, 16 }
 0x3c9   : > { %v5613_v5 = vrot.slane %v5611_v7, 1 }
 0x3ca   : > { %v5595_v52 = vrot.slane %v5593_v4, 1 }
 0x3cb   : > { %v5617_v31 = vor.u32 %v5616_v8, %v5613_v5  ;;  %v5643_v5 = vrot.slane %v5641_v26, 2  ;;  %v5659_v8 = vshll.u32 %v11227_v48, 16  ;;  %v5668_v26 = vshll.u32 %v11238_v54, 16 }
 0x3cc   : > { %v5599_v57 = vor.u32 %v5598_v28, %v5595_v52  ;;  %v5640_v52 = vrot.slane %v5638_v11, 1  ;;  %v11259_v11 = vld [vmem:[#allocation2 + $0x18] sm:$0xff]  }
 0x3cd   : > { %v11248_v28 = vsel %vm5547_vm13, %v5608_v59, %v5617_v31 }
 0x3ce   : > { %v11234_v39 = vsel %vm5547_vm13, %v5590_v12, %v5599_v57  ;;  %v11241_v4 = vsel %vm5547_vm13, %v5599_v57, %v5608_v59  ;;  %v11245_v12 = vld [vmem:[#allocation2 + $0x78] sm:$0xff]   ;;  %12192 = vst [vmem:[#allocation13_spill] sm:$0xff] %v11248_v28  ;;  %v5635_v57 = vor.u32 %v5634_v58, %v5631_v21  ;;  %v5665_v59 = vshrl.u32 %v11238_v54, 16 }
 0x3cf   : > { %8989 = vmatmul.mubr.msk.bf16.vlgmr.msra.gmra.mrb[0].mxu1 %vm374_vm1, %v11213_v22  ;;  %12188 = vst [vmem:[#allocation9_spill] sm:$0xff] %v11234_v39  ;;  %12190 = vst [vmem:[#allocation11_spill] sm:$0xff] %v11241_v4  ;;  %v5644_v21 = vor.u32 %v5643_v5, %v5640_v52  ;;  %v5661_v58 = vrot.slane %v5659_v8, 2  ;;  %v5674_v2 = vshrl.u32 %v11245_v12, 16  ;;  %v5677_v50 = vshll.u32 %v11245_v12, 16 }
 0x3d0   : > { %9025 = vmatpush3.bf16.msra.mxu1 %v4887_v49  ;;  %8992 = vmatprep.mubr.msk.bf16.mxu1 %vm374_vm1, %v11223_v37  ;;  %v5622_v49 = vrot.slane %v5620_v1, 1  ;;  %12191 = vst [vmem:[#allocation12_spill] sm:$0xff] %v11245_v12  ;;  %v5649_v1 = vrot.slane %v5647_v38, 1  ;;  %v5667_v18 = vrot.slane %v5665_v59, 1  ;;  %v5683_v52 = vshrl.u32 %v11252_v51, 16 }
 0x3d1   : > { %9878 = vmatprep.subr.msk.bf16.mxu1 %vm429_vm0, %v11207_v36  ;;  %v11276_v61 = vsel %vm5547_vm13, %v5635_v57, %v5644_v21  ;;  %v11279_v5 = vld [vmem:[#allocation2 + $0x98] ss:$0 sps:$4 sm:$0x33]  }
 0x3d2   : > { %v5626_v7 = vor.u32 %v5625_v45, %v5622_v49  ;;  %v11263_v49 = vld [vmem:[#allocation2 + $0x88] sm:$0xff]   ;;  %v5653_v38 = vor.u32 %v5652_v30, %v5649_v1  ;;  %12198 = vst [vmem:[#allocation19_spill] sm:$0xff] %v11276_v61  ;;  %v5686_v1 = vshll.u32 %v11252_v51, 16  ;;  %v5685_v28 = vrot.slane %v5683_v52, 1 }
 0x3d3   : > { %12195 = vst [vmem:[#allocation16_spill] sm:$0xff] %v11263_v49 }
 0x3d4   : > { %v11256_v32 = vsel %vm5547_vm13, %v5617_v31, %v5626_v7  ;;  %v11266_v45 = vsel %vm5547_vm13, %v5626_v7, %v5635_v57  ;;  %v11271_v31 = vld [vmem:[#allocation2 + $0x90] sm:$0xff]   ;;  %v5662_v7 = vor.u32 %v5661_v58, %v5658_v40  ;;  %v11282_v8 = vsel %vm5547_vm13, %v5644_v21, %v5653_v38 }
 0x3d5   : > { %12194 = vst [vmem:[#allocation15_spill] sm:$0xff] %v11256_v32  ;;  %12196 = vst [vmem:[#allocation17_spill] sm:$0xff] %v11266_v45  ;;  %v5670_v45 = vrot.slane %v5668_v26, 2  ;;  %v5679_v32 = vrot.slane %v5677_v50, 2  ;;  %v5692_v57 = vshrl.u32 %v11263_v49, 16  ;;  %v5688_v58 = vrot.slane %v5686_v1, 2 }
 0x3d6   : > { %12197 = vst [vmem:[#allocation18_spill] sm:$0xff] %v11271_v31  ;;  %12199 = vst [vmem:[#allocation20_spill] sm:$0xff] %v11282_v8  ;;  %v11286_v30 = vsel %vm5547_vm13, %v5653_v38, %v5662_v7  ;;  %v5695_v26 = vshll.u32 %v11263_v49, 16  ;;  %v5701_v61 = vshrl.u32 %v11271_v31, 16  ;;  %v5704_v50 = vshll.u32 %v11271_v31, 16 }
 0x3d7   : > { %8993 = vmatmul.mubr.msk.bf16.gmra.mrb[4].mxu1 %vm374_vm1, %v11259_v11  ;;  %12200 = vst [vmem:[#allocation21_spill] sm:$0xff] %v11286_v30  ;;  %v5671_v59 = vor.u32 %v5670_v45, %v5667_v18  ;;  %v5710_v8 = vshrl.u32 %v11279_v5, 16  ;;  %v5689_v45 = vor.u32 %v5688_v58, %v5685_v28  ;;  %v5713_v1 = vshll.u32 %v11279_v5, 16 }
 0x3d8   : > { %8996 = vmatprep.mubr.msk.bf16.mxu1 %vm374_vm1, %v10943_v0  ;;  %v5676_v0 = vrot.slane %v5674_v2, 1  ;;  %v5694_v2 = vrot.slane %v5692_v57, 1  ;;  %v5697_v18 = vrot.slane %v5695_v26, 2  ;;  %v5703_v52 = vrot.slane %v5701_v61, 1 }
 0x3d9   : > { %v11292_v21 = vsel %vm5547_vm13, %v5662_v7, %v5671_v59  ;;  %v5988_v7 = vld [vmem:[#allocation2 + $0x8] sm:$0xc]  ;;  %v5715_v61 = vrot.slane %v5713_v1, 2  ;;  %v5996_v58 = vrot.slane %v11157_v42, 2  ;;  %v6006_v1 = vrot.slane %v11179_v14, 2 }
 0x3da   : > { %v5680_v40 = vor.u32 %v5679_v32, %v5676_v0  ;;  %12201 = vst [vmem:[#allocation22_spill] sm:$0xff] %v11292_v21  ;;  %v5706_v32 = vrot.slane %v5704_v50, 2  ;;  %v5712_v0 = vrot.slane %v5710_v8, 1  ;;  %v5698_v21 = vor.u32 %v5697_v18, %v5694_v2 }
 0x3db   : > { %v6000_v50 = vrot.slane %v11162_v10, 2  ;;  %v6004_v18 = vrot.slane %v11172_v46, 2 }
 0x3dc   : > { %v11297_v38 = vsel %vm5547_vm13, %v5671_v59, %v5680_v40  ;;  %v11305_v57 = vsel %vm5547_vm13, %v5680_v40, %v5689_v45  ;;  %v8129_v59 = vcombine.low %v5988_v7, %v11149_v13  ;;  %v5707_v28 = vor.u32 %v5706_v32, %v5703_v52 }
 0x3dd   : > { %12202 = vst [vmem:[#allocation23_spill] sm:$0xff] %v11297_v38  ;;  %12203 = vst [vmem:[#allocation24_spill] sm:$0xff] %v11305_v57  ;;  %v11311_v8 = vsel %vm5547_vm13, %v5689_v45, %v5698_v21  ;;  %v5716_v2 = vor.u32 %v5715_v61, %v5712_v0  ;;  %v6008_v7 = vrot.slane %v11184_v19, 2  ;;  %v11341_v61 = vsel %vm5994_vm14, %v6004_v18, %v6006_v1  ;;  %v11446_v57 = vld [vmem:[#allocation2 + $0x48] sm:$0xff]  }
 0x3de   : > { %12204 = vst [vmem:[#allocation25_spill] sm:$0xff] %v11311_v8  ;;  %v5995_v26 = vrot.slane %v8129_v59, 2  ;;  %v11316_v40 = vsel %vm5547_vm13, %v5698_v21, %v5707_v28  ;;  %v6010_v59 = vrot.slane %v11188_v43, 2  ;;  %12212 = vst [vmem:[#allocation33_spill] sm:$0xff] %v11341_v61  ;;  %v6811_v39 = vshrl.u32 %v11446_v57, 16 }
 0x3df   : > { %8997 = vmatmul.mubr.msk.bf16.gmra.mrb[8].mxu1 %vm374_vm1, %v10976_v23  ;;  %v5998_v23 = vrot.slane %v11159_v53, 2  ;;  %12205 = vst [vmem:[#allocation26_spill] sm:$0xff] %v11316_v40  ;;  %v11333_v21 = vsel %vm5547_vm13, %v5707_v28, %v5716_v2  ;;  %v11349_v28 = vsel %vm5994_vm14, %v6006_v1, %v6008_v7  ;;  %v6020_v2 = vrot.slane %v11238_v54, 2  ;;  %v11532_v54 = vld [vmem:[#allocation2 + $0xa0] ss:$0 sps:$4 sm:$0x77]  }
 0x3e0   : > { %9000 = vmatprep.mubr.msk.bf16.mxu1 %vm374_vm1, %v10989_v41  ;;  %v6002_v41 = vrot.slane %v11164_v15, 2  ;;  %v11323_v52 = vsel %vm5994_vm14, %v5995_v26, %v5996_v58  ;;  %12210 = vst [vmem:[#allocation31_spill] sm:$0xff] %v11333_v21  ;;  %v6016_v26 = vrot.slane %v11217_v25, 2  ;;  %12213 = vst [vmem:[#allocation34_spill] sm:$0xff] %v11349_v28  ;;  %v6022_v1 = vrot.slane %v11245_v12, 2 }
 0x3e1   : > { %v11319_v13 = vsel %vm5994_vm14, %v5996_v58, %v5998_v23  ;;  %12207 = vst [vmem:[#allocation28_spill] sm:$0xff] %v11323_v52  ;;  %v11326_v45 = vsel %vm5994_vm14, %v5998_v23, %v6000_v50  ;;  %v6012_v58 = vrot.slane %v11194_v35, 2  ;;  %v6014_v23 = vrot.slane %v11198_v60, 2 }
 0x3e2   : > { %12206 = vst [vmem:[#allocation27_spill] sm:$0xff] %v11319_v13  ;;  %12208 = vst [vmem:[#allocation29_spill] sm:$0xff] %v11326_v45  ;;  %v11329_v32 = vsel %vm5994_vm14, %v6000_v50, %v6002_v41  ;;  %v11336_v0 = vsel %vm5994_vm14, %v6002_v41, %v6004_v18  ;;  %v11352_v50 = vsel %vm5994_vm14, %v6008_v7, %v6010_v59  ;;  %v6018_v41 = vrot.slane %v11227_v48, 2  ;;  %v4788_v7 = vld [vmem:[#allocation2] sm:$0xe] }
 0x3e3   : > { %12209 = vst [vmem:[#allocation30_spill] sm:$0xff] %v11329_v32  ;;  %12211 = vst [vmem:[#allocation32_spill] sm:$0xff] %v11336_v0  ;;  %v11359_v18 = vsel %vm5994_vm14, %v6010_v59, %v6012_v58  ;;  %v11362_v61 = vsel %vm5994_vm14, %v6012_v58, %v6014_v23  ;;  %v6026_v59 = vrot.slane %v11263_v49, 2  ;;  %v6028_v58 = vrot.slane %v11271_v31, 2 }
 0x3e4   : > { %12214 = vst [vmem:[#allocation35_spill] sm:$0xff] %v11352_v50  ;;  %12215 = vst [vmem:[#allocation36_spill] sm:$0xff] %v11359_v18  ;;  %v11369_v50 = vsel %vm5994_vm14, %v6016_v26, %v6018_v41  ;;  %v11372_v28 = vsel %vm5994_vm14, %v6018_v41, %v6020_v2  ;;  %v11377_v18 = vsel %vm5994_vm14, %v6020_v2, %v6022_v1  ;;  %v6302_v2 = vld [vmem:[#allocation2 + $0x10] sm:$0xc] }
 0x3e5   : > { %12216 = vst [vmem:[#allocation37_spill] sm:$0xff] %v11362_v61  ;;  %12218 = vst [vmem:[#allocation39_spill] sm:$0xff] %v11369_v50  ;;  %v9961_v50 = vld [vmem:[#allocation2 + $0x4] sm:$0xf] }
 0x3e6   : > { %12219 = vst [vmem:[#allocation40_spill] sm:$0xff] %v11372_v28  ;;  %12220 = vst [vmem:[#allocation41_spill] sm:$0xff] %v11377_v18  ;;  %v8051_v41 = vcombine.low %v4788_v7, %v9961_v50  ;;  %v11388_v28 = vsel %vm5994_vm14, %v6026_v59, %v6028_v58  ;;  %v12168_v50 = vrot.slane %v11259_v11, 1 }
 0x3e7   : > { %9001 = vmatmul.mubr.msk.bf16.gmra.mrb[12].mxu1 %vm374_vm1, %v11007_v6  ;;  %v11365_v6 = vsel %vm5994_vm14, %v6014_v23, %v6016_v26  ;;  %v6030_v23 = vrot.slane %v11279_v5, 2  ;;  %12223 = vst [vmem:[#allocation44_spill] sm:$0xff] %v11388_v28  ;;  %v11431_v28 = vld [vmem:[#allocation2 + $0x38] sm:$0xff]  }
 0x3e8   : > { %9004 = vmatprep.mubr.msk.bf16.mxu1 %vm374_vm1, %v11025_v24  ;;  %12217 = vst [vmem:[#allocation38_spill] sm:$0xff] %v11365_v6  ;;  %v6024_v24 = vrot.slane %v11252_v51, 2  ;;  %v4795_v5 = vrot.slane %v8051_v41, 1  ;;  %v11426_v41 = vld [vmem:[#allocation2 + $0x30] sm:$0xff]  }
 0x3e9   : > { %v11391_v61 = vsel %vm5994_vm14, %v6028_v58, %v6030_v23  ;;  %v11407_v58 = vld [vmem:[#allocation2 + $0x20] sm:$0xff]   ;;  %v6784_v8 = vshrl.u32 %v11426_v41, 16 }
 0x3ea   : > { %v11382_v6 = vsel %vm5994_vm14, %v6022_v1, %v6024_v24  ;;  %v11385_v26 = vsel %vm5994_vm14, %v6024_v24, %v6026_v59  ;;  %12224 = vst [vmem:[#allocation45_spill] sm:$0xff] %v11391_v61  ;;  %v4796_v1 = vrot.slane %v11213_v22, 1  ;;  %v4798_v24 = vrot.slane %v11223_v37, 1  ;;  %v11405_v59 = vld [vmem:[#allocation2 + $0x18] sm:$0xff]  }
 0x3eb   : > { %12221 = vst [vmem:[#allocation42_spill] sm:$0xff] %v11382_v6  ;;  %12222 = vst [vmem:[#allocation43_spill] sm:$0xff] %v11385_v26  ;;  %v11399_v26 = vld [vmem:[#allocation2 + $0x14] sm:$0xf]  ;;  %v11419_v37 = vsel %vm429_vm0, %v11207_v36, 0  ;;  %v6766_v36 = vshrl.u32 %v11407_v58, 16 }
 0x3ec   : > { %v11403_v7 = vcombine.low %v6302_v2, %v11399_v26  ;;  %v11415_v22 = vsel %vm4794_vm12, %v4796_v1, %v4798_v24  ;;  %v11424_v23 = vsel %vm4794_vm12, %v4798_v24, %v12168_v50  ;;  %v6769_v6 = vshll.u32 %v11407_v58, 16  ;;  %v11438_v24 = vld [vmem:[#allocation2 + $0x40] sm:$0xff]  }
 0x3ed   : > { %v6768_v45 = vrot.slane %v6766_v36, 2 }
 0x3ee   : > { %12225 = vst [vmem:[#allocation46_spill] sm:$0xff] %v11403_v7  ;;  %v6749_v2 = vshrl.u32 %v11403_v7, 16  ;;  %v6752_v61 = vshll.u32 %v11403_v7, 16  ;;  %v6771_v13 = vrot.slane %v6769_v6, 3  ;;  %v6796_v6 = vshll.u32 %v11431_v28, 16 }
 0x3ef   : > { %9005 = vmatmul.mubr.msk.bf16.gmra.mrb[16].mxu1 %vm374_vm1, %v11051_v62  ;;  %v11409_v62 = vld [vmem:[#allocation2 + $0x28] sm:$0xff]  }
 0x3f0   : > { %9008 = vmatprep.mubr.msk.bf16.mxu1 %vm374_vm1, %v11072_v3  ;;  %v11412_v3 = vsel %vm4794_vm12, %v4795_v5, %v4796_v1  ;;  %v6757_v5 = vshrl.u32 %v11405_v59, 16  ;;  %v6760_v1 = vshll.u32 %v11405_v59, 16  ;;  %v6751_v50 = vrot.slane %v6749_v2, 2 }
 0x3f1   : > { %v6754_v18 = vrot.slane %v6752_v61, 3  ;;  %v6775_v7 = vshrl.u32 %v11409_v62, 16  ;;  %v6778_v52 = vshll.u32 %v11409_v62, 16  ;;  %v11448_v61 = vld [vmem:[#allocation2 + $0x50] sm:$0xff]  }
 0x3f2   : > { %v6759_v0 = vrot.slane %v6757_v5, 2  ;;  %v6762_v32 = vrot.slane %v6760_v1, 3  ;;  %v6772_v5 = vor.u32 %v6771_v13, %v6768_v45  ;;  %v6786_v1 = vrot.slane %v6784_v8, 2 }
 0x3f3   : > { %v6755_v21 = vor.u32 %v6754_v18, %v6751_v50  ;;  %v6777_v40 = vrot.slane %v6775_v7, 2  ;;  %v6780_v38 = vrot.slane %v6778_v52, 3  ;;  %v6802_v18 = vshrl.u32 %v11438_v24, 16  ;;  %v11453_v50 = vld [vmem:[#allocation2 + $0x58] sm:$0xff]  }
 0x3f4   : > { %v6763_v2 = vor.u32 %v6762_v32, %v6759_v0  ;;  %v6798_v52 = vrot.slane %v6796_v6, 3  ;;  %v6805_v8 = vshll.u32 %v11438_v24, 16  ;;  %v11462_v0 = vld [vmem:[#allocation2 + $0x60] sm:$0xff]  }
 0x3f5   : > { %v6781_v4 = vor.u32 %v6780_v38, %v6777_v40  ;;  %v6804_v45 = vrot.slane %v6802_v18, 2  ;;  %v11472_v38 = vld [vmem:[#allocation2 + $0x68] sm:$0xff]   ;;  %v6829_v18 = vshrl.u32 %v11453_v50, 16  ;;  %v6838_v56 = vshrl.u32 %v11462_v0, 16 }
 0x3f6   : > { %v11456_v7 = vsel %vm6747_vm15, %v6755_v21, %v6763_v2  ;;  %v11459_v30 = vsel %vm6747_vm15, %v6763_v2, %v6772_v5  ;;  %v6814_v21 = vshll.u32 %v11446_v57, 16 }
 0x3f7   : > { %9009 = vmatmul.mubr.msk.bf16.gmra.mrb[20].mxu1 %vm374_vm1, %v11080_v16  ;;  %v6787_v16 = vshll.u32 %v11426_v41, 16  ;;  %12226 = vst [vmem:[#allocation47_spill] sm:$0xff] %v11456_v7  ;;  %12227 = vst [vmem:[#allocation48_spill] sm:$0xff] %v11459_v30  ;;  %v6820_v7 = vshrl.u32 %v11448_v61, 16 }
 0x3f8   : > { %9012 = vmatprep.mubr.msk.bf16.mxu1 %vm374_vm1, %v11083_v47  ;;  %v6793_v47 = vshrl.u32 %v11431_v28, 16 }
 0x3f9   : > { %v6789_v36 = vrot.slane %v6787_v16, 3  ;;  %v11465_v16 = vsel %vm6747_vm15, %v6772_v5, %v6781_v4  ;;  %v6813_v5 = vrot.slane %v6811_v39, 2  ;;  %v6822_v6 = vrot.slane %v6820_v7, 2  ;;  %v11491_v7 = vld [vmem:[#allocation2 + $0x80] sm:$0xff]  }
 0x3fa   : > { %v6795_v32 = vrot.slane %v6793_v47, 2  ;;  %12228 = vst [vmem:[#allocation49_spill] sm:$0xff] %v11465_v16  ;;  %v6807_v47 = vrot.slane %v6805_v8, 3  ;;  %v11481_v16 = vld [vmem:[#allocation2 + $0x70] sm:$0xff]   ;;  %v6841_v39 = vshll.u32 %v11462_v0, 16 }
 0x3fb   : > { %v6790_v13 = vor.u32 %v6789_v36, %v6786_v1  ;;  %v6823_v1 = vshll.u32 %v11448_v61, 16  ;;  %v6816_v36 = vrot.slane %v6814_v21, 3 }
 0x3fc   : > { %v6799_v2 = vor.u32 %v6798_v52, %v6795_v32  ;;  %v6808_v34 = vor.u32 %v6807_v47, %v6804_v45  ;;  %v6832_v32 = vshll.u32 %v11453_v50, 16  ;;  %v11487_v52 = vld [vmem:[#allocation2 + $0x78] sm:$0xff]   ;;  %v6847_v45 = vshrl.u32 %v11472_v38, 16 }
 0x3fd   : > { %v11475_v40 = vsel %vm6747_vm15, %v6781_v4, %v6790_v13  ;;  %v6825_v4 = vrot.slane %v6823_v1, 3  ;;  %v6817_v8 = vor.u32 %v6816_v36, %v6813_v5  ;;  %v6840_v1 = vrot.slane %v6838_v56, 2  ;;  %v11501_v36 = vld [vmem:[#allocation2 + $0x88] sm:$0xff]  }
 0x3fe   : > { %12229 = vst [vmem:[#allocation50_spill] sm:$0xff] %v11475_v40  ;;  %v11484_v30 = vsel %vm6747_vm15, %v6790_v13, %v6799_v2  ;;  %v6831_v40 = vrot.slane %v6829_v18, 2  ;;  %v11494_v21 = vsel %vm6747_vm15, %v6799_v2, %v6808_v34  ;;  %v6834_v13 = vrot.slane %v6832_v32, 3 }
 0x3ff   : > { %9013 = vmatmul.mubr.msk.bf16.gmra.mrb[24].mxu1 %vm374_vm1, %v11089_v20  ;;  %12230 = vst [vmem:[#allocation51_spill] sm:$0xff] %v11484_v30  ;;  %12231 = vst [vmem:[#allocation52_spill] sm:$0xff] %v11494_v21  ;;  %v6826_v17 = vor.u32 %v6825_v4, %v6822_v6  ;;  %v11498_v47 = vsel %vm6747_vm15, %v6808_v34, %v6817_v8  ;;  %v6843_v30 = vrot.slane %v6841_v39, 3  ;;  %v6850_v5 = vshll.u32 %v11472_v38, 16  ;;  %v11507_v6 = vld [vmem:[#allocation2 + $0x90] sm:$0xff]  }
 0x400   : > { %9016 = vmatprep.mubr.msk.bf16.mxu1 %vm374_vm1, %v11093_v44  ;;  %12232 = vst [vmem:[#allocation53_spill] sm:$0xff] %v11498_v47  ;;  %v6835_v33 = vor.u32 %v6834_v13, %v6831_v40  ;;  %v6849_v31 = vrot.slane %v6847_v45, 2  ;;  %v6856_v2 = vshrl.u32 %v11481_v16, 16  ;;  %v6859_v34 = vshll.u32 %v11481_v16, 16 }
 0x401   : > { %v11504_v18 = vsel %vm6747_vm15, %v6817_v8, %v6826_v17  ;;  %v6844_v4 = vor.u32 %v6843_v30, %v6840_v1  ;;  %v6852_v32 = vrot.slane %v6850_v5, 3  ;;  %v6865_v56 = vshrl.u32 %v11487_v52, 16  ;;  %v11520_v30 = vld [vmem:[#allocation2 + $0x98] sm:$0xff]  }
 0x402   : > { %12233 = vst [vmem:[#allocation54_spill] sm:$0xff] %v11504_v18  ;;  %v11514_v39 = vsel %vm6747_vm15, %v6826_v17, %v6835_v33  ;;  %v6858_v8 = vrot.slane %v6856_v2, 2  ;;  %v6868_v40 = vshll.u32 %v11487_v52, 16  ;;  %v6874_v13 = vshrl.u32 %v11491_v7, 16 }
 0x403   : > { %12234 = vst [vmem:[#allocation55_spill] sm:$0xff] %v11514_v39  ;;  %v11523_v45 = vsel %vm6747_vm15, %v6835_v33, %v6844_v4  ;;  %v6853_v1 = vor.u32 %v6852_v32, %v6849_v31  ;;  %v6861_v5 = vrot.slane %v6859_v34, 3  ;;  %v6867_v18 = vrot.slane %v6865_v56, 2 }
 0x404   : > { %12235 = vst [vmem:[#allocation56_spill] sm:$0xff] %v11523_v45  ;;  %v6870_v47 = vrot.slane %v6868_v40, 3  ;;  %v6876_v21 = vrot.slane %v6874_v13, 2  ;;  %v6877_v17 = vshll.u32 %v11491_v7, 16  ;;  %v6883_v2 = vshrl.u32 %v11501_v36, 16 }
 0x405   : > { %v11528_v39 = vsel %vm6747_vm15, %v6844_v4, %v6853_v1  ;;  %v6862_v49 = vor.u32 %v6861_v5, %v6858_v8  ;;  %v6886_v51 = vshll.u32 %v11501_v36, 16  ;;  %v6892_v12 = vshrl.u32 %v11507_v6, 16 }
 0x406   : > { %12236 = vst [vmem:[#allocation57_spill] sm:$0xff] %v11528_v39  ;;  %v6871_v33 = vor.u32 %v6870_v47, %v6867_v18  ;;  %v6879_v31 = vrot.slane %v6877_v17, 3  ;;  %v6885_v32 = vrot.slane %v6883_v2, 2  ;;  %v6895_v34 = vshll.u32 %v11507_v6, 16  ;;  %v7188_v39 = vld [vmem:[#allocation2 + $0x10] sm:$0x8] }
 0x407   : > { %9017 = vmatmul.mubr.msk.bf16.gmra.mrb[28].mxu1 %vm374_vm1, %v11107_v9  ;;  %v11536_v56 = vsel %vm6747_vm15, %v6853_v1, %v6862_v49  ;;  %v6888_v40 = vrot.slane %v6886_v51, 3  ;;  %v6894_v13 = vrot.slane %v6892_v12, 2  ;;  %v6901_v4 = vshrl.u32 %v11520_v30, 16 }
 0x408   : > { %9020 = vmatprep.mubr.msk.bf16.mxu1 %vm374_vm1, %v11127_v27  ;;  %v11540_v8 = vsel %vm6747_vm15, %v6862_v49, %v6871_v33  ;;  %v6880_v5 = vor.u32 %v6879_v31, %v6876_v21  ;;  %v6897_v45 = vrot.slane %v6895_v34, 3  ;;  %v6904_v48 = vshll.u32 %v11520_v30, 16 }
 0x409   : > { %v6889_v47 = vor.u32 %v6888_v40, %v6885_v32  ;;  %v6903_v18 = vrot.slane %v6901_v4, 2  ;;  %v6910_v17 = vshrl.u32 %v11532_v54, 16  ;;  %v6913_v2 = vshll.u32 %v11532_v54, 16 }
 0x40a   : > { %v11548_v12 = vsel %vm6747_vm15, %v6871_v33, %v6880_v5  ;;  %v6898_v51 = vor.u32 %v6897_v45, %v6894_v13  ;;  %v6906_v1 = vrot.slane %v6904_v48, 3  ;;  %v8207_v49 = vcombine.low %v7188_v39, %v11399_v26 }
 0x40b   : > { %v11554_v21 = vsel %vm6747_vm15, %v6880_v5, %v6889_v47  ;;  %v6912_v31 = vrot.slane %v6910_v17, 2  ;;  %v6915_v32 = vrot.slane %v6913_v2, 3  ;;  %v7196_v33 = vrot.slane %v11405_v59, 3 }
 0x40c   : > { %v11557_v34 = vsel %vm6747_vm15, %v6889_v47, %v6898_v51  ;;  %v6907_v40 = vor.u32 %v6906_v1, %v6903_v18  ;;  %v7195_v4 = vrot.slane %v8207_v49, 3  ;;  %v7198_v48 = vrot.slane %v11407_v58, 3 }
 0x40d   : > { %v6916_v45 = vor.u32 %v6915_v32, %v6912_v31  ;;  %v7200_v26 = vrot.slane %v11409_v62, 3  ;;  %v7204_v5 = vrot.slane %v11431_v28, 3  ;;  %v7206_v47 = vrot.slane %v11438_v24, 3 }
 0x40e   : > { %v11564_v39 = vsel %vm6747_vm15, %v6898_v51, %v6907_v40  ;;  %v11567_v13 = vsel %vm7194_vm2, %v7195_v4, %v7196_v33  ;;  %v11575_v17 = vsel %vm7194_vm2, %v7196_v33, %v7198_v48  ;;  %v7208_v31 = vrot.slane %v11446_v57, 3 }
 0x40f   : > { %9021 = vmatmul.mubr.msk.bf16.gmra.mrb[32].mxu1 %vm374_vm1, %v11132_v29  ;;  %v11572_v18 = vsel %vm6747_vm15, %v6907_v40, %v6916_v45  ;;  %v11578_v2 = vsel %vm7194_vm2, %v7198_v48, %v7200_v26  ;;  %v11587_v49 = vsel %vm7194_vm2, %v7204_v5, %v7206_v47  ;;  %v7210_v32 = vrot.slane %v11448_v61, 3  ;;  %v11594_v40 = vld [vmem:[%s12161_s2 + $0x8] sm:$0x3] }
 0x410   : > { %9026 = vmatprep.mubr.msk.bf16.mxu1 %vm374_vm1, %v11412_v3  ;;  %v7202_v3 = vrot.slane %v11426_v41, 3  ;;  %12238 = vst [vmem:[#allocation59_spill] sm:$0xff] %v11587_v49  ;;  %v7212_v4 = vrot.slane %v11453_v50, 3  ;;  %v7214_v33 = vrot.slane %v11462_v0, 3  ;;  %v7216_v45 = vrot.slane %v11472_v38, 3 }
 0x411   : > { %v7218_v48 = vrot.slane %v11481_v16, 3  ;;  %v7222_v49 = vrot.slane %v11491_v7, 3 }
 0x412   : > { %v11581_v1 = vsel %vm7194_vm2, %v7200_v26, %v7202_v3  ;;  %v11584_v51 = vsel %vm7194_vm2, %v7202_v3, %v7204_v5  ;;  %v11603_v26 = vsel %vm7194_vm2, %v7206_v47, %v7208_v31  ;;  %v11606_v3 = vsel %vm7194_vm2, %v7208_v31, %v7210_v32 }
 0x413   : > { %12237 = vst [vmem:[#allocation58_spill] sm:$0xff] %v11584_v51  ;;  %12239 = vst [vmem:[#allocation60_spill] sm:$0xff] %v11603_v26  ;;  %v7220_v5 = vrot.slane %v11487_v52, 3  ;;  %v11614_v51 = vsel %vm7194_vm2, %v7210_v32, %v7212_v4  ;;  %v11620_v47 = vsel %vm7194_vm2, %v7214_v33, %v7216_v45  ;;  %v7224_v31 = vrot.slane %v11501_v36, 3  ;;  %v9963_v26 = vld [vmem:[#allocation2 + $0x28] sm:$0xff]  }
 0x414   : > { %12240 = vst [vmem:[#allocation61_spill] sm:$0xff] %v11606_v3  ;;  %12241 = vst [vmem:[#allocation62_spill] sm:$0xff] %v11614_v51  ;;  %v11626_v3 = vsel %vm7194_vm2, %v7216_v45, %v7218_v48  ;;  %v7226_v32 = vrot.slane %v11507_v6, 3  ;;  %v7230_v51 = vrot.slane %v11532_v54, 3  ;;  %v4804_v45 = vrot.slane %v9963_v26, 1  ;;  %v9964_v54 = vld [vmem:[#allocation2 + $0x30] sm:$0xff]  }
 0x415   : > { %12243 = vst [vmem:[#allocation64_spill] sm:$0xff] %v11620_v47  ;;  %12244 = vst [vmem:[#allocation65_spill] sm:$0xff] %v11626_v3  ;;  %v7228_v47 = vrot.slane %v11520_v30, 3  ;;  %v4806_v26 = vrot.slane %v9964_v54, 1  ;;  %v9968_v54 = vld [vmem:[#allocation2 + $0x50] sm:$0xff]  }
 0x416   : > { %v11641_v3 = vsel %vm7194_vm2, %v7224_v31, %v7226_v32 }
 0x417   : > { %9027 = vmatmul.mubr.msk.bf16.vlgmr.msra.gmra.mrb[0].mxu1 %vm374_vm1, %v11415_v22  ;;  %v11617_v22 = vsel %vm7194_vm2, %v7212_v4, %v7214_v33  ;;  %v9962_v4 = vld [vmem:[#allocation2 + $0x20] sm:$0xff]   ;;  %v11636_v33 = vsel %vm7194_vm2, %v7222_v49, %v7224_v31  ;;  %12246 = vst [vmem:[#allocation67_spill] sm:$0xff] %v11641_v3  ;;  %v9965_v31 = vld [vmem:[#allocation2 + $0x38] sm:$0xff]  }
 0x418   : > { %9063 = vmatpush3.bf16.msra.mxu1 %v11419_v37  ;;  %9030 = vmatprep.mubr.msk.bf16.mxu1 %vm374_vm1, %v11424_v23  ;;  %12242 = vst [vmem:[#allocation63_spill] sm:$0xff] %v11617_v22  ;;  %v11629_v37 = vsel %vm7194_vm2, %v7218_v48, %v7220_v5  ;;  %v11632_v23 = vsel %vm7194_vm2, %v7220_v5, %v7222_v49  ;;  %v4802_v22 = vrot.slane %v9962_v4, 1  ;;  %12245 = vst [vmem:[#allocation66_spill] sm:$0xff] %v11636_v33 }
 0x419   : > { %9879 = vmatprep.subr.msk.bf16.mxu1 %vm429_vm0, %v11594_v40  ;;  %v11644_v48 = vsel %vm7194_vm2, %v7226_v32, %v7228_v47  ;;  %v11647_v5 = vsel %vm7194_vm2, %v7228_v47, %v7230_v51  ;;  %v12247_v4 = vrot.slane %v11259_v11, 1  ;;  %v4808_v3 = vrot.slane %v9965_v31, 1  ;;  %v9966_v11 = vld [vmem:[#allocation2 + $0x40] sm:$0xff]   ;;  %v9969_v31 = vld [vmem:[#allocation2 + $0x58] sm:$0xff]  }
 0x41a   : > { %v4805_v33 = vsel %vm4794_vm12, %v4802_v22, %v4804_v45  ;;  %v4807_v32 = vsel %vm4794_vm12, %v4804_v45, %v4806_v26  ;;  %v4810_v47 = vrot.slane %v9966_v11, 1  ;;  %v4814_v45 = vrot.slane %v9968_v54, 1  ;;  %v9970_v11 = vld [vmem:[#allocation2 + $0x60] sm:$0xff]  }
 0x41b   : > { %v4803_v49 = vsel %vm4794_vm12, %v12247_v4, %v4802_v22  ;;  %v4809_v51 = vsel %vm4794_vm12, %v4806_v26, %v4808_v3  ;;  %v9967_v4 = vld [vmem:[#allocation2 + $0x48] sm:$0xff]  }
 0x41c   : > { %v4811_v22 = vsel %vm4794_vm12, %v4808_v3, %v4810_v47  ;;  %v4818_v3 = vrot.slane %v9970_v11, 1  ;;  %v5239_v11 = vrot.slane %v11162_v10, 1 }
 0x41f   : > { %9031 = vmatmul.mubr.msk.bf16.gmra.mrb[4].mxu1 %vm374_vm1, %v4803_v49  ;;  %v4812_v49 = vrot.slane %v9967_v4, 1  ;;  %v4820_v4 = vrot.slane %v11089_v20, 1  ;;  %v4826_v20 = vrot.slane %v11127_v27, 1  ;;  %v5237_v27 = vrot.slane %v11159_v53, 1 }
 0x420   : > { %9034 = vmatprep.mubr.msk.bf16.mxu1 %vm374_vm1, %v4805_v33  ;;  %v5243_v53 = vrot.slane %v11172_v46, 1  ;;  %v5249_v46 = vrot.slane %v11188_v43, 1 }
 0x421   : > { %v4813_v33 = vsel %vm4794_vm12, %v4810_v47, %v4812_v49  ;;  %v4815_v26 = vsel %vm4794_vm12, %v4812_v49, %v4814_v45  ;;  %v4822_v49 = vrot.slane %v11093_v44, 1 }
 0x423   : > { %v4823_v54 = vsel %vm4794_vm12, %v4820_v4, %v4822_v49 }
 0x427   : > { %9035 = vmatmul.mubr.msk.bf16.gmra.mrb[8].mxu1 %vm374_vm1, %v4807_v32  ;;  %v4816_v32 = vrot.slane %v9969_v31, 1 }
 0x428   : > { %9038 = vmatprep.mubr.msk.bf16.mxu1 %vm374_vm1, %v4809_v51 }
 0x429   : > { %v4817_v51 = vsel %vm4794_vm12, %v4814_v45, %v4816_v32  ;;  %v4819_v47 = vsel %vm4794_vm12, %v4816_v32, %v4818_v3  ;;  %v12248_v32 = vrot.slane %v11132_v29, 1  ;;  %v5773_v29 = vsel %vm429_vm0, %v11594_v40, 0 }
 0x42b   : > { %v4829_v44 = vsel %vm4794_vm12, %v4826_v20, %v12248_v32 }
 0x42f   : > { %9039 = vmatmul.mubr.msk.bf16.gmra.mrb[12].mxu1 %vm374_vm1, %v4811_v22  ;;  %v4821_v22 = vsel %vm4794_vm12, %v4818_v3, %v4820_v4  ;;  %v5245_v4 = vrot.slane %v11179_v14, 1 }
 0x430   : > { %9042 = vmatprep.mubr.msk.bf16.mxu1 %vm374_vm1, %v4813_v33  ;;  %v4824_v33 = vrot.slane %v11107_v9, 1  ;;  %v5234_v9 = vrot.slane %v11155_v63, 1  ;;  %v8128_v63 = vld [vmem:[%s12161_s2 + $0xa] sm:$0x3] }
 0x432   : > { %v4825_v45 = vsel %vm4794_vm12, %v4822_v49, %v4824_v33  ;;  %v4827_v31 = vsel %vm4794_vm12, %v4824_v33, %v4826_v20  ;;  %v5251_v49 = vrot.slane %v11194_v35, 1  ;;  %v12249_v35 = vld [vmem:[#allocation8_spill] sm:$0xff] }
 0x433   : > { %v5257_v20 = vrot.slane %v12249_v35, 1  ;;  %v12264_v35 = vld [vmem:[#allocation19_spill] sm:$0xff] }
 0x434   : > { %v5252_v14 = vsel %vm4794_vm12, %v5249_v46, %v5251_v49 }
 0x437   : > { %9043 = vmatmul.mubr.msk.bf16.gmra.mrb[16].mxu1 %vm374_vm1, %v4815_v26  ;;  %v5235_v26 = vrot.slane %v11157_v42, 1  ;;  %v5241_v42 = vrot.slane %v11164_v15, 1 }
 0x438   : > { %9046 = vmatprep.mubr.msk.bf16.mxu1 %vm374_vm1, %v4817_v51 }
 0x439   : > { %v5236_v51 = vsel %vm4794_vm12, %v5234_v9, %v5235_v26  ;;  %v5238_v3 = vsel %vm4794_vm12, %v5235_v26, %v5237_v27  ;;  %v5242_v10 = vsel %vm4794_vm12, %v5239_v11, %v5241_v42  ;;  %v5244_v40 = vsel %vm4794_vm12, %v5241_v42, %v5243_v53  ;;  %v12252_v26 = vld [vmem:[#allocation14_spill] sm:$0xff] }
 0x43f   : > { %9047 = vmatmul.mubr.msk.bf16.gmra.mrb[20].mxu1 %vm374_vm1, %v4819_v47  ;;  %v5247_v47 = vrot.slane %v11184_v19, 1  ;;  %v5253_v19 = vrot.slane %v11198_v60, 1 }
 0x440   : > { %9050 = vmatprep.mubr.msk.bf16.mxu1 %vm374_vm1, %v4821_v22  ;;  %v5246_v22 = vsel %vm4794_vm12, %v5243_v53, %v5245_v4 }
 0x441   : > { %v5248_v15 = vsel %vm4794_vm12, %v5245_v4, %v5247_v47  ;;  %v5250_v33 = vsel %vm4794_vm12, %v5247_v47, %v5249_v46  ;;  %v8148_v46 = vld [vmem:[%s12161_s2 + $0xc] sm:$0x3] }
 0x447   : > { %9051 = vmatmul.mubr.msk.bf16.gmra.mrb[24].mxu1 %vm374_vm1, %v4823_v54  ;;  %v5255_v54 = vrot.slane %v11217_v25, 1  ;;  %v12251_v25 = vld [vmem:[#allocation12_spill] sm:$0xff] }
 0x448   : > { %9054 = vmatprep.mubr.msk.bf16.mxu1 %vm374_vm1, %v4825_v45  ;;  %v5254_v45 = vsel %vm4794_vm12, %v5251_v49, %v5253_v19  ;;  %v5261_v9 = vrot.slane %v12251_v25, 1  ;;  %v12256_v49 = vld [vmem:[#allocation5_spill] sm:$0xff] }
 0x449   : > { %v5256_v43 = vsel %vm4794_vm12, %v5253_v19, %v5255_v54  ;;  %v12259_v19 = vld [vmem:[#allocation9_spill] sm:$0xff] }
 0x44a   : > { %v12270_v25 = vld [vmem:[#allocation25_spill] sm:$0xff] }
 0x44f   : > { %9055 = vmatmul.mubr.msk.bf16.gmra.mrb[28].mxu1 %vm374_vm1, %v4827_v31  ;;  %v12250_v31 = vld [vmem:[#allocation10_spill] sm:$0xff] }
 0x450   : > { %9058 = vmatprep.mubr.msk.bf16.mxu1 %vm374_vm1, %v4829_v44  ;;  %v5259_v32 = vrot.slane %v12250_v31, 1  ;;  %v5258_v44 = vsel %vm4794_vm12, %v5255_v54, %v5257_v20  ;;  %v12261_v54 = vld [vmem:[#allocation13_spill] sm:$0xff] }
 0x451   : > { %v12266_v31 = vld [vmem:[#allocation21_spill] sm:$0xff] }
 0x452   : > { %v5260_v60 = vsel %vm4794_vm12, %v5257_v20, %v5259_v32  ;;  %v12265_v20 = vld [vmem:[#allocation20_spill] sm:$0xff] }
 0x457   : > { %9059 = vmatmul.mubr.msk.bf16.gmra.mrb[32].mxu1 %vm374_vm1, %v11147_v55  ;;  %v5240_v55 = vsel %vm4794_vm12, %v5237_v27, %v5239_v11  ;;  %v5262_v27 = vsel %vm4794_vm12, %v5259_v32, %v5261_v9  ;;  %v12267_v32 = vld [vmem:[#allocation22_spill] sm:$0xff] }
 0x458   : > { %9064 = vmatprep.mubr.msk.bf16.mxu1 %vm374_vm1, %v5236_v51  ;;  %v5263_v51 = vrot.slane %v12252_v26, 1  ;;  %v12272_v26 = vld [vmem:[#allocation31_spill] sm:$0xff] }
 0x45a   : > { %v5264_v11 = vsel %vm4794_vm12, %v5261_v9, %v5263_v51  ;;  %v12271_v9 = vld [vmem:[#allocation26_spill] sm:$0xff] }
 0x45f   : > { %9065 = vmatmul.mubr.msk.bf16.vlgmr.msra.gmra.mrb[0].mxu1 %vm374_vm1, %v5238_v3 }
 0x460   : > { %9101 = vmatpush3.bf16.msra.mxu1 %v5773_v29  ;;  %9068 = vmatprep.mubr.msk.bf16.mxu1 %vm374_vm1, %v5240_v55  ;;  %v12253_v29 = vld [vmem:[#allocation16_spill] sm:$0xff]  ;;  %v12254_v55 = vld [vmem:[#allocation18_spill] sm:$0xff] }
 0x461   : > { %9880 = vmatprep.subr.msk.bf16.mxu1 %vm429_vm0, %v8128_v63  ;;  %v5265_v3 = vrot.slane %v12253_v29, 1  ;;  %v5267_v42 = vrot.slane %v12254_v55, 1  ;;  %v12274_v29 = vld [vmem:[#allocation27_spill] sm:$0xff]  ;;  %v12276_v55 = vld [vmem:[#allocation30_spill] sm:$0xff] }
 0x463   : > { %v5266_v53 = vsel %vm4794_vm12, %v5263_v51, %v5265_v3  ;;  %v12273_v51 = vld [vmem:[#allocation28_spill] sm:$0xff] }
 0x467   : > { %9069 = vmatmul.mubr.msk.bf16.gmra.mrb[4].mxu1 %vm374_vm1, %v5242_v10  ;;  %v9934_v10 = vld [vmem:[#allocation2 + $0x98] ss:$0 sps:$4 sm:$0x11]  }
 0x468   : > { %9072 = vmatprep.mubr.msk.bf16.mxu1 %vm374_vm1, %v5244_v40  ;;  %v5268_v40 = vsel %vm4794_vm12, %v5265_v3, %v5267_v42  ;;  %v5269_v4 = vrot.slane %v9934_v10, 1  ;;  %v12275_v3 = vld [vmem:[#allocation29_spill] sm:$0xff]  ;;  %v12279_v10 = vld [vmem:[#allocation34_spill] sm:$0xff] }
 0x46a   : > { %v5270_v47 = vsel %vm4794_vm12, %v5267_v42, %v5269_v4  ;;  %v12277_v42 = vld [vmem:[#allocation32_spill] sm:$0xff] }
 0x46b   : > { %v12281_v4 = vld [vmem:[#allocation36_spill] sm:$0xff] }
 0x46f   : > { %9073 = vmatmul.mubr.msk.bf16.gmra.mrb[8].mxu1 %vm374_vm1, %v5246_v22  ;;  %v12255_v22 = vld [vmem:[#allocation4_spill] sm:$0xff] }
 0x470   : > { %9076 = vmatprep.mubr.msk.bf16.mxu1 %vm374_vm1, %v5248_v15  ;;  %v6087_v15 = vsel %vm429_vm0, %v8128_v63, 0  ;;  %v12260_v63 = vld [vmem:[#allocation11_spill] sm:$0xff] }
 0x477   : > { %9077 = vmatmul.mubr.msk.bf16.gmra.mrb[12].mxu1 %vm374_vm1, %v5250_v33  ;;  %v12257_v33 = vld [vmem:[#allocation6_spill] sm:$0xff] }
 0x478   : > { %9080 = vmatprep.mubr.msk.bf16.mxu1 %vm374_vm1, %v5252_v14  ;;  %v12258_v14 = vld [vmem:[#allocation7_spill] sm:$0xff] }
 0x47f   : > { %9081 = vmatmul.mubr.msk.bf16.gmra.mrb[16].mxu1 %vm374_vm1, %v5254_v45  ;;  %v12262_v45 = vld [vmem:[#allocation15_spill] sm:$0xff] }
 0x480   : > { %9084 = vmatprep.mubr.msk.bf16.mxu1 %vm374_vm1, %v5256_v43  ;;  %v12263_v43 = vld [vmem:[#allocation17_spill] sm:$0xff] }
 0x487   : > { %9085 = vmatmul.mubr.msk.bf16.gmra.mrb[20].mxu1 %vm374_vm1, %v5258_v44  ;;  %v12268_v44 = vld [vmem:[#allocation23_spill] sm:$0xff] }
 0x488   : > { %9088 = vmatprep.mubr.msk.bf16.mxu1 %vm374_vm1, %v5260_v60  ;;  %v12269_v60 = vld [vmem:[#allocation24_spill] sm:$0xff] }
 0x48f   : > { %9089 = vmatmul.mubr.msk.bf16.gmra.mrb[24].mxu1 %vm374_vm1, %v5262_v27  ;;  %v6526_v27 = vsel %vm429_vm0, %v8148_v46, 0 }
 0x490   : > { %9092 = vmatprep.mubr.msk.bf16.mxu1 %vm374_vm1, %v5264_v11  ;;  %v8186_v11 = vld [vmem:[%s12161_s2 + $0xe] sm:$0x3] }
 0x497   : > { %9093 = vmatmul.mubr.msk.bf16.gmra.mrb[28].mxu1 %vm374_vm1, %v5266_v53  ;;  %v12278_v53 = vld [vmem:[#allocation33_spill] sm:$0xff] }
 0x498   : > { %9096 = vmatprep.mubr.msk.bf16.mxu1 %vm374_vm1, %v5268_v40  ;;  %v12280_v40 = vld [vmem:[#allocation35_spill] sm:$0xff] }
 0x49f   : > { %9097 = vmatmul.mubr.msk.bf16.gmra.mrb[32].mxu1 %vm374_vm1, %v5270_v47  ;;  %v12282_v47 = vld [vmem:[#allocation37_spill] sm:$0xff] }
 0x4a0   : > { %9102 = vmatprep.mubr.msk.bf16.mxu1 %vm374_vm1, %v12255_v22  ;;  %v12283_v22 = vld [vmem:[#allocation38_spill] sm:$0xff] }
 0x4a7   : > { %9103 = vmatmul.mubr.msk.bf16.vlgmr.msra.gmra.mrb[0].mxu1 %vm374_vm1, %v12256_v49  ;;  %v12286_v49 = vld [vmem:[#allocation41_spill] sm:$0xff] }
 0x4a8   : > { %9139 = vmatpush3.bf16.msra.mxu1 %v6087_v15  ;;  %9106 = vmatprep.mubr.msk.bf16.mxu1 %vm374_vm1, %v12257_v33  ;;  %v12284_v15 = vld [vmem:[#allocation39_spill] sm:$0xff]  ;;  %v12287_v33 = vld [vmem:[#allocation42_spill] sm:$0xff] }
 0x4a9   : > { %9881 = vmatprep.subr.msk.bf16.mxu1 %vm429_vm0, %v8148_v46  ;;  %v12285_v46 = vld [vmem:[#allocation40_spill] sm:$0xff] }
 0x4af   : > { %9107 = vmatmul.mubr.msk.bf16.gmra.mrb[4].mxu1 %vm374_vm1, %v12258_v14  ;;  %v12288_v14 = vld [vmem:[#allocation43_spill] sm:$0xff] }
 0x4b0   : > { %9110 = vmatprep.mubr.msk.bf16.mxu1 %vm374_vm1, %v12259_v19  ;;  %v12289_v19 = vld [vmem:[#allocation44_spill] sm:$0xff] }
 0x4b7   : > { %9111 = vmatmul.mubr.msk.bf16.gmra.mrb[8].mxu1 %vm374_vm1, %v12260_v63  ;;  %v6435_v63 = vrot.slane %v11405_v59, 2  ;;  %v8206_v59 = vld [vmem:[%s12161_s2 + $0x10] sm:$0x3] }
 0x4b8   : > { %9114 = vmatprep.mubr.msk.bf16.mxu1 %vm374_vm1, %v12261_v54  ;;  %v12290_v54 = vld [vmem:[#allocation46_spill] sm:$0xff] }
 0x4bf   : > { %9115 = vmatmul.mubr.msk.bf16.gmra.mrb[12].mxu1 %vm374_vm1, %v12262_v45  ;;  %v6434_v45 = vrot.slane %v12290_v54, 2  ;;  %v12299_v54 = vld [vmem:[#allocation54_spill] sm:$0xff] }
 0x4c0   : > { %9118 = vmatprep.mubr.msk.bf16.mxu1 %vm374_vm1, %v12263_v43  ;;  %v12291_v43 = vld [vmem:[#allocation45_spill] sm:$0xff] }
 0x4c7   : > { %9119 = vmatmul.mubr.msk.bf16.gmra.mrb[16].mxu1 %vm374_vm1, %v12264_v35  ;;  %v6436_v35 = vsel %vm5994_vm14, %v6434_v45, %v6435_v63  ;;  %v12300_v45 = vld [vmem:[#allocation55_spill] sm:$0xff] }
 0x4c8   : > { %9122 = vmatprep.mubr.msk.bf16.mxu1 %vm374_vm1, %v12265_v20  ;;  %v6437_v20 = vrot.slane %v11407_v58, 2  ;;  %v6441_v58 = vrot.slane %v11426_v41, 2 }
 0x4cf   : > { %9123 = vmatmul.mubr.msk.bf16.gmra.mrb[20].mxu1 %vm374_vm1, %v12266_v31  ;;  %v6439_v31 = vrot.slane %v11409_v62, 2  ;;  %v6443_v62 = vrot.slane %v11431_v28, 2  ;;  %v6449_v28 = vrot.slane %v11448_v61, 2 }
 0x4d0   : > { %9126 = vmatprep.mubr.msk.bf16.mxu1 %vm374_vm1, %v12267_v32  ;;  %v6973_v32 = vsel %vm429_vm0, %v8186_v11, 0 }
 0x4d7   : > { %9127 = vmatmul.mubr.msk.bf16.gmra.mrb[24].mxu1 %vm374_vm1, %v12268_v44  ;;  %v6438_v44 = vsel %vm5994_vm14, %v6435_v63, %v6437_v20  ;;  %v12298_v63 = vld [vmem:[#allocation53_spill] sm:$0xff] }
 0x4d8   : > { %9130 = vmatprep.mubr.msk.bf16.mxu1 %vm374_vm1, %v12269_v60  ;;  %v6440_v60 = vsel %vm5994_vm14, %v6437_v20, %v6439_v31 }
 0x4df   : > { %9131 = vmatmul.mubr.msk.bf16.gmra.mrb[28].mxu1 %vm374_vm1, %v12270_v25  ;;  %v6442_v25 = vsel %vm5994_vm14, %v6439_v31, %v6441_v58 }
 0x4e0   : > { %9134 = vmatprep.mubr.msk.bf16.mxu1 %vm374_vm1, %v12271_v9  ;;  %v6444_v9 = vsel %vm5994_vm14, %v6441_v58, %v6443_v62 }
 0x4e7   : > { %9135 = vmatmul.mubr.msk.bf16.gmra.mrb[32].mxu1 %vm374_vm1, %v12272_v26  ;;  %v6445_v26 = vrot.slane %v11438_v24, 2 }
 0x4e8   : > { %9140 = vmatprep.mubr.msk.bf16.mxu1 %vm374_vm1, %v12273_v51  ;;  %v6447_v51 = vrot.slane %v11446_v57, 2  ;;  %v6453_v57 = vrot.slane %v11462_v0, 2 }
 0x4ea   : > { %v6448_v41 = vsel %vm5994_vm14, %v6445_v26, %v6447_v51 }
 0x4ef   : > { %9141 = vmatmul.mubr.msk.bf16.vlgmr.msra.gmra.mrb[0].mxu1 %vm374_vm1, %v12274_v29  ;;  %v6450_v29 = vsel %vm5994_vm14, %v6447_v51, %v6449_v28 }
 0x4f0   : > { %9177 = vmatpush3.bf16.msra.mxu1 %v6526_v27  ;;  %9144 = vmatprep.mubr.msk.bf16.mxu1 %vm374_vm1, %v12275_v3  ;;  %v6446_v27 = vsel %vm5994_vm14, %v6443_v62, %v6445_v26  ;;  %v6455_v3 = vrot.slane %v11472_v38, 2  ;;  %v6461_v38 = vrot.slane %v11491_v7, 2 }
 0x4f1   : > { %9882 = vmatprep.subr.msk.bf16.mxu1 %vm429_vm0, %v8186_v11  ;;  %v6451_v11 = vrot.slane %v11453_v50, 2  ;;  %v6457_v50 = vrot.slane %v11481_v16, 2 }
 0x4f2   : > { %v6456_v61 = vsel %vm5994_vm14, %v6453_v57, %v6455_v3 }
 0x4f3   : > { %v6452_v24 = vsel %vm5994_vm14, %v6449_v28, %v6451_v11 }
 0x4f7   : > { %9145 = vmatmul.mubr.msk.bf16.gmra.mrb[4].mxu1 %vm374_vm1, %v12276_v55  ;;  %v6454_v55 = vsel %vm5994_vm14, %v6451_v11, %v6453_v57 }
 0x4f8   : > { %9148 = vmatprep.mubr.msk.bf16.mxu1 %vm374_vm1, %v12277_v42  ;;  %v6459_v42 = vrot.slane %v11487_v52, 2  ;;  %v6465_v52 = vrot.slane %v11507_v6, 2  ;;  %v7287_v6 = vsel %vm429_vm0, %v8206_v59, 0 }
 0x4fa   : > { %v6460_v0 = vsel %vm5994_vm14, %v6457_v50, %v6459_v42 }
 0x4ff   : > { %9149 = vmatmul.mubr.msk.bf16.gmra.mrb[8].mxu1 %vm374_vm1, %v12278_v53  ;;  %v6458_v53 = vsel %vm5994_vm14, %v6455_v3, %v6457_v50 }
 0x500   : > { %9152 = vmatprep.mubr.msk.bf16.mxu1 %vm374_vm1, %v12279_v10  ;;  %v6463_v10 = vrot.slane %v11501_v36, 2 }
 0x502   : > { %v6464_v16 = vsel %vm5994_vm14, %v6461_v38, %v6463_v10 }
 0x507   : > { %9153 = vmatmul.mubr.msk.bf16.gmra.mrb[12].mxu1 %vm374_vm1, %v12280_v40  ;;  %v6462_v40 = vsel %vm5994_vm14, %v6459_v42, %v6461_v38 }
 0x508   : > { %9156 = vmatprep.mubr.msk.bf16.mxu1 %vm374_vm1, %v12281_v4  ;;  %v6467_v4 = vrot.slane %v11520_v30, 2  ;;  %v12293_v30 = vld [vmem:[#allocation48_spill] sm:$0xff] }
 0x50a   : > { %v6468_v7 = vsel %vm5994_vm14, %v6465_v52, %v6467_v4 }
 0x50f   : > { %9157 = vmatmul.mubr.msk.bf16.gmra.mrb[16].mxu1 %vm374_vm1, %v12282_v47  ;;  %v6466_v47 = vsel %vm5994_vm14, %v6463_v10, %v6465_v52 }
 0x510   : > { %9160 = vmatprep.mubr.msk.bf16.mxu1 %vm374_vm1, %v12283_v22  ;;  %v9955_v22 = vld [vmem:[#allocation2 + $0xa0] ss:$0 sps:$4 sm:$0x33]  }
 0x511   : > { %v6469_v36 = vrot.slane %v9955_v22, 2 }
 0x517   : > { %9161 = vmatmul.mubr.msk.bf16.gmra.mrb[20].mxu1 %vm374_vm1, %v12284_v15  ;;  %v6470_v15 = vsel %vm5994_vm14, %v6467_v4, %v6469_v36 }
 0x518   : > { %9164 = vmatprep.mubr.msk.bf16.mxu1 %vm374_vm1, %v12285_v46  ;;  %v12292_v46 = vld [vmem:[#allocation47_spill] sm:$0xff] }
 0x51f   : > { %9165 = vmatmul.mubr.msk.bf16.gmra.mrb[24].mxu1 %vm374_vm1, %v12286_v49  ;;  %v12294_v49 = vld [vmem:[#allocation49_spill] sm:$0xff] }
 0x520   : > { %9168 = vmatprep.mubr.msk.bf16.mxu1 %vm374_vm1, %v12287_v33  ;;  %v12295_v33 = vld [vmem:[#allocation50_spill] sm:$0xff] }
 0x527   : > { %9169 = vmatmul.mubr.msk.bf16.gmra.mrb[28].mxu1 %vm374_vm1, %v12288_v14  ;;  %v12296_v14 = vld [vmem:[#allocation51_spill] sm:$0xff] }
 0x528   : > { %9172 = vmatprep.mubr.msk.bf16.mxu1 %vm374_vm1, %v12289_v19  ;;  %v12297_v19 = vld [vmem:[#allocation52_spill] sm:$0xff] }
 0x52f   : > { %9173 = vmatmul.mubr.msk.bf16.gmra.mrb[32].mxu1 %vm374_vm1, %v12291_v43  ;;  %v12301_v43 = vld [vmem:[#allocation56_spill] sm:$0xff] }
 0x530   : > { %9178 = vmatprep.mubr.msk.bf16.mxu1 %vm374_vm1, %v6436_v35  ;;  %v12302_v35 = vld [vmem:[#allocation57_spill] sm:$0xff] }
 0x537   : > { %9179 = vmatmul.mubr.msk.bf16.vlgmr.msra.gmra.mrb[0].mxu1 %vm374_vm1, %v6438_v44 }
 0x538   : > { %9215 = vmatpush3.bf16.msra.mxu1 %v6973_v32  ;;  %9182 = vmatprep.mubr.msk.bf16.mxu1 %vm374_vm1, %v6440_v60 }
 0x539   : > { %9883 = vmatprep.subr.msk.bf16.mxu1 %vm429_vm0, %v8206_v59 }
 0x53f   : > { %9183 = vmatmul.mubr.msk.bf16.gmra.mrb[4].mxu1 %vm374_vm1, %v6442_v25  ;;  %v7502_v25 = vld [vmem:[%s10034_s27 + $0x13] sm:$0xff] }
 0x540   : > { %9186 = vmatprep.mubr.msk.bf16.mxu1 %vm374_vm1, %v6444_v9 }
 0x547   : > { %9187 = vmatmul.mubr.msk.bf16.gmra.mrb[8].mxu1 %vm374_vm1, %v6446_v27  ;;  %v7505_v27 = vld [vmem:[%s10034_s27 + $0x2b] sm:$0xff] }
 0x548   : > { %9190 = vmatprep.mubr.msk.bf16.mxu1 %vm374_vm1, %v6448_v41 }
 0x54f   : > { %9191 = vmatmul.mubr.msk.bf16.gmra.mrb[12].mxu1 %vm374_vm1, %v6450_v29  ;;  %v7503_v29 = vld [vmem:[%s10034_s27 + $0x1b] sm:$0xff] }
 0x550   : > { %9194 = vmatprep.mubr.msk.bf16.mxu1 %vm374_vm1, %v6452_v24 }
 0x557   : > { %9195 = vmatmul.mubr.msk.bf16.gmra.mrb[16].mxu1 %vm374_vm1, %v6454_v55 }
 0x558   : > { %9198 = vmatprep.mubr.msk.bf16.mxu1 %vm374_vm1, %v6456_v61 }
 0x55f   : > { %9199 = vmatmul.mubr.msk.bf16.gmra.mrb[20].mxu1 %vm374_vm1, %v6458_v53 }
 0x560   : > { %9202 = vmatprep.mubr.msk.bf16.mxu1 %vm374_vm1, %v6460_v0 }
 0x567   : > { %9203 = vmatmul.mubr.msk.bf16.gmra.mrb[24].mxu1 %vm374_vm1, %v6462_v40  ;;  %v7508_v40 = vld [vmem:[%s10034_s27 + $0x43] sm:$0xff] }
 0x568   : > { %9206 = vmatprep.mubr.msk.bf16.mxu1 %vm374_vm1, %v6464_v16 }
 0x56f   : > { %9207 = vmatmul.mubr.msk.bf16.gmra.mrb[28].mxu1 %vm374_vm1, %v6466_v47  ;;  %v7506_v47 = vld [vmem:[%s10034_s27 + $0x33] sm:$0xff] }
 0x570   : > { %9210 = vmatprep.mubr.msk.bf16.mxu1 %vm374_vm1, %v6468_v7 }
 0x577   : > { %9211 = vmatmul.mubr.msk.bf16.gmra.mrb[32].mxu1 %vm374_vm1, %v6470_v15  ;;  %v7509_v15 = vld [vmem:[%s10034_s27 + $0x4b] sm:$0xff] }
 0x578   : > { %9216 = vmatprep.mubr.msk.bf16.mxu1 %vm374_vm1, %v12292_v46 }
 0x57f   : > { %9217 = vmatmul.mubr.msk.bf16.vlgmr.msra.gmra.mrb[0].mxu1 %vm374_vm1, %v12293_v30 }
 0x580   : > { %9253 = vmatpush3.bf16.msra.mxu1 %v7287_v6  ;;  %9220 = vmatprep.mubr.msk.bf16.mxu1 %vm374_vm1, %v12294_v49  ;;  %v7507_v49 = vld [vmem:[%s10034_s27 + $0x3b] sm:$0xff] }
 0x587   : > { %9221 = vmatmul.mubr.msk.bf16.gmra.mrb[4].mxu1 %vm374_vm1, %v12295_v33 }
 0x588   : > { %9224 = vmatprep.mubr.msk.bf16.mxu1 %vm374_vm1, %v12296_v14 }
 0x58f   : > { %9225 = vmatmul.mubr.msk.bf16.gmra.mrb[8].mxu1 %vm374_vm1, %v12297_v19 }
 0x590   : > { %9228 = vmatprep.mubr.msk.bf16.mxu1 %vm374_vm1, %v12298_v63 }
 0x597   : > { %9229 = vmatmul.mubr.msk.bf16.gmra.mrb[12].mxu1 %vm374_vm1, %v12299_v54 }
 0x598   : > { %9232 = vmatprep.mubr.msk.bf16.mxu1 %vm374_vm1, %v12300_v45 }
 0x59f   : > { %9233 = vmatmul.mubr.msk.bf16.gmra.mrb[16].mxu1 %vm374_vm1, %v12301_v43 }
 0x5a0   : > { %9236 = vmatprep.mubr.msk.bf16.mxu1 %vm374_vm1, %v12302_v35 }
 0x5a7   : > { %9237 = vmatmul.mubr.msk.bf16.gmra.mrb[20].mxu1 %vm374_vm1, %v11536_v56  ;;  %v12303_v56 = vld [vmem:[#allocation58_spill] sm:$0xff] }
 0x5a8   : > { %9240 = vmatprep.mubr.msk.bf16.mxu1 %vm374_vm1, %v11540_v8  ;;  %v12304_v8 = vld [vmem:[#allocation59_spill] sm:$0xff] }
 0x5af   : > { %9241 = vmatmul.mubr.msk.bf16.gmra.mrb[24].mxu1 %vm374_vm1, %v11548_v12  ;;  %v12305_v12 = vld [vmem:[#allocation60_spill] sm:$0xff] }
 0x5b0   : > { %9244 = vmatprep.mubr.msk.bf16.mxu1 %vm374_vm1, %v11554_v21  ;;  %v12306_v21 = vld [vmem:[#allocation61_spill] sm:$0xff] }
 0x5b7   : > { %9245 = vmatmul.mubr.msk.bf16.gmra.mrb[28].mxu1 %vm374_vm1, %v11557_v34  ;;  %v12307_v34 = vld [vmem:[#allocation62_spill] sm:$0xff] }
 0x5b8   : > { %9248 = vmatprep.mubr.msk.bf16.mxu1 %vm374_vm1, %v11564_v39  ;;  %v12308_v39 = vld [vmem:[#allocation63_spill] sm:$0xff] }
 0x5bf   : > { %9249 = vmatmul.mubr.msk.bf16.gmra.mrb[32].mxu1 %vm374_vm1, %v11572_v18  ;;  %v12310_v18 = vld [vmem:[#allocation65_spill] sm:$0xff] }
 0x5c0   : > { %9254 = vmatprep.mubr.msk.bf16.mxu1 %vm374_vm1, %v11567_v13  ;;  %v12309_v13 = vld [vmem:[#allocation64_spill] sm:$0xff] }
 0x5c7   : > { %9255 = vmatmul.mubr.msk.bf16.vlgmr.msra.gmra.mrb[0].mxu1 %vm374_vm1, %v11575_v17  ;;  %v12311_v17 = vld [vmem:[#allocation66_spill] sm:$0xff] }
 0x5c8   : > { %9258 = vmatprep.mubr.msk.bf16.mxu1 %vm374_vm1, %v11578_v2  ;;  %v12312_v2 = vld [vmem:[#allocation67_spill] sm:$0xff] }
 0x5cf   : > { %9259 = vmatmul.mubr.msk.bf16.gmra.mrb[4].mxu1 %vm374_vm1, %v11581_v1  ;;  %v12313_v1 = vld [vmem:[#allocation3_spill] sm:$0xff] }
 0x5d0   : > { %9262 = vmatprep.mubr.msk.bf16.mxu1 %vm374_vm1, %v12303_v56  ;;  %v7540_v20 = vsub.s32 2, %v12313_v1 }
 0x5d7   : > { %9263 = vmatmul.mubr.msk.bf16.gmra.mrb[8].mxu1 %vm374_vm1, %v12304_v8 }
 0x5d8   : > { %9266 = vmatprep.mubr.msk.bf16.mxu1 %vm374_vm1, %v12305_v12 }
 0x5df   : > { %9267 = vmatmul.mubr.msk.bf16.gmra.mrb[12].mxu1 %vm374_vm1, %v12306_v21  ;;  %v7512_v21 = vld [vmem:[%s10034_s27 + $0x63] sm:$0xff] }
 0x5e0   : > { %9270 = vmatprep.mubr.msk.bf16.mxu1 %vm374_vm1, %v12307_v34 }
 0x5e7   : > { %9271 = vmatmul.mubr.msk.bf16.gmra.mrb[16].mxu1 %vm374_vm1, %v12308_v39 }
 0x5e8   : > { %9274 = vmatprep.mubr.msk.bf16.mxu1 %vm374_vm1, %v12309_v13 }
 0x5ef   : > { %9275 = vmatmul.mubr.msk.bf16.gmra.mrb[20].mxu1 %vm374_vm1, %v12310_v18  ;;  %v7510_v18 = vld [vmem:[%s10034_s27 + $0x53] sm:$0xff] }
 0x5f0   : > { %9278 = vmatprep.mubr.msk.bf16.mxu1 %vm374_vm1, %v11629_v37  ;;  %v7580_v37 = vsub.s32 3, %v12313_v1 }
 0x5f7   : > { %9279 = vmatmul.mubr.msk.bf16.gmra.mrb[24].mxu1 %vm374_vm1, %v11632_v23  ;;  %v9971_v23 = vld [vmem:[%s12162_s3] sm:$0xf] }
 0x5f8   : > { %9282 = vmatprep.mubr.msk.bf16.mxu1 %vm374_vm1, %v12311_v17  ;;  %v11966_v31 = vrot.slane %v9971_v23, %v7540_v20  ;;  %v11968_v32 = vrot.slane %v9971_v23, %v7580_v37  ;;  %v7513_v20 = vld [vmem:[%s10034_s27 + $0x6b] sm:$0xff] }
 0x5ff   : > { %9283 = vmatmul.mubr.msk.bf16.gmra.mrb[28].mxu1 %vm374_vm1, %v12312_v2 }
 0x600   : > { %9286 = vmatprep.mubr.msk.bf16.mxu1 %vm374_vm1, %v11644_v48 }
 0x607   : > { %9287 = vmatmul.mubr.msk.bf16.gmra.mrb[32].mxu1 %vm374_vm1, %v11647_v5  ;;  %v7504_v5 = vld [vmem:[%s10034_s27 + $0x23] sm:$0xff] }
 0x69a   : > { %v9256_v44 = vpop.f32.mrb[0].mxu1 }
 0x69b   : > { %v7544_v48 = vmul.f32 %v9256_v44, %v11966_v31  ;;  %v7323_v59 = vpop.f32.mrb[1].mxu1 }
 0x69c   : > { %v7542_v60 = vmul.f32 %v11966_v31, %v7323_v59  ;;  %v9257_v58 = vpop.f32.mrb[2].mxu1 }
 0x69d   : > { %v7584_v62 = vadd.f32 %v11968_v32, %v7544_v48  ;;  %v7545_v9 = vmul.f32 %v9257_v58, %v11966_v31  ;;  %v7326_v26 = vpop.f32.mrb[3].mxu1  ;;  %v7511_v48 = vld [vmem:[%s10034_s27 + $0x5b] sm:$0xff] }
 0x69e   : > { %v7582_v51 = vadd.f32 %v11968_v32, %v7542_v60  ;;  %v7543_v41 = vmul.f32 %v11966_v31, %v7326_v26 }
 0x69f   : > { %v7620_v28 = vadd.f32 %v7584_v62, %v7504_v5  ;;  %v7585_v11 = vadd.f32 %v11968_v32, %v7545_v9 }
 0x6a0   : > { %v7618_v24 = vadd.f32 %v7582_v51, %v7502_v25  ;;  %v7583_v57 = vadd.f32 %v11968_v32, %v7543_v41 }
 0x6a1   : > { %v7656_v3 = vmax.f32 %v7620_v28, 0.0  ;;  %v7621_v55 = vadd.f32 %v7585_v11, %v7505_v27  ;;  %v7516_v28 = vld [vmem:[%s10034_s27 + $0x83] sm:$0xff] }
 0x6a2   : > { %v7654_v61 = vmax.f32 %v7618_v24, 0.0  ;;  %v7619_v50 = vadd.f32 %v7583_v57, %v7503_v29  ;;  %v9260_v42 = vpop.f32.mrb[4].mxu1  ;;  %v7514_v57 = vld [vmem:[%s10034_s27 + $0x73] sm:$0xff] }
 0x6a3   : > { %7692 = vst.msk [vmem:[%s11985_s28 + $0x10] sm:$0xff] %vm374_vm1, %v7656_v3  ;;  %v7657_v53 = vmax.f32 %v7621_v55, 0.0  ;;  %v7548_v0 = vmul.f32 %v9260_v42, %v11966_v31  ;;  %v7339_v38 = vpop.f32.mrb[5].mxu1 }
 0x6a4   : > { %7690 = vst.msk [vmem:[%s11985_s28] sm:$0xff] %vm374_vm1, %v7654_v61  ;;  %v7655_v10 = vmax.f32 %v7619_v50, 0.0  ;;  %v7546_v16 = vmul.f32 %v11966_v31, %v7339_v38  ;;  %v9261_v52 = vpop.f32.mrb[6].mxu1  ;;  %v7517_v50 = vld [vmem:[%s10034_s27 + $0x8b] sm:$0xff]  ;;  %v7515_v38 = vld [vmem:[%s10034_s27 + $0x7b] sm:$0xff] }
 0x6a5   : > { %7693 = vst.msk [vmem:[%s11985_s28 + $0x18] sm:$0xff] %vm374_vm1, %v7657_v53  ;;  %v7588_v4 = vadd.f32 %v11968_v32, %v7548_v0  ;;  %v7549_v22 = vmul.f32 %v9261_v52, %v11966_v31  ;;  %v7342_v7 = vpop.f32.mrb[7].mxu1 }
 0x6a6   : > { %7691 = vst.msk [vmem:[%s11985_s28 + $0x8] sm:$0xff] %vm374_vm1, %v7655_v10  ;;  %v7586_v36 = vadd.f32 %v11968_v32, %v7546_v16  ;;  %v7547_v46 = vmul.f32 %v11966_v31, %v7342_v7 }
 0x6a7   : > { %v7624_v6 = vadd.f32 %v7588_v4, %v7508_v40  ;;  %v7589_v30 = vadd.f32 %v11968_v32, %v7549_v22 }
 0x6a8   : > { %v7622_v33 = vadd.f32 %v7586_v36, %v7506_v47  ;;  %v7587_v14 = vadd.f32 %v11968_v32, %v7547_v46 }
 0x6a9   : > { %v7660_v19 = vmax.f32 %v7624_v6, 0.0  ;;  %v7625_v63 = vadd.f32 %v7589_v30, %v7509_v15  ;;  %v7520_v6 = vld [vmem:[%s10034_s27 + $0xa3] sm:$0xff] }
 0x6aa   : > { %v7658_v54 = vmax.f32 %v7622_v33, 0.0  ;;  %v7623_v45 = vadd.f32 %v7587_v14, %v7507_v49  ;;  %v9264_v43 = vpop.f32.mrb[8].mxu1  ;;  %v7518_v14 = vld [vmem:[%s10034_s27 + $0x93] sm:$0xff] }
 0x6ab   : > { %7696 = vst.msk [vmem:[%s11985_s28 + $0x30] sm:$0xff] %vm374_vm1, %v7660_v19  ;;  %v7661_v35 = vmax.f32 %v7625_v63, 0.0  ;;  %v7552_v56 = vmul.f32 %v9264_v43, %v11966_v31  ;;  %v7355_v8 = vpop.f32.mrb[9].mxu1 }
 0x6ac   : > { %7694 = vst.msk [vmem:[%s11985_s28 + $0x20] sm:$0xff] %vm374_vm1, %v7658_v54  ;;  %v7659_v12 = vmax.f32 %v7623_v45, 0.0  ;;  %v7550_v34 = vmul.f32 %v11966_v31, %v7355_v8  ;;  %v9265_v39 = vpop.f32.mrb[10].mxu1  ;;  %v7521_v45 = vld [vmem:[%s10034_s27 + $0xab] sm:$0xff]  ;;  %v7519_v8 = vld [vmem:[%s10034_s27 + $0x9b] sm:$0xff] }
 0x6ad   : > { %7697 = vst.msk [vmem:[%s11985_s28 + $0x38] sm:$0xff] %vm374_vm1, %v7661_v35  ;;  %v7592_v13 = vadd.f32 %v11968_v32, %v7552_v56  ;;  %v7553_v17 = vmul.f32 %v9265_v39, %v11966_v31  ;;  %v7358_v2 = vpop.f32.mrb[11].mxu1 }
 0x6ae   : > { %7695 = vst.msk [vmem:[%s11985_s28 + $0x28] sm:$0xff] %vm374_vm1, %v7659_v12  ;;  %v7590_v1 = vadd.f32 %v11968_v32, %v7550_v34  ;;  %v7551_v37 = vmul.f32 %v11966_v31, %v7358_v2 }
 0x6af   : > { %v7628_v23 = vadd.f32 %v7592_v13, %v7512_v21  ;;  %v7593_v44 = vadd.f32 %v11968_v32, %v7553_v17 }
 0x6b0   : > { %v7626_v59 = vadd.f32 %v7590_v1, %v7510_v18  ;;  %v7591_v5 = vadd.f32 %v11968_v32, %v7551_v37 }
 0x6b1   : > { %v7664_v60 = vmax.f32 %v7628_v23, 0.0  ;;  %v7629_v58 = vadd.f32 %v7593_v44, %v7513_v20  ;;  %v7524_v23 = vld [vmem:[%s10034_s27 + $0xc3] sm:$0xff] }
 0x6b2   : > { %v7662_v62 = vmax.f32 %v7626_v59, 0.0  ;;  %v7627_v25 = vadd.f32 %v7591_v5, %v7511_v48  ;;  %v9268_v9 = vpop.f32.mrb[12].mxu1  ;;  %v7522_v5 = vld [vmem:[%s10034_s27 + $0xb3] sm:$0xff] }
 0x6b3   : > { %7700 = vst.msk [vmem:[%s11985_s28 + $0x50] sm:$0xff] %vm374_vm1, %v7664_v60  ;;  %v7665_v26 = vmax.f32 %v7629_v58, 0.0  ;;  %v7556_v51 = vmul.f32 %v9268_v9, %v11966_v31  ;;  %v7371_v27 = vpop.f32.mrb[13].mxu1 }
 0x6b4   : > { %7698 = vst.msk [vmem:[%s11985_s28 + $0x40] sm:$0xff] %vm374_vm1, %v7662_v62  ;;  %v7663_v41 = vmax.f32 %v7627_v25, 0.0  ;;  %v7554_v11 = vmul.f32 %v11966_v31, %v7371_v27  ;;  %v9269_v29 = vpop.f32.mrb[14].mxu1  ;;  %v7525_v25 = vld [vmem:[%s10034_s27 + $0xcb] sm:$0xff]  ;;  %v7523_v27 = vld [vmem:[%s10034_s27 + $0xbb] sm:$0xff] }
 0x6b5   : > { %7701 = vst.msk [vmem:[%s11985_s28 + $0x58] sm:$0xff] %vm374_vm1, %v7665_v26  ;;  %v7596_v24 = vadd.f32 %v11968_v32, %v7556_v51  ;;  %v7557_v3 = vmul.f32 %v9269_v29, %v11966_v31  ;;  %v7374_v55 = vpop.f32.mrb[15].mxu1 }
 0x6b6   : > { %7699 = vst.msk [vmem:[%s11985_s28 + $0x48] sm:$0xff] %vm374_vm1, %v7663_v41  ;;  %v7594_v61 = vadd.f32 %v11968_v32, %v7554_v11  ;;  %v7555_v42 = vmul.f32 %v11966_v31, %v7374_v55 }
 0x6b7   : > { %v7632_v53 = vadd.f32 %v7596_v24, %v7516_v28  ;;  %v7597_v0 = vadd.f32 %v11968_v32, %v7557_v3 }
 0x6b8   : > { %v7630_v10 = vadd.f32 %v7594_v61, %v7514_v57  ;;  %v7595_v40 = vadd.f32 %v11968_v32, %v7555_v42 }
 0x6b9   : > { %v7668_v16 = vmax.f32 %v7632_v53, 0.0  ;;  %v7633_v52 = vadd.f32 %v7597_v0, %v7517_v50  ;;  %v7528_v53 = vld [vmem:[%s10034_s27 + $0xe3] sm:$0xff] }
 0x6ba   : > { %v7666_v4 = vmax.f32 %v7630_v10, 0.0  ;;  %v7631_v47 = vadd.f32 %v7595_v40, %v7515_v38  ;;  %v9272_v22 = vpop.f32.mrb[16].mxu1  ;;  %v7526_v40 = vld [vmem:[%s10034_s27 + $0xd3] sm:$0xff] }
 0x6bb   : > { %7704 = vst.msk [vmem:[%s11985_s28 + $0x70] sm:$0xff] %vm374_vm1, %v7668_v16  ;;  %v7669_v7 = vmax.f32 %v7633_v52, 0.0  ;;  %v7560_v36 = vmul.f32 %v9272_v22, %v11966_v31  ;;  %v7387_v15 = vpop.f32.mrb[17].mxu1 }
 0x6bc   : > { %7702 = vst.msk [vmem:[%s11985_s28 + $0x60] sm:$0xff] %vm374_vm1, %v7666_v4  ;;  %v7667_v46 = vmax.f32 %v7631_v47, 0.0  ;;  %v7558_v30 = vmul.f32 %v11966_v31, %v7387_v15  ;;  %v9273_v49 = vpop.f32.mrb[18].mxu1  ;;  %v7529_v47 = vld [vmem:[%s10034_s27 + $0xeb] sm:$0xff]  ;;  %v7527_v15 = vld [vmem:[%s10034_s27 + $0xdb] sm:$0xff] }
 0x6bd   : > { %7705 = vst.msk [vmem:[%s11985_s28 + $0x78] sm:$0xff] %vm374_vm1, %v7669_v7  ;;  %v7600_v33 = vadd.f32 %v11968_v32, %v7560_v36  ;;  %v7561_v19 = vmul.f32 %v9273_v49, %v11966_v31  ;;  %v7390_v63 = vpop.f32.mrb[19].mxu1 }
 0x6be   : > { %7703 = vst.msk [vmem:[%s11985_s28 + $0x68] sm:$0xff] %vm374_vm1, %v7667_v46  ;;  %v7598_v54 = vadd.f32 %v11968_v32, %v7558_v30  ;;  %v7559_v43 = vmul.f32 %v11966_v31, %v7390_v63 }
 0x6bf   : > { %v7636_v35 = vadd.f32 %v7600_v33, %v7520_v6  ;;  %v7601_v56 = vadd.f32 %v11968_v32, %v7561_v19 }
 0x6c0   : > { %v7634_v12 = vadd.f32 %v7598_v54, %v7518_v14  ;;  %v7599_v21 = vadd.f32 %v11968_v32, %v7559_v43 }
 0x6c1   : > { %v7672_v34 = vmax.f32 %v7636_v35, 0.0  ;;  %v7637_v39 = vadd.f32 %v7601_v56, %v7521_v45  ;;  %v7532_v35 = vld [vmem:[%s10034_s27 + $0x103] sm:$0xff] }
 0x6c2   : > { %v7670_v13 = vmax.f32 %v7634_v12, 0.0  ;;  %v7635_v18 = vadd.f32 %v7599_v21, %v7519_v8  ;;  %v9276_v17 = vpop.f32.mrb[20].mxu1  ;;  %v7530_v21 = vld [vmem:[%s10034_s27 + $0xf3] sm:$0xff] }
 0x6c3   : > { %7708 = vst.msk [vmem:[%s11985_s28 + $0x90] sm:$0xff] %vm374_vm1, %v7672_v34  ;;  %v7673_v2 = vmax.f32 %v7637_v39, 0.0  ;;  %v7564_v1 = vmul.f32 %v9276_v17, %v11966_v31  ;;  %v7403_v20 = vpop.f32.mrb[21].mxu1 }
 0x6c4   : > { %7706 = vst.msk [vmem:[%s11985_s28 + $0x80] sm:$0xff] %vm374_vm1, %v7670_v13  ;;  %v7671_v37 = vmax.f32 %v7635_v18, 0.0  ;;  %v7562_v44 = vmul.f32 %v11966_v31, %v7403_v20  ;;  %v9277_v48 = vpop.f32.mrb[22].mxu1  ;;  %v7533_v18 = vld [vmem:[%s10034_s27 + $0x10b] sm:$0xff]  ;;  %v7531_v20 = vld [vmem:[%s10034_s27 + $0xfb] sm:$0xff] }
 0x6c5   : > { %7709 = vst.msk [vmem:[%s11985_s28 + $0x98] sm:$0xff] %vm374_vm1, %v7673_v2  ;;  %v7604_v59 = vadd.f32 %v11968_v32, %v7564_v1  ;;  %v7565_v60 = vmul.f32 %v9277_v48, %v11966_v31  ;;  %v7406_v58 = vpop.f32.mrb[23].mxu1 }
 0x6c6   : > { %7707 = vst.msk [vmem:[%s11985_s28 + $0x88] sm:$0xff] %vm374_vm1, %v7671_v37  ;;  %v7602_v62 = vadd.f32 %v11968_v32, %v7562_v44  ;;  %v7563_v9 = vmul.f32 %v11966_v31, %v7406_v58 }
 0x6c7   : > { %v7640_v26 = vadd.f32 %v7604_v59, %v7524_v23  ;;  %v7605_v51 = vadd.f32 %v11968_v32, %v7565_v60 }
 0x6c8   : > { %v7638_v41 = vadd.f32 %v7602_v62, %v7522_v5  ;;  %v7603_v28 = vadd.f32 %v11968_v32, %v7563_v9 }
 0x6c9   : > { %v7676_v11 = vmax.f32 %v7640_v26, 0.0  ;;  %v7641_v29 = vadd.f32 %v7605_v51, %v7525_v25  ;;  %v7536_v26 = vld [vmem:[%s10034_s27 + $0x123] sm:$0xff] }
 0x6ca   : > { %v7674_v24 = vmax.f32 %v7638_v41, 0.0  ;;  %v7639_v57 = vadd.f32 %v7603_v28, %v7523_v27  ;;  %v9280_v3 = vpop.f32.mrb[24].mxu1  ;;  %v7534_v28 = vld [vmem:[%s10034_s27 + $0x113] sm:$0xff] }
 0x6cb   : > { %7712 = vst.msk [vmem:[%s11985_s28 + $0xb0] sm:$0xff] %vm374_vm1, %v7676_v11  ;;  %v7677_v55 = vmax.f32 %v7641_v29, 0.0  ;;  %v7568_v61 = vmul.f32 %v9280_v3, %v11966_v31  ;;  %v7419_v50 = vpop.f32.mrb[25].mxu1 }
 0x6cc   : > { %7710 = vst.msk [vmem:[%s11985_s28 + $0xa0] sm:$0xff] %vm374_vm1, %v7674_v24  ;;  %v7675_v42 = vmax.f32 %v7639_v57, 0.0  ;;  %v7566_v0 = vmul.f32 %v11966_v31, %v7419_v50  ;;  %v9281_v38 = vpop.f32.mrb[26].mxu1  ;;  %v7537_v57 = vld [vmem:[%s10034_s27 + $0x12b] sm:$0xff]  ;;  %v7535_v50 = vld [vmem:[%s10034_s27 + $0x11b] sm:$0xff] }
 0x6cd   : > { %7713 = vst.msk [vmem:[%s11985_s28 + $0xb8] sm:$0xff] %vm374_vm1, %v7677_v55  ;;  %v7608_v10 = vadd.f32 %v11968_v32, %v7568_v61  ;;  %v7569_v16 = vmul.f32 %v9281_v38, %v11966_v31  ;;  %v7422_v52 = vpop.f32.mrb[27].mxu1 }
 0x6ce   : > { %7711 = vst.msk [vmem:[%s11985_s28 + $0xa8] sm:$0xff] %vm374_vm1, %v7675_v42  ;;  %v7606_v4 = vadd.f32 %v11968_v32, %v7566_v0  ;;  %v7567_v22 = vmul.f32 %v11966_v31, %v7422_v52 }
 0x6cf   : > { %v7644_v7 = vadd.f32 %v7608_v10, %v7528_v53  ;;  %v7609_v36 = vadd.f32 %v11968_v32, %v7569_v16 }
 0x6d0   : > { %v7642_v46 = vadd.f32 %v7606_v4, %v7526_v40  ;;  %v7607_v6 = vadd.f32 %v11968_v32, %v7567_v22 }
 0x6d1   : > { %v7680_v30 = vmax.f32 %v7644_v7, 0.0  ;;  %v7645_v49 = vadd.f32 %v7609_v36, %v7529_v47 }
 0x6d2   : > { %v7678_v33 = vmax.f32 %v7642_v46, 0.0  ;;  %v7643_v14 = vadd.f32 %v7607_v6, %v7527_v15  ;;  %v9284_v19 = vpop.f32.mrb[28].mxu1 }
 0x6d3   : > { %7716 = vst.msk [vmem:[%s11985_s28 + $0xd0] sm:$0xff] %vm374_vm1, %v7680_v30  ;;  %v7681_v63 = vmax.f32 %v7645_v49, 0.0  ;;  %v7572_v54 = vmul.f32 %v9284_v19, %v11966_v31  ;;  %v7435_v45 = vpop.f32.mrb[29].mxu1 }
 0x6d4   : > { %7714 = vst.msk [vmem:[%s11985_s28 + $0xc0] sm:$0xff] %vm374_vm1, %v7678_v33  ;;  %v7679_v43 = vmax.f32 %v7643_v14, 0.0  ;;  %v7570_v56 = vmul.f32 %v11966_v31, %v7435_v45  ;;  %v9285_v8 = vpop.f32.mrb[30].mxu1 }
 0x6d5   : > { %7717 = vst.msk [vmem:[%s11985_s28 + $0xd8] sm:$0xff] %vm374_vm1, %v7681_v63  ;;  %v7612_v12 = vadd.f32 %v11968_v32, %v7572_v54  ;;  %v7573_v34 = vmul.f32 %v9285_v8, %v11966_v31  ;;  %v7438_v39 = vpop.f32.mrb[31].mxu1 }
 0x6d6   : > { %7715 = vst.msk [vmem:[%s11985_s28 + $0xc8] sm:$0xff] %vm374_vm1, %v7679_v43  ;;  %v7610_v13 = vadd.f32 %v11968_v32, %v7570_v56  ;;  %v7571_v17 = vmul.f32 %v11966_v31, %v7438_v39 }
 0x6d7   : > { %v7648_v2 = vadd.f32 %v7612_v12, %v7532_v35  ;;  %v7613_v1 = vadd.f32 %v11968_v32, %v7573_v34 }
 0x6d8   : > { %v7646_v37 = vadd.f32 %v7610_v13, %v7530_v21  ;;  %v7611_v23 = vadd.f32 %v11968_v32, %v7571_v17 }
 0x6d9   : > { %v7684_v44 = vmax.f32 %v7648_v2, 0.0  ;;  %v7649_v48 = vadd.f32 %v7613_v1, %v7533_v18 }
 0x6da   : > { %v7682_v59 = vmax.f32 %v7646_v37, 0.0  ;;  %v7647_v5 = vadd.f32 %v7611_v23, %v7531_v20  ;;  %v9288_v60 = vpop.f32.mrb[32].mxu1 }
 0x6db   : > { %7720 = vst.msk [vmem:[%s11985_s28 + $0xf0] sm:$0xff] %vm374_vm1, %v7684_v44  ;;  %v7685_v58 = vmax.f32 %v7649_v48, 0.0  ;;  %v7576_v62 = vmul.f32 %v9288_v60, %v11966_v31  ;;  %v7451_v25 = vpop.f32.mrb[33].mxu1 }
 0x6dc   : > { %7718 = vst.msk [vmem:[%s11985_s28 + $0xe0] sm:$0xff] %vm374_vm1, %v7682_v59  ;;  %v7683_v9 = vmax.f32 %v7647_v5, 0.0  ;;  %v7574_v51 = vmul.f32 %v11966_v31, %v7451_v25  ;;  %v9289_v27 = vpop.f32.mrb[34].mxu1 }
 0x6dd   : > { %7721 = vst.msk [vmem:[%s11985_s28 + $0xf8] sm:$0xff] %vm374_vm1, %v7685_v58  ;;  %v7616_v41 = vadd.f32 %v11968_v32, %v7576_v62  ;;  %v7577_v11 = vmul.f32 %v9289_v27, %v11966_v31  ;;  %v7454_v29 = vpop.f32.mrb[35].mxu1 }
 0x6de   : > { %7719 = vst.msk [vmem:[%s11985_s28 + $0xe8] sm:$0xff] %vm374_vm1, %v7683_v9  ;;  %v7614_v24 = vadd.f32 %v11968_v32, %v7574_v51  ;;  %v7575_v3 = vmul.f32 %v11966_v31, %v7454_v29 }
 0x6df   : > { %v7652_v55 = vadd.f32 %v7616_v41, %v7536_v26  ;;  %v7617_v61 = vadd.f32 %v11968_v32, %v7577_v11 }
 0x6e0   : > { %v7650_v42 = vadd.f32 %v7614_v24, %v7534_v28  ;;  %v7615_v53 = vadd.f32 %v11968_v32, %v7575_v3 }
 0x6e1   : > { %v7688_v0 = vmax.f32 %v7652_v55, 0.0  ;;  %v7653_v38 = vadd.f32 %v7617_v61, %v7537_v57 }
 0x6e2   : > { %v7686_v10 = vmax.f32 %v7650_v42, 0.0  ;;  %v7651_v40 = vadd.f32 %v7615_v53, %v7535_v50 }
 0x6e3   : > { %7724 = vst.msk [vmem:[%s11985_s28 + $0x110] sm:$0xff] %vm374_vm1, %v7688_v0  ;;  %v7689_v16 = vmax.f32 %v7653_v38, 0.0 }
 0x6e4   : > { %7722 = vst.msk [vmem:[%s11985_s28 + $0x100] sm:$0xff] %vm374_vm1, %v7686_v10  ;;  %v7687_v52 = vmax.f32 %v7651_v40, 0.0 }
 0x6e5   : > { %7725 = vst.msk [vmem:[%s11985_s28 + $0x118] sm:$0xff] %vm374_vm1, %v7689_v16 }
 0x6e6   : > { %7723 = vst.msk [vmem:[%s11985_s28 + $0x108] sm:$0xff] %vm374_vm1, %v7687_v52 }
 0x6e7 PF: > { %s15_s18 = sadd.s32 1, %s9978_s18  }
 0x6e8   : > { %p12_p4 = scmp.ge.s32.totalorder %s15_s18, 4  }
 0x6ea   :  { %14 = sbr.rel (!%p12_p4) target bundleno = 1 (0x1), region = 86 }

</bundles_post_ra>
